<compile_context>
chip_gen: v6e
topology: v6e:2x2x1
jax: 0.10.0
libtpu: 0.0.40
codegen_flags: <defaults>
</compile_context>

<pallas_src>
import functools

import jax
import jax.numpy as jnp
from jax import lax
from jax.experimental import pallas as pl
from jax.experimental.pallas import tpu as pltpu

_LANES = 128


def _round_up(n, m=_LANES):
    return ((n + m - 1) // m) * m


def _pad_last(a, target):
    pad = target - a.shape[-1]
    if pad == 0:
        return a
    return jnp.pad(a, [(0, 0)] * (a.ndim - 1) + [(0, pad)])


def _pack_weights(w, cin_p, cout_p):
    """(3,3,Cin,Cout) HWIO -> lane-padded, tap-major (9*cin_p, cout_p) bf16 matrix."""
    kh, kw, cin, cout = w.shape
    wp = jnp.zeros((kh, kw, cin_p, cout_p), jnp.float32)
    wp = wp.at[:, :, :cin, :cout].set(w.astype(jnp.float32))
    return wp.reshape(kh * kw * cin_p, cout_p).astype(jnp.bfloat16)


def _vmem_limit_bytes():
    cap = 64 * 1024 * 1024  # conservative default (v7x physical VMEM per TC)
    try:
        cap = int(getattr(pltpu.get_tpu_info(), "vmem_capacity_bytes", cap))
    except Exception:
        pass
    return max(32 * 1024 * 1024, min(cap * 3 // 4, 96 * 1024 * 1024))


def _choose_row_tile(B, H, W, cin_p, cout_p, vmem_limit):
    """Largest divisor-of-H row tile whose per-step footprint fits ~half the VMEM limit."""
    # Per output row: double-buffered input/residual/output tiles + bf16 im2col patch
    # matrix + a few f32 full-tile temporaries.
    per_row = W * (cin_p * (2 * 4 + 9 * 2 + 3 * 4) + cout_p * (2 * 4 + 3 * 4))
    max_th = max(1, (vmem_limit // 2) // max(per_row, 1))
    if B < 2 and H % 2 == 0:
        max_th = min(max_th, H // 2)  # keep >= 2 row tiles for v7x megacore when batch==1
    th = 1
    for cand in range(1, min(H, max_th) + 1):
        if H % cand == 0:
            th = cand
    # TODO(synk): allow non-divisor tiles via pl.cdiv + in-kernel masking.
    return th


def _conv3x3_kernel(TH, W, nH, apply_shift, with_residual, with_stats, *refs):
    """relu(conv3x3_same(x + shift) @ w + b [+ res]) for one (batch, row-tile) grid cell.

    Ref layout (NHWC blocks, channels lane-padded to a multiple of 128):
      x_up  : (1, 1,  W, Cin)   image row above the tile (clamped; zeroed at the border)
      x_mid : (1, TH, W, Cin)   the tile rows
      x_dn  : (1, 1,  W, Cin)   image row below the tile (clamped; zeroed at the border)
      shift : (1, Cin)          optional per-channel additive offset (BN; scale is in w)
      w     : (9*Cin, Cout)     tap-major packed weights, bf16
      b     : (1, Cout)
      res   : (1, TH, W, Cout)  optional residual tile
      out   : (1, TH, W, Cout)
      ssum/ssq : (1, 1, 1, Cout) optional per-batch BN sums (accumulated across row tiles)
    """
    refs = list(refs)
    up_ref = refs.pop(0)
    mid_ref = refs.pop(0)
    dn_ref = refs.pop(0)
    shift_ref = refs.pop(0) if apply_shift else None
    w_ref = refs.pop(0)
    b_ref = refs.pop(0)
    res_ref = refs.pop(0) if with_residual else None
    out_ref = refs.pop(0)
    if with_stats:
        ssum_ref = refs.pop(0)
        ssq_ref = refs.pop(0)

    h = pl.program_id(1)
    cin = mid_ref.shape[-1]
    cout = out_ref.shape[-1]

    up = up_ref[0].astype(jnp.float32)    # (1,  W, Cin)
    mid = mid_ref[0].astype(jnp.float32)  # (TH, W, Cin)
    dn = dn_ref[0].astype(jnp.float32)    # (1,  W, Cin)

    if apply_shift:  # BatchNorm shift (scale already folded into the packed weights)
        sh = shift_ref[...].astype(jnp.float32).reshape(1, 1, cin)
        up = up + sh
        mid = mid + sh
        dn = dn + sh

    # Rows outside the image contribute zeros ('same' padding). Zero AFTER the shift so
    # the padding contribution stays exactly zero.
    up = up * (h > 0).astype(jnp.float32)
    dn = dn * (h < nH - 1).astype(jnp.float32)

    # Row taps: a_up[r] = image row r-1, a_dn[r] = image row r+1 (tile coordinates).
    if TH > 1:
        a_up = jnp.concatenate([up, mid[:TH - 1]], axis=0)
        a_dn = jnp.concatenate([mid[1:], dn], axis=0)
    else:
        a_up, a_dn = up, dn
    rows = (a_up, mid, a_dn)

    # Column taps: +-1 shift along W via the XLU roll; wrapped border column zeroed.
    col = lax.broadcasted_iota(jnp.int32, (1, W, 1), 1)
    left_ok = col >= 1
    right_ok = col <= W - 2

    taps = []
    for dy in range(3):
        r = rows[dy]
        taps.append(jnp.where(left_ok, pltpu.roll(r, shift=1, axis=1), 0.0)
                    .astype(jnp.bfloat16))                          # dx = 0 : col c-1
        taps.append(r.astype(jnp.bfloat16))                          # dx = 1 : col c
        taps.append(jnp.where(right_ok, pltpu.roll(r, shift=W - 1, axis=1), 0.0)
                    .astype(jnp.bfloat16))                           # dx = 2 : col c+1

    # im2col patch matrix (tap-major, matching the packed weights) -> one deep MXU dot.
    patches = jnp.concatenate(taps, axis=-1).reshape(TH * W, 9 * cin)
    acc = jnp.dot(patches, w_ref[...], preferred_element_type=jnp.float32)

    acc = acc + b_ref[...].astype(jnp.float32)
    if with_residual:
        acc = acc + res_ref[0].astype(jnp.float32).reshape(TH * W, cout)
    y = jnp.maximum(acc, 0.0)
    out_ref[0] = y.reshape(TH, W, cout).astype(out_ref.dtype)

    if with_stats:  # per-batch BatchNorm partial sums, accumulated across the row axis
        s = jnp.sum(y, axis=0, keepdims=True)        # (1, Cout)
        sq = jnp.sum(y * y, axis=0, keepdims=True)   # (1, Cout)

        @pl.when(h == 0)
        def _():
            ssum_ref[0, 0] = s
            ssq_ref[0, 0] = sq

        @pl.when(h > 0)
        def _():
            ssum_ref[0, 0] += s
            ssq_ref[0, 0] += sq


def conv3x3_fused(x, w_packed, b, *, shift=None, residual=None, with_stats=False):
    """relu(conv3x3_same(x + shift) @ w + b [+ residual]) with optional BN partial stats.

    x: (B, H, W, Cin) NHWC, Cin a multiple of 128.  w_packed: (9*Cin, Cout) bf16 tap-major
    weights.  b: (Cout,).  shift: (Cin,) per-channel additive offset.  residual: NHWC.
    """
    B, H, W, cin_p = x.shape
    cout_p = w_packed.shape[-1]
    assert w_packed.shape[0] == 9 * cin_p

    vmem_limit = _vmem_limit_bytes()
    TH = _choose_row_tile(B, H, W, cin_p, cout_p, vmem_limit)
    nH = H // TH

    up_spec = pl.BlockSpec((1, 1, W, cin_p),
                           lambda b_, h_: (b_, jnp.maximum(h_ * TH - 1, 0), 0, 0))
    mid_spec = pl.BlockSpec((1, TH, W, cin_p), lambda b_, h_: (b_, h_, 0, 0))
    dn_spec = pl.BlockSpec((1, 1, W, cin_p),
                           lambda b_, h_: (b_, jnp.minimum(h_ * TH + TH, H - 1), 0, 0))

    def resident(shape):  # small array kept resident across the whole grid
        return pl.BlockSpec(shape, lambda b_, h_: (0,) * len(shape))

    inputs = [x, x, x]
    in_specs = [up_spec, mid_spec, dn_spec]
    if shift is not None:
        inputs.append(shift.reshape(1, cin_p).astype(jnp.float32))
        in_specs.append(resident((1, cin_p)))
    inputs += [w_packed, b.reshape(1, cout_p).astype(jnp.float32)]
    in_specs += [resident((9 * cin_p, cout_p)), resident((1, cout_p))]
    if residual is not None:
        inputs.append(residual)
        in_specs.append(pl.BlockSpec((1, TH, W, cout_p), lambda b_, h_: (b_, h_, 0, 0)))

    out_shapes = [jax.ShapeDtypeStruct((B, H, W, cout_p), x.dtype)]
    out_specs = [pl.BlockSpec((1, TH, W, cout_p), lambda b_, h_: (b_, h_, 0, 0))]
    if with_stats:
        out_shapes += [jax.ShapeDtypeStruct((B, 1, 1, cout_p), jnp.float32)] * 2
        out_specs += [pl.BlockSpec((1, 1, 1, cout_p), lambda b_, h_: (b_, 0, 0, 0))] * 2

    kernel = functools.partial(_conv3x3_kernel, TH, W, nH,
                               shift is not None, residual is not None, with_stats)
    # The row-tile axis accumulates the BN stats in place -> mark it "arbitrary" then.
    dims = ("parallel", "arbitrary") if with_stats else ("parallel", "parallel")

    outs = pl.pallas_call(
        kernel,
        grid=(B, nH),
        in_specs=in_specs,
        out_specs=tuple(out_specs),
        out_shape=tuple(out_shapes),
        compiler_params=pltpu.CompilerParams(dimension_semantics=dims,
                                             vmem_limit_bytes=vmem_limit),
    )(*inputs)
    if with_stats:
        return outs  # (y, batch_sum, batch_sumsq)
    return outs[0] if isinstance(outs, (tuple, list)) else outs


def residual_block_forward_nhwc(x, params, eps=1e-5):
    """Residual_Block forward in NHWC (no NCHW<->NHWC relayouts)."""
    B, H, W, C = x.shape
    F = params["w1"].shape[-1]
    Cp, Fp = _round_up(C), _round_up(F)

    x_p = _pad_last(x, Cp)  # lane-dense channels (padded once; result sliced back)

    w1p = _pack_weights(params["w1"], Cp, Fp)
    b1p = _pad_last(params["b1"].astype(jnp.float32), Fp)

    # cnn1 + activation1, with per-batch BN partial sums accumulated inside the kernel.
    x1, ssum, ssq = conv3x3_fused(x_p, w1p, b1p, with_stats=True)

    # batchnorm1 (training-mode batch statistics) -> per-channel affine; tiny (C,) glue.
    n = float(B * H * W)
    mean = jnp.sum(ssum, axis=(0, 1, 2)) / n
    var = jnp.maximum(jnp.sum(ssq, axis=(0, 1, 2)) / n - mean * mean, 0.0)  # biased (training BN)
    gamma = _pad_last(params["gamma"].astype(jnp.float32), Fp)
    beta = _pad_last(params["beta"].astype(jnp.float32), Fp)
    scale = gamma * lax.rsqrt(var + eps)
    shift = beta - mean * scale
    # conv(scale*x1 + shift) == conv_{w2*scale}(x1 + shift/scale); scale==0 only when
    # gamma==0, where the folded weights are zero anyway (guard just avoids inf/NaN).
    in_shift = shift / jnp.where(scale == 0.0, 1.0, scale)

    w2_folded = params["w2"] * scale[:F][None, None, :, None]
    w2p = _pack_weights(w2_folded, Fp, Cp)
    b2p = _pad_last(params["b2"].astype(jnp.float32), Cp)

    # batchnorm1-normalize + cnn2 + skip connection + activation2, fused.
    y = conv3x3_fused(x1, w2p, b2p, shift=in_shift, residual=x_p)
    return y[..., :C]


def residual_block_forward(x_nchw, params, eps=1e-5):
    """PyTorch-layout entry point. x_nchw: (B, C, H, W).

    # TODO(synk): the NCHW<->NHWC relayouts below are plain XLA copies; callers that
    # already hold NHWC activations should use residual_block_forward_nhwc directly.
    """
    x = jnp.transpose(x_nchw, (0, 2, 3, 1))
    y = residual_block_forward_nhwc(x, params, eps=eps)
    return jnp.transpose(y, (0, 3, 1, 2))


# ----------------------------------------------------------------------------
# Pure-JAX reference (correctness check)
# ----------------------------------------------------------------------------
def _ref_residual_block(x_nchw, params, eps=1e-5):
    x = jnp.transpose(x_nchw, (0, 2, 3, 1))

    def conv(v, w, b):
        return lax.conv_general_dilated(
            v, w, window_strides=(1, 1), padding="SAME",
            dimension_numbers=("NHWC", "HWIO", "NHWC")) + b

    x1 = jnp.maximum(conv(x, params["w1"], params["b1"]), 0.0)
    mean = jnp.mean(x1, axis=(0, 1, 2))
    var = jnp.mean(jnp.square(x1 - mean), axis=(0, 1, 2))
    x1 = (x1 - mean) * lax.rsqrt(var + eps) * params["gamma"] + params["beta"]
    y = jnp.maximum(conv(x1, params["w2"], params["b2"]) + x, 0.0)
    return jnp.transpose(y, (0, 3, 1, 2))


if __name__ == "__main__":
    # Small shapes consistent with the module: Residual_Block(input_dim=8, feature_dim=16)
    B, C, H, W = 2, 8, 16, 16
    FEATURE_DIM = 16

    key = jax.random.PRNGKey(0)
    k_x, k1, k2 = jax.random.split(key, 3)
    x = jax.random.normal(k_x, (B, C, H, W), jnp.float32)  # NCHW like PyTorch

    def init_conv(k, cin, cout):
        kw, kb = jax.random.split(k)
        bound = 1.0 / (cin * 9.0) ** 0.5  # PyTorch-like uniform bounds, HWIO layout
        w = jax.random.uniform(kw, (3, 3, cin, cout), jnp.float32, -bound, bound)
        b = jax.random.uniform(kb, (cout,), jnp.float32, -bound, bound)
        return w, b

    w1, b1 = init_conv(k1, C, FEATURE_DIM)
    w2, b2 = init_conv(k2, FEATURE_DIM, C)
    params = dict(w1=w1, b1=b1, w2=w2, b2=b2,
                  gamma=jnp.ones((FEATURE_DIM,), jnp.float32),
                  beta=jnp.zeros((FEATURE_DIM,), jnp.float32))

    out = jax.jit(residual_block_forward)(x, params)
    out = jax.block_until_ready(out)

    ref = _ref_residual_block(x, params)
    assert out.shape == (B, C, H, W), out.shape
    # bf16 MXU operands (with f32 accumulation) introduce ~1e-2-scale differences vs the
    # pure-f32 XLA reference; tolerance set accordingly.
    err = float(jnp.max(jnp.abs(out - ref)))
    assert err < 7.5e-2, f"max abs err {err}"
    print("KERNEL_OK")
</pallas_src>

<mosaic_0001>
module attributes {stable_mosaic.version = 11 : i64} {
  func.func @_conv3x3_kernel(%arg0: i32, %arg1: i32, %arg2: memref<1x1x16x128xf32, #tpu.memory_space<vmem>>, %arg3: memref<1x16x16x128xf32, #tpu.memory_space<vmem>>, %arg4: memref<1x1x16x128xf32, #tpu.memory_space<vmem>>, %arg5: memref<1152x128xbf16, #tpu.memory_space<vmem>>, %arg6: memref<1x128xf32, #tpu.memory_space<vmem>>, %arg7: memref<1x16x16x128xf32, #tpu.memory_space<vmem>>, %arg8: memref<1x1x1x128xf32, #tpu.memory_space<vmem>>, %arg9: memref<1x1x1x128xf32, #tpu.memory_space<vmem>>) attributes {dimension_semantics = [#tpu.dimension_semantics<parallel>, #tpu.dimension_semantics<arbitrary>], iteration_bounds = array<i64: 2, 1>, scalar_prefetch = 0 : i64, scratch_operands = 0 : i64, tpu.core_type = #tpu.core_type<tc>, window_params = [{transform_indices = @transform_0, window_bounds = array<i64: 1, 1, 16, 128>}, {transform_indices = @transform_1, window_bounds = array<i64: 1, 16, 16, 128>}, {transform_indices = @transform_2, window_bounds = array<i64: 1, 1, 16, 128>}, {pipeline_mode = #tpu.pipeline_mode<synchronous>, transform_indices = @transform_3, window_bounds = array<i64: 1152, 128>}, {pipeline_mode = #tpu.pipeline_mode<synchronous>, transform_indices = @transform_4, window_bounds = array<i64: 1, 128>}, {transform_indices = @transform_5, window_bounds = array<i64: 1, 16, 16, 128>}, {transform_indices = @transform_6, window_bounds = array<i64: 1, 1, 1, 128>}, {transform_indices = @transform_7, window_bounds = array<i64: 1, 1, 1, 128>}]} {
    %c0 = arith.constant 0 : index
    %c0_0 = arith.constant 0 : index
    %c0_1 = arith.constant 0 : index
    %c0_2 = arith.constant 0 : index
    %0 = vector.load %arg2[%c0, %c0_0, %c0_1, %c0_2] : memref<1x1x16x128xf32, #tpu.memory_space<vmem>>, vector<1x1x16x128xf32>
    %1 = vector.shape_cast %0 : vector<1x1x16x128xf32> to vector<1x16x128xf32>
    %c0_3 = arith.constant 0 : index
    %c0_4 = arith.constant 0 : index
    %c0_5 = arith.constant 0 : index
    %c0_6 = arith.constant 0 : index
    %2 = vector.load %arg3[%c0_3, %c0_4, %c0_5, %c0_6] : memref<1x16x16x128xf32, #tpu.memory_space<vmem>>, vector<1x16x16x128xf32>
    %3 = vector.shape_cast %2 : vector<1x16x16x128xf32> to vector<16x16x128xf32>
    %c0_7 = arith.constant 0 : index
    %c0_8 = arith.constant 0 : index
    %c0_9 = arith.constant 0 : index
    %c0_10 = arith.constant 0 : index
    %4 = vector.load %arg4[%c0_7, %c0_8, %c0_9, %c0_10] : memref<1x1x16x128xf32, #tpu.memory_space<vmem>>, vector<1x1x16x128xf32>
    %5 = vector.shape_cast %4 : vector<1x1x16x128xf32> to vector<1x16x128xf32>
    %c0_i32 = arith.constant 0 : i32
    %6 = arith.cmpi sgt, %arg1, %c0_i32 : i32
    %7 = arith.extui %6 : i1 to i32
    %8 = arith.sitofp %7 : i32 to f32
    %9 = vector.broadcast %8 : f32 to vector<1x16x128xf32>
    %10 = arith.mulf %1, %9 : vector<1x16x128xf32>
    %c0_i32_11 = arith.constant 0 : i32
    %11 = arith.cmpi slt, %arg1, %c0_i32_11 : i32
    %12 = arith.extui %11 : i1 to i32
    %13 = arith.sitofp %12 : i32 to f32
    %14 = vector.broadcast %13 : f32 to vector<1x16x128xf32>
    %15 = arith.mulf %5, %14 : vector<1x16x128xf32>
    %16 = vector.extract_strided_slice %3 {offsets = [0, 0, 0], sizes = [15, 16, 128], strides = [1, 1, 1]} : vector<16x16x128xf32> to vector<15x16x128xf32>
    %17 = tpu.concatenate %10, %16 in 0 : vector<1x16x128xf32>, vector<15x16x128xf32> -> vector<16x16x128xf32>
    %18 = vector.extract_strided_slice %3 {offsets = [1, 0, 0], sizes = [15, 16, 128], strides = [1, 1, 1]} : vector<16x16x128xf32> to vector<15x16x128xf32>
    %19 = tpu.concatenate %18, %15 in 0 : vector<15x16x128xf32>, vector<1x16x128xf32> -> vector<16x16x128xf32>
    %20 = tpu.iota {dimensions = array<i32: 1>} : vector<1x16x1xi32>
    %c1_i32 = arith.constant 1 : i32
    %21 = vector.broadcast %c1_i32 : i32 to vector<1x16x1xi32>
    %22 = arith.cmpi sge, %20, %21 : vector<1x16x1xi32>
    %c14_i32 = arith.constant 14 : i32
    %23 = vector.broadcast %c14_i32 : i32 to vector<1x16x1xi32>
    %24 = arith.cmpi sle, %20, %23 : vector<1x16x1xi32>
    %c1_i32_12 = arith.constant 1 : i32
    %25 = tpu.dynamic_rotate %17 by %c1_i32_12 dim 1 : vector<16x16x128xf32>, i32 -> vector<16x16x128xf32>
    %cst = arith.constant 0.000000e+00 : f32
    %26 = vector.shape_cast %22 : vector<1x16x1xi1> to vector<1x16x1xi1>
    %27 = vector.broadcast %26 : vector<1x16x1xi1> to vector<16x16x128xi1>
    %28 = vector.broadcast %cst : f32 to vector<16x16x128xf32>
    %29 = arith.select %27, %25, %28 : vector<16x16x128xi1>, vector<16x16x128xf32>
    %30 = arith.truncf %29 : vector<16x16x128xf32> to vector<16x16x128xbf16>
    %31 = arith.truncf %17 : vector<16x16x128xf32> to vector<16x16x128xbf16>
    %c15_i32 = arith.constant 15 : i32
    %32 = tpu.dynamic_rotate %17 by %c15_i32 dim 1 : vector<16x16x128xf32>, i32 -> vector<16x16x128xf32>
    %cst_13 = arith.constant 0.000000e+00 : f32
    %33 = vector.shape_cast %24 : vector<1x16x1xi1> to vector<1x16x1xi1>
    %34 = vector.broadcast %33 : vector<1x16x1xi1> to vector<16x16x128xi1>
    %35 = vector.broadcast %cst_13 : f32 to vector<16x16x128xf32>
    %36 = arith.select %34, %32, %35 : vector<16x16x128xi1>, vector<16x16x128xf32>
    %37 = arith.truncf %36 : vector<16x16x128xf32> to vector<16x16x128xbf16>
    %c1_i32_14 = arith.constant 1 : i32
    %38 = tpu.dynamic_rotate %3 by %c1_i32_14 dim 1 : vector<16x16x128xf32>, i32 -> vector<16x16x128xf32>
    %cst_15 = arith.constant 0.000000e+00 : f32
    %39 = vector.shape_cast %22 : vector<1x16x1xi1> to vector<1x16x1xi1>
    %40 = vector.broadcast %39 : vector<1x16x1xi1> to vector<16x16x128xi1>
    %41 = vector.broadcast %cst_15 : f32 to vector<16x16x128xf32>
    %42 = arith.select %40, %38, %41 : vector<16x16x128xi1>, vector<16x16x128xf32>
    %43 = arith.truncf %42 : vector<16x16x128xf32> to vector<16x16x128xbf16>
    %44 = arith.truncf %3 : vector<16x16x128xf32> to vector<16x16x128xbf16>
    %c15_i32_16 = arith.constant 15 : i32
    %45 = tpu.dynamic_rotate %3 by %c15_i32_16 dim 1 : vector<16x16x128xf32>, i32 -> vector<16x16x128xf32>
    %cst_17 = arith.constant 0.000000e+00 : f32
    %46 = vector.shape_cast %24 : vector<1x16x1xi1> to vector<1x16x1xi1>
    %47 = vector.broadcast %46 : vector<1x16x1xi1> to vector<16x16x128xi1>
    %48 = vector.broadcast %cst_17 : f32 to vector<16x16x128xf32>
    %49 = arith.select %47, %45, %48 : vector<16x16x128xi1>, vector<16x16x128xf32>
    %50 = arith.truncf %49 : vector<16x16x128xf32> to vector<16x16x128xbf16>
    %c1_i32_18 = arith.constant 1 : i32
    %51 = tpu.dynamic_rotate %19 by %c1_i32_18 dim 1 : vector<16x16x128xf32>, i32 -> vector<16x16x128xf32>
    %cst_19 = arith.constant 0.000000e+00 : f32
    %52 = vector.shape_cast %22 : vector<1x16x1xi1> to vector<1x16x1xi1>
    %53 = vector.broadcast %52 : vector<1x16x1xi1> to vector<16x16x128xi1>
    %54 = vector.broadcast %cst_19 : f32 to vector<16x16x128xf32>
    %55 = arith.select %53, %51, %54 : vector<16x16x128xi1>, vector<16x16x128xf32>
    %56 = arith.truncf %55 : vector<16x16x128xf32> to vector<16x16x128xbf16>
    %57 = arith.truncf %19 : vector<16x16x128xf32> to vector<16x16x128xbf16>
    %c15_i32_20 = arith.constant 15 : i32
    %58 = tpu.dynamic_rotate %19 by %c15_i32_20 dim 1 : vector<16x16x128xf32>, i32 -> vector<16x16x128xf32>
    %cst_21 = arith.constant 0.000000e+00 : f32
    %59 = vector.shape_cast %24 : vector<1x16x1xi1> to vector<1x16x1xi1>
    %60 = vector.broadcast %59 : vector<1x16x1xi1> to vector<16x16x128xi1>
    %61 = vector.broadcast %cst_21 : f32 to vector<16x16x128xf32>
    %62 = arith.select %60, %58, %61 : vector<16x16x128xi1>, vector<16x16x128xf32>
    %63 = arith.truncf %62 : vector<16x16x128xf32> to vector<16x16x128xbf16>
    %64 = tpu.concatenate %30, %31, %37, %43, %44, %50, %56, %57, %63 in 2 : vector<16x16x128xbf16>, vector<16x16x128xbf16>, vector<16x16x128xbf16>, vector<16x16x128xbf16>, vector<16x16x128xbf16>, vector<16x16x128xbf16>, vector<16x16x128xbf16>, vector<16x16x128xbf16>, vector<16x16x128xbf16> -> vector<16x16x1152xbf16>
    %65 = vector.shape_cast %64 : vector<16x16x1152xbf16> to vector<256x1152xbf16>
    %c0_22 = arith.constant 0 : index
    %c0_23 = arith.constant 0 : index
    %66 = vector.load %arg5[%c0_22, %c0_23] : memref<1152x128xbf16, #tpu.memory_space<vmem>>, vector<1152x128xbf16>
    %cst_24 = arith.constant dense<0.000000e+00> : vector<256x128xf32>
    %67 = tpu.matmul %65, %66, %cst_24 {dimension_numbers = #tpu.dot_dimension_numbers<[1], [0], [0], [1], [0, 0, 1, 1], [], []>} : vector<256x1152xbf16>, vector<1152x128xbf16>, vector<256x128xf32> -> vector<256x128xf32>
    %c0_25 = arith.constant 0 : index
    %c0_26 = arith.constant 0 : index
    %68 = vector.load %arg6[%c0_25, %c0_26] : memref<1x128xf32, #tpu.memory_space<vmem>>, vector<1x128xf32>
    %69 = vector.broadcast %68 : vector<1x128xf32> to vector<256x128xf32>
    %70 = arith.addf %67, %69 : vector<256x128xf32>
    %cst_27 = arith.constant 0.000000e+00 : f32
    %71 = vector.broadcast %cst_27 : f32 to vector<256x128xf32>
    %72 = arith.maximumf %70, %71 : vector<256x128xf32>
    %73 = vector.shape_cast %72 : vector<256x128xf32> to vector<16x16x128xf32>
    %c0_28 = arith.constant 0 : index
    %c0_29 = arith.constant 0 : index
    %c0_30 = arith.constant 0 : index
    %c0_31 = arith.constant 0 : index
    %74 = vector.load %arg7[%c0_28, %c0_29, %c0_30, %c0_31] : memref<1x16x16x128xf32, #tpu.memory_space<vmem>>, vector<1x16x16x128xf32>
    %75 = vector.shape_cast %74 : vector<1x16x16x128xf32> to vector<16x16x128xf32>
    %76 = vector.shape_cast %73 : vector<16x16x128xf32> to vector<1x16x16x128xf32>
    tpu.vector_store %arg7[%c0_28, %c0_29, %c0_30, %c0_31], %76 {strides = array<i32>} : memref<1x16x16x128xf32, #tpu.memory_space<vmem>>, vector<1x16x16x128xf32>,
    %cst_32 = arith.constant dense<0.000000e+00> : vector<128xf32>
    %77 = vector.multi_reduction <add>, %72, %cst_32 [0] : vector<256x128xf32> to vector<128xf32>
    %78 = vector.shape_cast %77 : vector<128xf32> to vector<1x128xf32>
    %79 = arith.mulf %72, %72 : vector<256x128xf32>
    %cst_33 = arith.constant dense<0.000000e+00> : vector<128xf32>
    %80 = vector.multi_reduction <add>, %79, %cst_33 [0] : vector<256x128xf32> to vector<128xf32>
    %81 = vector.shape_cast %80 : vector<128xf32> to vector<1x128xf32>
    %c0_i32_34 = arith.constant 0 : i32
    %82 = arith.cmpi eq, %arg1, %c0_i32_34 : i32
    %83 = arith.extui %82 : i1 to i32
    %c0_i32_35 = arith.constant 0 : i32
    %84 = arith.cmpi ne, %83, %c0_i32_35 : i32
    scf.if %84 {
      %c0_38 = arith.constant 0 : index
      %c0_39 = arith.constant 0 : index
      %c0_40 = arith.constant 0 : index
      %c0_41 = arith.constant 0 : index
      %88 = vector.load %arg8[%c0_38, %c0_39, %c0_40, %c0_41] : memref<1x1x1x128xf32, #tpu.memory_space<vmem>>, vector<1x1x1x128xf32>
      %89 = vector.shape_cast %88 : vector<1x1x1x128xf32> to vector<1x128xf32>
      %90 = vector.shape_cast %78 : vector<1x128xf32> to vector<1x1x1x128xf32>
      tpu.vector_store %arg8[%c0_38, %c0_39, %c0_40, %c0_41], %90 {strides = array<i32>} : memref<1x1x1x128xf32, #tpu.memory_space<vmem>>, vector<1x1x1x128xf32>,
      %c0_42 = arith.constant 0 : index
      %c0_43 = arith.constant 0 : index
      %c0_44 = arith.constant 0 : index
      %c0_45 = arith.constant 0 : index
      %91 = vector.load %arg9[%c0_42, %c0_43, %c0_44, %c0_45] : memref<1x1x1x128xf32, #tpu.memory_space<vmem>>, vector<1x1x1x128xf32>
      %92 = vector.shape_cast %91 : vector<1x1x1x128xf32> to vector<1x128xf32>
      %93 = vector.shape_cast %81 : vector<1x128xf32> to vector<1x1x1x128xf32>
      tpu.vector_store %arg9[%c0_42, %c0_43, %c0_44, %c0_45], %93 {strides = array<i32>} : memref<1x1x1x128xf32, #tpu.memory_space<vmem>>, vector<1x1x1x128xf32>,
    } else {
    }
    %c0_i32_36 = arith.constant 0 : i32
    %85 = arith.cmpi sgt, %arg1, %c0_i32_36 : i32
    %86 = arith.extui %85 : i1 to i32
    %c0_i32_37 = arith.constant 0 : i32
    %87 = arith.cmpi ne, %86, %c0_i32_37 : i32
    scf.if %87 {
      %c0_38 = arith.constant 0 : index
      %c0_39 = arith.constant 0 : index
      %c0_40 = arith.constant 0 : index
      %c0_41 = arith.constant 0 : index
      %88 = vector.load %arg8[%c0_38, %c0_39, %c0_40, %c0_41] : memref<1x1x1x128xf32, #tpu.memory_space<vmem>>, vector<1x1x1x128xf32>
      %89 = vector.shape_cast %88 : vector<1x1x1x128xf32> to vector<1x128xf32>
      %90 = arith.addf %89, %78 : vector<1x128xf32>
      %c0_42 = arith.constant 0 : index
      %c0_43 = arith.constant 0 : index
      %c0_44 = arith.constant 0 : index
      %c0_45 = arith.constant 0 : index
      %91 = vector.load %arg8[%c0_42, %c0_43, %c0_44, %c0_45] : memref<1x1x1x128xf32, #tpu.memory_space<vmem>>, vector<1x1x1x128xf32>
      %92 = vector.shape_cast %91 : vector<1x1x1x128xf32> to vector<1x128xf32>
      %93 = vector.shape_cast %90 : vector<1x128xf32> to vector<1x1x1x128xf32>
      tpu.vector_store %arg8[%c0_42, %c0_43, %c0_44, %c0_45], %93 {strides = array<i32>} : memref<1x1x1x128xf32, #tpu.memory_space<vmem>>, vector<1x1x1x128xf32>,
      %c0_46 = arith.constant 0 : index
      %c0_47 = arith.constant 0 : index
      %c0_48 = arith.constant 0 : index
      %c0_49 = arith.constant 0 : index
      %94 = vector.load %arg9[%c0_46, %c0_47, %c0_48, %c0_49] : memref<1x1x1x128xf32, #tpu.memory_space<vmem>>, vector<1x1x1x128xf32>
      %95 = vector.shape_cast %94 : vector<1x1x1x128xf32> to vector<1x128xf32>
      %96 = arith.addf %95, %81 : vector<1x128xf32>
      %c0_50 = arith.constant 0 : index
      %c0_51 = arith.constant 0 : index
      %c0_52 = arith.constant 0 : index
      %c0_53 = arith.constant 0 : index
      %97 = vector.load %arg9[%c0_50, %c0_51, %c0_52, %c0_53] : memref<1x1x1x128xf32, #tpu.memory_space<vmem>>, vector<1x1x1x128xf32>
      %98 = vector.shape_cast %97 : vector<1x1x1x128xf32> to vector<1x128xf32>
      %99 = vector.shape_cast %96 : vector<1x128xf32> to vector<1x1x1x128xf32>
      tpu.vector_store %arg9[%c0_50, %c0_51, %c0_52, %c0_53], %99 {strides = array<i32>} : memref<1x1x1x128xf32, #tpu.memory_space<vmem>>, vector<1x1x1x128xf32>,
    } else {
    }
    return
  }
  func.func @transform_0(%arg0: i32, %arg1: i32) -> (i32, i32, i32, i32) {
    %c16_i32 = arith.constant 16 : i32
    %0 = arith.muli %arg1, %c16_i32 : i32
    %c1_i32 = arith.constant 1 : i32
    %1 = arith.subi %0, %c1_i32 : i32
    %c0_i32 = arith.constant 0 : i32
    %2 = arith.maxsi %1, %c0_i32 : i32
    %c0_i32_0 = arith.constant 0 : i32
    %c0_i32_1 = arith.constant 0 : i32
    %c0_i32_2 = arith.constant 0 : i32
    return %arg0, %2, %c0_i32_0, %c0_i32_1 : i32, i32, i32, i32
  }
  func.func @transform_1(%arg0: i32, %arg1: i32) -> (i32, i32, i32, i32) {
    %c0_i32 = arith.constant 0 : i32
    %c0_i32_0 = arith.constant 0 : i32
    %c0_i32_1 = arith.constant 0 : i32
    return %arg0, %arg1, %c0_i32, %c0_i32_0 : i32, i32, i32, i32
  }
  func.func @transform_2(%arg0: i32, %arg1: i32) -> (i32, i32, i32, i32) {
    %c16_i32 = arith.constant 16 : i32
    %0 = arith.muli %arg1, %c16_i32 : i32
    %c16_i32_0 = arith.constant 16 : i32
    %1 = arith.addi %0, %c16_i32_0 : i32
    %c15_i32 = arith.constant 15 : i32
    %2 = arith.minsi %1, %c15_i32 : i32
    %c0_i32 = arith.constant 0 : i32
    %c0_i32_1 = arith.constant 0 : i32
    %c0_i32_2 = arith.constant 0 : i32
    return %arg0, %2, %c0_i32, %c0_i32_1 : i32, i32, i32, i32
  }
  func.func @transform_3(%arg0: i32, %arg1: i32) -> (i32, i32) {
    %c0_i32 = arith.constant 0 : i32
    %c0_i32_0 = arith.constant 0 : i32
    %c0_i32_1 = arith.constant 0 : i32
    return %c0_i32, %c0_i32_0 : i32, i32
  }
  func.func @transform_4(%arg0: i32, %arg1: i32) -> (i32, i32) {
    %c0_i32 = arith.constant 0 : i32
    %c0_i32_0 = arith.constant 0 : i32
    %c0_i32_1 = arith.constant 0 : i32
    return %c0_i32, %c0_i32_0 : i32, i32
  }
  func.func @transform_5(%arg0: i32, %arg1: i32) -> (i32, i32, i32, i32) {
    %c0_i32 = arith.constant 0 : i32
    %c0_i32_0 = arith.constant 0 : i32
    %c0_i32_1 = arith.constant 0 : i32
    return %arg0, %arg1, %c0_i32, %c0_i32_0 : i32, i32, i32, i32
  }
  func.func @transform_6(%arg0: i32, %arg1: i32) -> (i32, i32, i32, i32) {
    %c0_i32 = arith.constant 0 : i32
    %c0_i32_0 = arith.constant 0 : i32
    %c0_i32_1 = arith.constant 0 : i32
    %c0_i32_2 = arith.constant 0 : i32
    return %arg0, %c0_i32, %c0_i32_0, %c0_i32_1 : i32, i32, i32, i32
  }
  func.func @transform_7(%arg0: i32, %arg1: i32) -> (i32, i32, i32, i32) {
    %c0_i32 = arith.constant 0 : i32
    %c0_i32_0 = arith.constant 0 : i32
    %c0_i32_1 = arith.constant 0 : i32
    %c0_i32_2 = arith.constant 0 : i32
    return %arg0, %c0_i32, %c0_i32_0, %c0_i32_1 : i32, i32, i32, i32
  }
}

module attributes {stable_mosaic.version = 11 : i64} {
  func.func @_conv3x3_kernel(%arg0: i32, %arg1: i32, %arg2: memref<1x1x16x128xf32, #tpu.memory_space<vmem>>, %arg3: memref<1x16x16x128xf32, #tpu.memory_space<vmem>>, %arg4: memref<1x1x16x128xf32, #tpu.memory_space<vmem>>, %arg5: memref<1x128xf32, #tpu.memory_space<vmem>>, %arg6: memref<1152x128xbf16, #tpu.memory_space<vmem>>, %arg7: memref<1x128xf32, #tpu.memory_space<vmem>>, %arg8: memref<1x16x16x128xf32, #tpu.memory_space<vmem>>, %arg9: memref<1x16x16x128xf32, #tpu.memory_space<vmem>>) attributes {dimension_semantics = [#tpu.dimension_semantics<parallel>, #tpu.dimension_semantics<parallel>], iteration_bounds = array<i64: 2, 1>, scalar_prefetch = 0 : i64, scratch_operands = 0 : i64, tpu.core_type = #tpu.core_type<tc>, window_params = [{transform_indices = @transform_0, window_bounds = array<i64: 1, 1, 16, 128>}, {transform_indices = @transform_1, window_bounds = array<i64: 1, 16, 16, 128>}, {transform_indices = @transform_2, window_bounds = array<i64: 1, 1, 16, 128>}, {pipeline_mode = #tpu.pipeline_mode<synchronous>, transform_indices = @transform_3, window_bounds = array<i64: 1, 128>}, {pipeline_mode = #tpu.pipeline_mode<synchronous>, transform_indices = @transform_4, window_bounds = array<i64: 1152, 128>}, {pipeline_mode = #tpu.pipeline_mode<synchronous>, transform_indices = @transform_5, window_bounds = array<i64: 1, 128>}, {transform_indices = @transform_6, window_bounds = array<i64: 1, 16, 16, 128>}, {transform_indices = @transform_7, window_bounds = array<i64: 1, 16, 16, 128>}]} {
    %c0 = arith.constant 0 : index
    %c0_0 = arith.constant 0 : index
    %c0_1 = arith.constant 0 : index
    %c0_2 = arith.constant 0 : index
    %0 = vector.load %arg2[%c0, %c0_0, %c0_1, %c0_2] : memref<1x1x16x128xf32, #tpu.memory_space<vmem>>, vector<1x1x16x128xf32>
    %1 = vector.shape_cast %0 : vector<1x1x16x128xf32> to vector<1x16x128xf32>
    %c0_3 = arith.constant 0 : index
    %c0_4 = arith.constant 0 : index
    %c0_5 = arith.constant 0 : index
    %c0_6 = arith.constant 0 : index
    %2 = vector.load %arg3[%c0_3, %c0_4, %c0_5, %c0_6] : memref<1x16x16x128xf32, #tpu.memory_space<vmem>>, vector<1x16x16x128xf32>
    %3 = vector.shape_cast %2 : vector<1x16x16x128xf32> to vector<16x16x128xf32>
    %c0_7 = arith.constant 0 : index
    %c0_8 = arith.constant 0 : index
    %c0_9 = arith.constant 0 : index
    %c0_10 = arith.constant 0 : index
    %4 = vector.load %arg4[%c0_7, %c0_8, %c0_9, %c0_10] : memref<1x1x16x128xf32, #tpu.memory_space<vmem>>, vector<1x1x16x128xf32>
    %5 = vector.shape_cast %4 : vector<1x1x16x128xf32> to vector<1x16x128xf32>
    %c0_11 = arith.constant 0 : index
    %c0_12 = arith.constant 0 : index
    %6 = vector.load %arg5[%c0_11, %c0_12] : memref<1x128xf32, #tpu.memory_space<vmem>>, vector<1x128xf32>
    %7 = vector.shape_cast %6 : vector<1x128xf32> to vector<1x1x128xf32>
    %8 = vector.broadcast %7 : vector<1x1x128xf32> to vector<1x16x128xf32>
    %9 = arith.addf %1, %8 : vector<1x16x128xf32>
    %10 = vector.broadcast %7 : vector<1x1x128xf32> to vector<16x16x128xf32>
    %11 = arith.addf %3, %10 : vector<16x16x128xf32>
    %12 = vector.broadcast %7 : vector<1x1x128xf32> to vector<1x16x128xf32>
    %13 = arith.addf %5, %12 : vector<1x16x128xf32>
    %c0_i32 = arith.constant 0 : i32
    %14 = arith.cmpi sgt, %arg1, %c0_i32 : i32
    %15 = arith.extui %14 : i1 to i32
    %16 = arith.sitofp %15 : i32 to f32
    %17 = vector.broadcast %16 : f32 to vector<1x16x128xf32>
    %18 = arith.mulf %9, %17 : vector<1x16x128xf32>
    %c0_i32_13 = arith.constant 0 : i32
    %19 = arith.cmpi slt, %arg1, %c0_i32_13 : i32
    %20 = arith.extui %19 : i1 to i32
    %21 = arith.sitofp %20 : i32 to f32
    %22 = vector.broadcast %21 : f32 to vector<1x16x128xf32>
    %23 = arith.mulf %13, %22 : vector<1x16x128xf32>
    %24 = vector.extract_strided_slice %11 {offsets = [0, 0, 0], sizes = [15, 16, 128], strides = [1, 1, 1]} : vector<16x16x128xf32> to vector<15x16x128xf32>
    %25 = tpu.concatenate %18, %24 in 0 : vector<1x16x128xf32>, vector<15x16x128xf32> -> vector<16x16x128xf32>
    %26 = vector.extract_strided_slice %11 {offsets = [1, 0, 0], sizes = [15, 16, 128], strides = [1, 1, 1]} : vector<16x16x128xf32> to vector<15x16x128xf32>
    %27 = tpu.concatenate %26, %23 in 0 : vector<15x16x128xf32>, vector<1x16x128xf32> -> vector<16x16x128xf32>
    %28 = tpu.iota {dimensions = array<i32: 1>} : vector<1x16x1xi32>
    %c1_i32 = arith.constant 1 : i32
    %29 = vector.broadcast %c1_i32 : i32 to vector<1x16x1xi32>
    %30 = arith.cmpi sge, %28, %29 : vector<1x16x1xi32>
    %c14_i32 = arith.constant 14 : i32
    %31 = vector.broadcast %c14_i32 : i32 to vector<1x16x1xi32>
    %32 = arith.cmpi sle, %28, %31 : vector<1x16x1xi32>
    %c1_i32_14 = arith.constant 1 : i32
    %33 = tpu.dynamic_rotate %25 by %c1_i32_14 dim 1 : vector<16x16x128xf32>, i32 -> vector<16x16x128xf32>
    %cst = arith.constant 0.000000e+00 : f32
    %34 = vector.shape_cast %30 : vector<1x16x1xi1> to vector<1x16x1xi1>
    %35 = vector.broadcast %34 : vector<1x16x1xi1> to vector<16x16x128xi1>
    %36 = vector.broadcast %cst : f32 to vector<16x16x128xf32>
    %37 = arith.select %35, %33, %36 : vector<16x16x128xi1>, vector<16x16x128xf32>
    %38 = arith.truncf %37 : vector<16x16x128xf32> to vector<16x16x128xbf16>
    %39 = arith.truncf %25 : vector<16x16x128xf32> to vector<16x16x128xbf16>
    %c15_i32 = arith.constant 15 : i32
    %40 = tpu.dynamic_rotate %25 by %c15_i32 dim 1 : vector<16x16x128xf32>, i32 -> vector<16x16x128xf32>
    %cst_15 = arith.constant 0.000000e+00 : f32
    %41 = vector.shape_cast %32 : vector<1x16x1xi1> to vector<1x16x1xi1>
    %42 = vector.broadcast %41 : vector<1x16x1xi1> to vector<16x16x128xi1>
    %43 = vector.broadcast %cst_15 : f32 to vector<16x16x128xf32>
    %44 = arith.select %42, %40, %43 : vector<16x16x128xi1>, vector<16x16x128xf32>
    %45 = arith.truncf %44 : vector<16x16x128xf32> to vector<16x16x128xbf16>
    %c1_i32_16 = arith.constant 1 : i32
    %46 = tpu.dynamic_rotate %11 by %c1_i32_16 dim 1 : vector<16x16x128xf32>, i32 -> vector<16x16x128xf32>
    %cst_17 = arith.constant 0.000000e+00 : f32
    %47 = vector.shape_cast %30 : vector<1x16x1xi1> to vector<1x16x1xi1>
    %48 = vector.broadcast %47 : vector<1x16x1xi1> to vector<16x16x128xi1>
    %49 = vector.broadcast %cst_17 : f32 to vector<16x16x128xf32>
    %50 = arith.select %48, %46, %49 : vector<16x16x128xi1>, vector<16x16x128xf32>
    %51 = arith.truncf %50 : vector<16x16x128xf32> to vector<16x16x128xbf16>
    %52 = arith.truncf %11 : vector<16x16x128xf32> to vector<16x16x128xbf16>
    %c15_i32_18 = arith.constant 15 : i32
    %53 = tpu.dynamic_rotate %11 by %c15_i32_18 dim 1 : vector<16x16x128xf32>, i32 -> vector<16x16x128xf32>
    %cst_19 = arith.constant 0.000000e+00 : f32
    %54 = vector.shape_cast %32 : vector<1x16x1xi1> to vector<1x16x1xi1>
    %55 = vector.broadcast %54 : vector<1x16x1xi1> to vector<16x16x128xi1>
    %56 = vector.broadcast %cst_19 : f32 to vector<16x16x128xf32>
    %57 = arith.select %55, %53, %56 : vector<16x16x128xi1>, vector<16x16x128xf32>
    %58 = arith.truncf %57 : vector<16x16x128xf32> to vector<16x16x128xbf16>
    %c1_i32_20 = arith.constant 1 : i32
    %59 = tpu.dynamic_rotate %27 by %c1_i32_20 dim 1 : vector<16x16x128xf32>, i32 -> vector<16x16x128xf32>
    %cst_21 = arith.constant 0.000000e+00 : f32
    %60 = vector.shape_cast %30 : vector<1x16x1xi1> to vector<1x16x1xi1>
    %61 = vector.broadcast %60 : vector<1x16x1xi1> to vector<16x16x128xi1>
    %62 = vector.broadcast %cst_21 : f32 to vector<16x16x128xf32>
    %63 = arith.select %61, %59, %62 : vector<16x16x128xi1>, vector<16x16x128xf32>
    %64 = arith.truncf %63 : vector<16x16x128xf32> to vector<16x16x128xbf16>
    %65 = arith.truncf %27 : vector<16x16x128xf32> to vector<16x16x128xbf16>
    %c15_i32_22 = arith.constant 15 : i32
    %66 = tpu.dynamic_rotate %27 by %c15_i32_22 dim 1 : vector<16x16x128xf32>, i32 -> vector<16x16x128xf32>
    %cst_23 = arith.constant 0.000000e+00 : f32
    %67 = vector.shape_cast %32 : vector<1x16x1xi1> to vector<1x16x1xi1>
    %68 = vector.broadcast %67 : vector<1x16x1xi1> to vector<16x16x128xi1>
    %69 = vector.broadcast %cst_23 : f32 to vector<16x16x128xf32>
    %70 = arith.select %68, %66, %69 : vector<16x16x128xi1>, vector<16x16x128xf32>
    %71 = arith.truncf %70 : vector<16x16x128xf32> to vector<16x16x128xbf16>
    %72 = tpu.concatenate %38, %39, %45, %51, %52, %58, %64, %65, %71 in 2 : vector<16x16x128xbf16>, vector<16x16x128xbf16>, vector<16x16x128xbf16>, vector<16x16x128xbf16>, vector<16x16x128xbf16>, vector<16x16x128xbf16>, vector<16x16x128xbf16>, vector<16x16x128xbf16>, vector<16x16x128xbf16> -> vector<16x16x1152xbf16>
    %73 = vector.shape_cast %72 : vector<16x16x1152xbf16> to vector<256x1152xbf16>
    %c0_24 = arith.constant 0 : index
    %c0_25 = arith.constant 0 : index
    %74 = vector.load %arg6[%c0_24, %c0_25] : memref<1152x128xbf16, #tpu.memory_space<vmem>>, vector<1152x128xbf16>
    %cst_26 = arith.constant dense<0.000000e+00> : vector<256x128xf32>
    %75 = tpu.matmul %73, %74, %cst_26 {dimension_numbers = #tpu.dot_dimension_numbers<[1], [0], [0], [1], [0, 0, 1, 1], [], []>} : vector<256x1152xbf16>, vector<1152x128xbf16>, vector<256x128xf32> -> vector<256x128xf32>
    %c0_27 = arith.constant 0 : index
    %c0_28 = arith.constant 0 : index
    %76 = vector.load %arg7[%c0_27, %c0_28] : memref<1x128xf32, #tpu.memory_space<vmem>>, vector<1x128xf32>
    %77 = vector.broadcast %76 : vector<1x128xf32> to vector<256x128xf32>
    %78 = arith.addf %75, %77 : vector<256x128xf32>
    %c0_29 = arith.constant 0 : index
    %c0_30 = arith.constant 0 : index
    %c0_31 = arith.constant 0 : index
    %c0_32 = arith.constant 0 : index
    %79 = vector.load %arg8[%c0_29, %c0_30, %c0_31, %c0_32] : memref<1x16x16x128xf32, #tpu.memory_space<vmem>>, vector<1x16x16x128xf32>
    %80 = vector.shape_cast %79 : vector<1x16x16x128xf32> to vector<16x16x128xf32>
    %81 = vector.shape_cast %80 : vector<16x16x128xf32> to vector<256x128xf32>
    %82 = arith.addf %78, %81 : vector<256x128xf32>
    %cst_33 = arith.constant 0.000000e+00 : f32
    %83 = vector.broadcast %cst_33 : f32 to vector<256x128xf32>
    %84 = arith.maximumf %82, %83 : vector<256x128xf32>
    %85 = vector.shape_cast %84 : vector<256x128xf32> to vector<16x16x128xf32>
    %c0_34 = arith.constant 0 : index
    %c0_35 = arith.constant 0 : index
    %c0_36 = arith.constant 0 : index
    %c0_37 = arith.constant 0 : index
    %86 = vector.load %arg9[%c0_34, %c0_35, %c0_36, %c0_37] : memref<1x16x16x128xf32, #tpu.memory_space<vmem>>, vector<1x16x16x128xf32>
    %87 = vector.shape_cast %86 : vector<1x16x16x128xf32> to vector<16x16x128xf32>
    %88 = vector.shape_cast %85 : vector<16x16x128xf32> to vector<1x16x16x128xf32>
    tpu.vector_store %arg9[%c0_34, %c0_35, %c0_36, %c0_37], %88 {strides = array<i32>} : memref<1x16x16x128xf32, #tpu.memory_space<vmem>>, vector<1x16x16x128xf32>,
    return
  }
  func.func @transform_0(%arg0: i32, %arg1: i32) -> (i32, i32, i32, i32) {
    %c16_i32 = arith.constant 16 : i32
    %0 = arith.muli %arg1, %c16_i32 : i32
    %c1_i32 = arith.constant 1 : i32
    %1 = arith.subi %0, %c1_i32 : i32
    %c0_i32 = arith.constant 0 : i32
    %2 = arith.maxsi %1, %c0_i32 : i32
    %c0_i32_0 = arith.constant 0 : i32
    %c0_i32_1 = arith.constant 0 : i32
    %c0_i32_2 = arith.constant 0 : i32
    return %arg0, %2, %c0_i32_0, %c0_i32_1 : i32, i32, i32, i32
  }
  func.func @transform_1(%arg0: i32, %arg1: i32) -> (i32, i32, i32, i32) {
    %c0_i32 = arith.constant 0 : i32
    %c0_i32_0 = arith.constant 0 : i32
    %c0_i32_1 = arith.constant 0 : i32
    return %arg0, %arg1, %c0_i32, %c0_i32_0 : i32, i32, i32, i32
  }
  func.func @transform_2(%arg0: i32, %arg1: i32) -> (i32, i32, i32, i32) {
    %c16_i32 = arith.constant 16 : i32
    %0 = arith.muli %arg1, %c16_i32 : i32
    %c16_i32_0 = arith.constant 16 : i32
    %1 = arith.addi %0, %c16_i32_0 : i32
    %c15_i32 = arith.constant 15 : i32
    %2 = arith.minsi %1, %c15_i32 : i32
    %c0_i32 = arith.constant 0 : i32
    %c0_i32_1 = arith.constant 0 : i32
    %c0_i32_2 = arith.constant 0 : i32
    return %arg0, %2, %c0_i32, %c0_i32_1 : i32, i32, i32, i32
  }
  func.func @transform_3(%arg0: i32, %arg1: i32) -> (i32, i32) {
    %c0_i32 = arith.constant 0 : i32
    %c0_i32_0 = arith.constant 0 : i32
    %c0_i32_1 = arith.constant 0 : i32
    return %c0_i32, %c0_i32_0 : i32, i32
  }
  func.func @transform_4(%arg0: i32, %arg1: i32) -> (i32, i32) {
    %c0_i32 = arith.constant 0 : i32
    %c0_i32_0 = arith.constant 0 : i32
    %c0_i32_1 = arith.constant 0 : i32
    return %c0_i32, %c0_i32_0 : i32, i32
  }
  func.func @transform_5(%arg0: i32, %arg1: i32) -> (i32, i32) {
    %c0_i32 = arith.constant 0 : i32
    %c0_i32_0 = arith.constant 0 : i32
    %c0_i32_1 = arith.constant 0 : i32
    return %c0_i32, %c0_i32_0 : i32, i32
  }
  func.func @transform_6(%arg0: i32, %arg1: i32) -> (i32, i32, i32, i32) {
    %c0_i32 = arith.constant 0 : i32
    %c0_i32_0 = arith.constant 0 : i32
    %c0_i32_1 = arith.constant 0 : i32
    return %arg0, %arg1, %c0_i32, %c0_i32_0 : i32, i32, i32, i32
  }
  func.func @transform_7(%arg0: i32, %arg1: i32) -> (i32, i32, i32, i32) {
    %c0_i32 = arith.constant 0 : i32
    %c0_i32_0 = arith.constant 0 : i32
    %c0_i32_1 = arith.constant 0 : i32
    return %arg0, %arg1, %c0_i32, %c0_i32_0 : i32, i32, i32, i32
  }
}

</mosaic_0001>

<bundles_post_ra>
// kernel: residual_block_forward.3
= control target key start
LH: loop header
LB: loop body
LE: loop exit
PB: predicated region body
PF: predicated region fallthrough
CT: control target
= control target key end

     0   :  { %s3625_s24 = smov 0   ;;  %s3627_s25 = smov 0   ;;  %s5253_s0 = inlined_call_operand.vmem [shape: f32[2,16,16,128], index: 0, kind: input, shape index: {}, may-alias: {0,1,2}]   ;;  %s5254_s1 = inlined_call_operand.vmem [shape: f32[2,16,16,128], index: 1, kind: input, shape index: {}, may-alias: {0,1,2}]   ;;  %s5255_s2 = inlined_call_operand.vmem [shape: f32[2,16,16,128], index: 2, kind: input, shape index: {}, may-alias: {0,1,2}]   ;;  %s5256_s3 = inlined_call_operand.vmem [shape: f32[1,128], index: 3, kind: input, shape index: {}]   ;;  %s5257_s4 = inlined_call_operand.vmem [shape: bf16[1152,128], index: 4, kind: input, shape index: {}]   ;;  %s5258_s5 = inlined_call_operand.vmem [shape: f32[1,128], index: 5, kind: input, shape index: {}]   ;;  %s5259_s6 = inlined_call_operand.vmem [shape: f32[2,16,16,128], index: 6, kind: input, shape index: {}]   ;;  %s5260_s7 = inlined_call_operand.vmem [shape: f32[2,16,16,128], index: 7, kind: output, shape index: {}]  }
   0x1   :  { %s3629_s26 = smov 0  }
   0x2 LB: > { %s29_s27 = sadd.s32 1, %s3578_s25  ;;  %p2544_p0 = scmp.ge.s32.totalorder %s3582_s26, 1  ;;  %s3582_s26 = sphi %s3629_s26, %s17_s26   ;;  %s3578_s25 = sphi %s3627_s25, %s5298_s25   ;;  %s3574_s24 = sphi %s3625_s24, %s5297_s24  }
   0x3   : > { %p31_p1 = scmp.ge.s32.totalorder %s29_s27, 2  ;;  %p341_p2 = scmp.lt.s32.totalorder %s3582_s26, 3 }
   0x5   : > { %s5300_s27 = smov (%p31_p1, %s29_s27), 0  ;;  %p342_p3 = pnand %p2544_p0, %p341_p2 }
   0x7   : > { %345 = sbr.rel (%p342_p3) target bundleno = 535 (0x217), region = 48 }
   0xc   : > { %v3487_v0 = vld [vmem:[%s5257_s4 + $0x78] sm:$0xff]   ;;  %v3489_v2 = vld [vmem:[%s5257_s4 + $0x70] sm:$0xff]   ;;  %p423_p4 = scmp.lt.s32.totalorder %s3574_s24, 1  ;;  %v3491_v4 = vld [vmem:[%s5257_s4 + $0x68] sm:$0xff]   ;;  %v578_v10 = vlaneseq  ;;  %vm3584_vm2 = vmmov 1  }
   0xd   : > { %v3488_v1 = vld [vmem:[%s5257_s4 + $0x38] sm:$0xff]   ;;  %2926 = vmatprep.subr.bf16.mxu0 %v3487_v0  ;;  %3446 = vmatprep.subr.bf16.mxu1 %v3487_v0  ;;  %v3490_v3 = vld [vmem:[%s5257_s4 + $0x30] sm:$0xff]   ;;  %v3492_v5 = vld [vmem:[%s5257_s4 + $0x28] sm:$0xff]  }
   0xe   : > { %2927 = vmatpush3.bf16.msra.mxu0 %v3488_v1  ;;  %3454 = vmatpush3.bf16.msra.mxu1 %v3488_v1  ;;  %s5302_s24 = smov (!%p423_p4, %s3574_s24), 1  ;;  %v3493_v6 = vld [vmem:[%s5257_s4 + $0x60] sm:$0xff]   ;;  %v3495_v8 = vld [vmem:[%s5257_s4 + $0x58] sm:$0xff]   ;;  %v3497_v11 = vld [vmem:[%s5257_s4 + $0x50] sm:$0xff]   ;;  %v3697_v19 = vshrl.u32 %v578_v10, 7 }
   0xf   : > { %2928 = vmatprep.subr.bf16.mxu0 %v3489_v2  ;;  %3447 = vmatprep.subr.bf16.mxu1 %v3489_v2  ;;  %s3664_s19 = sshll.u32 %s5302_s24, 8  ;;  %v3494_v7 = vld [vmem:[%s5257_s4 + $0x20] sm:$0xff]   ;;  %v3496_v9 = vld [vmem:[%s5257_s4 + $0x18] sm:$0xff]   ;;  %v3498_v22 = vld [vmem:[%s5257_s4 + $0x10] sm:$0xff]  }
  0x10   : > { %s431_s30 = scalar_lea.vmem %s5253_s0, %s3664_s19  ;;  %s3683_s11 = scalar_lea.vmem %s5254_s1, %s3664_s19  ;;  %v3691_v14 = vld [vmem:[%s5256_s3] ss:$0 sm:$0xff]  ;;  %v3499_v25 = vld [vmem:[%s5257_s4 + $0x48] sm:$0xff]   ;;  %vm617_vm0 = vcmp.lt.s32.totalorder %v3697_v19, 1  ;;  %vm581_vm1 = vcmp.ge.s32.totalorder %v3697_v19, 1  ;;  %v3503_v47 = vld [vmem:[%s5257_s4 + $0xf8] sm:$0xff]  }
  0x11   : > { %v487_v12 = vld [vmem:[%s431_s30] sm:$0xff]  ;;  %v488_v13 = vld [vmem:[%s431_s30 + $0x8] sm:$0xff]  ;;  %v511_v17 = vld [vmem:[%s3683_s11 + $0xb0] sm:$0xff]  ;;  %vm750_vm4 = vcmp.lt.s32.totalorder %v3697_v19, 7  ;;  %s2922_s13 = sadd.s32 240, %s3664_s19  ;;  %s5071_s21 = scalar_lea.vmem %s5259_s6, %s3664_s19 }
  0x12   : > { %2929 = vmatpush3.bf16.msra.mxu0 %v3490_v3  ;;  %3455 = vmatpush3.bf16.msra.mxu1 %v3490_v3  ;;  %v530_v15 = vadd.f32 %v3691_v14, %v487_v12  ;;  %v531_v16 = vadd.f32 %v3691_v14, %v488_v13  ;;  %v512_v18 = vld [vmem:[%s3683_s11 + $0xb8] sm:$0xff]  ;;  %v3700_v20 = vadd.f32 %v3691_v14, %v511_v17  ;;  %v3500_v30 = vld [vmem:[%s5257_s4 + $0x8] sm:$0xff]   ;;  %v3501_v33 = vld [vmem:[%s5257_s4 + $0x40] sm:$0xff]   ;;  %s5097_s28 = scalar_lea.vmem %s5260_s7, %s3664_s19 }
  0x13   : > { %2930 = vmatprep.subr.bf16.mxu0 %v3491_v4  ;;  %3448 = vmatprep.subr.bf16.mxu1 %v3491_v4  ;;  %v3703_v21 = vadd.f32 %v3691_v14, %v512_v18  ;;  %v489_v35 = vld [vmem:[%s3683_s11] sm:$0xff]  ;;  %v490_v36 = vld [vmem:[%s3683_s11 + $0x8] sm:$0xff]  ;;  %v3506_v48 = vld [vmem:[%s5257_s4 + $0x178] sm:$0xff]  }
  0x14   : > { %v3708_v23 = vmul.f32 0.0, %v530_v15  ;;  %v3710_v24 = vmul.f32 0.0, %v531_v16  ;;  %v597_v28 = vrot.slane %v3700_v20, 7  ;;  %v513_v37 = vld [vmem:[%s3683_s11 + $0xc0] sm:$0xff]  ;;  %v3742_v39 = vadd.f32 %v3691_v14, %v489_v35  ;;  %v514_v41 = vld [vmem:[%s3683_s11 + $0xc8] sm:$0xff]  ;;  %vm3770_vm3 = vmpackc.low %vm3584_vm2, %vm581_vm1 }
  0x15   : > { %v3717_v26 = vpack.c.bf16 %v3703_v21, %v3700_v20  ;;  %v613_v29 = vrot.slane %v3703_v21, 7  ;;  %v3745_v40 = vadd.f32 %v3691_v14, %v490_v36  ;;  %v3749_v42 = vadd.f32 %v3691_v14, %v513_v37  ;;  %v3502_v43 = vld [vmem:[%s5257_s4] sm:$0xff]   ;;  %v3504_v50 = vld [vmem:[%s5257_s4 + $0xb8] sm:$0xff]   ;;  %v3505_v55 = vld [vmem:[%s5257_s4 + $0xf0] sm:$0xff]  }
  0x16   : > { %2931 = vmatpush3.bf16.msra.mxu0 %v3492_v5  ;;  %3456 = vmatpush3.bf16.msra.mxu1 %v3492_v5  ;;  %v702_v27 = vpack.c.bf16 %v3710_v24, %v3708_v23  ;;  %v585_v31 = vrot.slane %v3708_v23, 7  ;;  %v601_v32 = vrot.slane %v3710_v24, 7  ;;  %v3759_v46 = vadd.f32 %v3691_v14, %v514_v41  ;;  %v491_v58 = vld [vmem:[%s3683_s11 + $0x10] sm:$0xff]  ;;  %v3508_v59 = vld [vmem:[%s5257_s4 + $0x138] sm:$0xff]   ;;  %v3509_v12 = vld [vmem:[%s5257_s4 + $0xe8] sm:$0xff]  }
  0x17   : > { %2932 = vmatprep.subr.bf16.mxu0 %v3493_v6  ;;  %3449 = vmatprep.subr.bf16.mxu1 %v3493_v6  ;;  %v630_v34 = vsel %vm617_vm0, %v597_v28, %v613_v29  ;;  %v646_v38 = vsel %vm617_vm0, %v613_v29, %v597_v28  ;;  %v586_v51 = vrot.slane %v3742_v39, 7  ;;  %v602_v52 = vrot.slane %v3745_v40, 7  ;;  %v492_v60 = vld [vmem:[%s3683_s11 + $0x18] sm:$0xff]  ;;  %v515_v61 = vld [vmem:[%s3683_s11 + $0xd0] sm:$0xff]  ;;  %v493_v28 = vld [vmem:[%s3683_s11 + $0x20] sm:$0xff] }
  0x18   : > { %1576 = vmatprep.mubr.bf16.mxu1 %v3717_v26  ;;  %1480 = vmatprep.mubr.bf16.mxu0 %v702_v27  ;;  %v618_v44 = vsel %vm617_vm0, %v585_v31, %v601_v32  ;;  %v634_v45 = vsel %vm617_vm0, %v601_v32, %v585_v31  ;;  %v3779_v54 = vpack.c.bf16 %v630_v34, %v646_v38  ;;  %v598_v56 = vrot.slane %v3749_v42, 7  ;;  %v516_v1 = vld [vmem:[%s3683_s11 + $0xd8] sm:$0xff]  ;;  %v3514_v6 = vld [vmem:[%s5257_s4 + $0x170] sm:$0xff]   ;;  %v494_v29 = vld [vmem:[%s3683_s11 + $0x28] sm:$0xff] }
  0x19   : > { %v2630_v53 = vpack.c.bf16 %v618_v44, %v634_v45  ;;  %v614_v57 = vrot.slane %v3759_v46, 7  ;;  %v730_v62 = vrot.slane %v3700_v20, 1  ;;  %v746_v63 = vrot.slane %v3703_v21, 1  ;;  %v3516_v15 = vld [vmem:[%s5257_s4 + $0x130] sm:$0xff]   ;;  %v517_v34 = vld [vmem:[%s3683_s11 + $0xe0] sm:$0xff]  ;;  %v518_v35 = vld [vmem:[%s3683_s11 + $0xe8] sm:$0xff] }
  0x1a   : > { %2933 = vmatpush3.bf16.msra.mxu0 %v3494_v7  ;;  %3457 = vmatpush3.bf16.msra.mxu1 %v3494_v7  ;;  %v3796_v0 = vpack.c.bf16 %v3745_v40, %v3742_v39  ;;  %v3801_v2 = vpack.c.bf16 %v3759_v46, %v3749_v42  ;;  %v619_v3 = vsel %vm617_vm0, %v586_v51, %v602_v52  ;;  %v3507_v7 = vld [vmem:[%s5257_s4 + $0xb0] sm:$0xff]   ;;  %v731_v31 = vrot.slane %v3749_v42, 1  ;;  %v3511_v37 = vld [vmem:[%s5257_s4 + $0xe0] sm:$0xff]  }
  0x1b   : > { %2934 = vmatprep.subr.bf16.mxu0 %v3495_v8  ;;  %3450 = vmatprep.subr.bf16.mxu1 %v3495_v8  ;;  %v3806_v4 = vadd.f32 %v3691_v14, %v491_v58  ;;  %v3809_v5 = vadd.f32 %v3691_v14, %v492_v60  ;;  %v635_v8 = vsel %vm617_vm0, %v602_v52, %v586_v51  ;;  %v747_v36 = vrot.slane %v3759_v46, 1  ;;  %v3513_v46 = vld [vmem:[%s5257_s4 + $0xd8] sm:$0xff]  }
  0x1c   : > { %v3828_v10 = vadd.f32 %v3691_v14, %v515_v61  ;;  %v3836_v13 = vadd.f32 %v3691_v14, %v516_v1  ;;  %v763_v16 = vsel %vm750_vm4, %v730_v62, %v746_v63  ;;  %v779_v17 = vsel %vm750_vm4, %v746_v63, %v730_v62  ;;  %v3515_v63 = vld [vmem:[%s5257_s4 + $0x98] sm:$0xff]  }
  0x1d   : > { %v3847_v18 = vpack.c.bf16 %v619_v3, %v635_v8  ;;  %v587_v20 = vrot.slane %v3806_v4, 7  ;;  %v603_v21 = vrot.slane %v3809_v5, 7  ;;  %v3864_v32 = vpack.c.bf16 %v3809_v5, %v3806_v4 }
  0x1e   : > { %2935 = vmatpush3.bf16.msra.mxu0 %v3496_v9  ;;  %3458 = vmatpush3.bf16.msra.mxu1 %v3496_v9  ;;  %v631_v9 = vsel %vm617_vm0, %v598_v56, %v614_v57  ;;  %v599_v27 = vrot.slane %v3828_v10, 7  ;;  %v3875_v38 = vpack.c.bf16 %v3836_v13, %v3828_v10  ;;  %v3878_v41 = vadd.f32 %v3691_v14, %v493_v28 }
  0x1f   : > { %2936 = vmatprep.subr.bf16.mxu0 %v3497_v11  ;;  %3451 = vmatprep.subr.bf16.mxu1 %v3497_v11  ;;  %v647_v11 = vsel %vm617_vm0, %v614_v57, %v598_v56  ;;  %v3881_v42 = vadd.f32 %v3691_v14, %v494_v29  ;;  %v620_v44 = vsel %vm617_vm0, %v587_v20, %v603_v21  ;;  %v732_v61 = vrot.slane %v3828_v10, 1  ;;  %v495_v10 = vld [vmem:[%s3683_s11 + $0x30] sm:$0xff] }
  0x20   : > { %v636_v45 = vsel %vm617_vm0, %v603_v21, %v587_v20  ;;  %v588_v56 = vrot.slane %v3878_v41, 7  ;;  %v3977_v28 = vadd.f32 %v3691_v14, %v495_v10  ;;  %v3526_v10 = vld [vmem:[%s5257_s4 + $0x1b8] sm:$0xff]  }
  0x21   : > { %v604_v57 = vrot.slane %v3881_v42, 7  ;;  %v3920_v58 = vpack.c.bf16 %v620_v44, %v636_v45  ;;  %v3941_v8 = vpack.c.bf16 %v3881_v42, %v3878_v41 }
  0x22   : > { %2937 = vmatpush3.bf16.msra.mxu0 %v3498_v22  ;;  %3459 = vmatpush3.bf16.msra.mxu1 %v3498_v22  ;;  %v3851_v22 = vpack.c.bf16 %v631_v9, %v647_v11  ;;  %v496_v11 = vld [vmem:[%s3683_s11 + $0x38] sm:$0xff] }
  0x23   : > { %2938 = vmatprep.subr.bf16.mxu0 %v3499_v25  ;;  %3452 = vmatprep.subr.bf16.mxu1 %v3499_v25  ;;  %v3510_v25 = vld [vmem:[%s5257_s4 + $0xa8] sm:$0xff]   ;;  %v3980_v29 = vadd.f32 %v3691_v14, %v496_v11  ;;  %v719_v11 = vrot.slane %v3742_v39, 1 }
  0x26   : > { %2939 = vmatpush3.bf16.msra.mxu0 %v3500_v30  ;;  %3460 = vmatpush3.bf16.msra.mxu1 %v3500_v30  ;;  %v3859_v30 = vpack.c.bf16 %v779_v17, %v763_v16  ;;  %v3527_v16 = vld [vmem:[%s5257_s4 + $0x160] sm:$0xff]   ;;  %v637_v17 = vsel %vm617_vm0, %v604_v57, %v588_v56 }
  0x27   : > { %2940 = vmatprep.subr.bf16.mxu0 %v3501_v33  ;;  %3453 = vmatprep.subr.bf16.mxu1 %v3501_v33  ;;  %v615_v33 = vrot.slane %v3836_v13, 7 }
  0x29   : > { %v632_v51 = vsel %vm617_vm0, %v599_v27, %v615_v33  ;;  %v648_v52 = vsel %vm617_vm0, %v615_v33, %v599_v27  ;;  %v580_v33 = vadd.s32 8, %v3697_v19 }
  0x2a   : > { %2941 = vmatpush3.bf16.msra.mxu0 %v3502_v43  ;;  %3461 = vmatpush3.bf16.msra.mxu1 %v3502_v43  ;;  %v3512_v43 = vld [vmem:[%s5257_s4 + $0xa0] sm:$0xff]   ;;  %v3928_v62 = vpack.c.bf16 %v632_v51, %v648_v52  ;;  %v605_v51 = vrot.slane %v3980_v29, 7  ;;  %v498_v52 = vld [vmem:[%s3683_s11 + $0x48] sm:$0xff] }
  0x2b   : > { %3038 = vmatprep.subr.bf16.mxu1 %v3503_v47  ;;  %3150 = vmatprep.subr.bf16.mxu0 %v3506_v48  ;;  %v3900_v47 = vadd.f32 %v3691_v14, %v517_v34  ;;  %v3903_v48 = vadd.f32 %v3691_v14, %v518_v35  ;;  %v3519_v34 = vld [vmem:[%s5257_s4 + $0xc8] sm:$0xff]   ;;  %v718_v35 = vrot.slane %v3708_v23, 1  ;;  %v4005_v23 = vpack.c.bf16 %v3980_v29, %v3977_v28 }
  0x2c   : > { %vm584_vm5 = vcmp.le.s32.totalorder %v580_v33, 14 }
  0x2d   : > { %2631 = vmatmul.mubr.msk.bf16.vlgmr.msra.gmra.mxu0 %vm3770_vm3, %v2630_v53  ;;  %2667 = vmatmul.mubr.msk.bf16.vlgmr.msra.gmra.mxu1 %vm3770_vm3, %v3779_v54  ;;  %v3522_v53 = vld [vmem:[%s5257_s4 + $0x168] sm:$0xff]   ;;  %v600_v1 = vrot.slane %v3900_v47, 7  ;;  %v616_v3 = vrot.slane %v3903_v48, 7  ;;  %v3945_v9 = vpack.c.bf16 %v3903_v48, %v3900_v47  ;;  %vm4033_vm6 = vmpackc.low %vm584_vm5, %vm3584_vm2 }
  0x2e   : > { %3039 = vmatpush3.bf16.msra.mxu1 %v3504_v50  ;;  %3151 = vmatpush3.bf16.msra.mxu0 %v3508_v59  ;;  %v764_v50 = vsel %vm750_vm4, %v731_v31, %v747_v36  ;;  %v3524_v59 = vld [vmem:[%s5257_s4 + $0x128] sm:$0xff]  }
  0x2f   : > { %3040 = vmatprep.subr.bf16.mxu1 %v3505_v55  ;;  %1488 = vmatprep.mubr.bf16.mxu0 %v3796_v0  ;;  %v780_v55 = vsel %vm750_vm4, %v747_v36, %v731_v31  ;;  %5267 = vst [vmem:[#allocation2_spill] sm:$0xff] %v3945_v9  ;;  %v633_v20 = vsel %vm617_vm0, %v600_v1, %v616_v3  ;;  %v3528_v31 = vld [vmem:[%s5257_s4 + $0x120] sm:$0xff]   ;;  %v3520_v36 = vld [vmem:[%s5257_s4 + $0x88] sm:$0xff]  }
  0x30   : > { %1584 = vmatprep.mubr.bf16.mxu1 %v3801_v2  ;;  %3152 = vmatprep.subr.bf16.mxu0 %v3514_v6  ;;  %v3925_v60 = vpack.c.bf16 %v780_v55, %v764_v50  ;;  %v748_v6 = vrot.slane %v3836_v13, 1  ;;  %v649_v27 = vsel %vm617_vm0, %v616_v3, %v600_v1  ;;  %v589_v50 = vrot.slane %v3977_v28, 7 }
  0x31   : > { %v3998_v45 = vpack.c.bf16 %v633_v20, %v649_v27 }
  0x32   : > { %3041 = vmatpush3.bf16.msra.mxu1 %v3507_v7  ;;  %3153 = vmatpush3.bf16.msra.mxu0 %v3516_v15  ;;  %v3517_v7 = vld [vmem:[%s5257_s4 + $0xd0] sm:$0xff]   ;;  %v781_v13 = vsel %vm750_vm4, %v748_v6, %v732_v61  ;;  %v621_v15 = vsel %vm617_vm0, %v588_v56, %v604_v57  ;;  %v622_v1 = vsel %vm617_vm0, %v589_v50, %v605_v51 }
  0x33   : > { %3042 = vmatprep.subr.bf16.mxu1 %v3509_v12  ;;  %3154 = vmatprep.subr.bf16.mxu0 %v3522_v53  ;;  %v765_v12 = vsel %vm750_vm4, %v732_v61, %v748_v6  ;;  %v3996_v44 = vpack.c.bf16 %v621_v15, %v637_v17  ;;  %v3532_v53 = vld [vmem:[%s5257_s4 + $0x118] sm:$0xff]   ;;  %v638_v3 = vsel %vm617_vm0, %v605_v51, %v589_v50  ;;  %v499_v17 = vld [vmem:[%s3683_s11 + $0x50] sm:$0xff]  ;;  %v3534_v50 = vld [vmem:[%s5257_s4 + $0x1e8] sm:$0xff]   ;;  %v720_v51 = vrot.slane %v3806_v4, 1 }
  0x34   : > { %v3968_v21 = vpack.c.bf16 %v781_v13, %v765_v12  ;;  %v4046_v6 = vadd.f32 %v3691_v14, %v498_v52  ;;  %v735_v12 = vrot.slane %v3745_v40, 1  ;;  %v3535_v13 = vld [vmem:[%s5257_s4 + $0x110] sm:$0xff]   ;;  %v500_v40 = vld [vmem:[%s3683_s11 + $0x58] sm:$0xff]  ;;  %v4076_v27 = vadd.f32 %v3691_v14, %v499_v17 }
  0x35   : > { %2634 = vmatmul.mubr.msk.bf16.gmra.mxu0 %vm3770_vm3, %v3847_v18  ;;  %2670 = vmatmul.mubr.msk.bf16.gmra.mxu1 %vm3770_vm3, %v3851_v22 }
  0x36   : > { %3043 = vmatpush3.bf16.msra.mxu1 %v3510_v25  ;;  %1496 = vmatprep.mubr.bf16.mxu0 %v3864_v32  ;;  %v3518_v25 = vld [vmem:[%s5257_s4 + $0x90] sm:$0xff]   ;;  %v606_v39 = vrot.slane %v4046_v6, 7  ;;  %v752_v33 = vsel %vm750_vm4, %v719_v11, %v735_v12  ;;  %v591_v52 = vrot.slane %v4076_v27, 7 }
  0x37   : > { %3044 = vmatprep.subr.bf16.mxu1 %v3511_v37  ;;  %1592 = vmatprep.mubr.bf16.mxu1 %v3875_v38  ;;  %v497_v37 = vld [vmem:[%s3683_s11 + $0x40] sm:$0xff] }
  0x38   : > { %3155 = vmatpush3.bf16.msra.mxu0 %v3524_v59  ;;  %v4027_v57 = vadd.f32 %v3691_v14, %v497_v37  ;;  %v3533_v59 = vld [vmem:[%s5257_s4 + $0x150] sm:$0xff]  }
  0x39   : > { %3156 = vmatprep.subr.bf16.mxu0 %v3527_v16  ;;  %v4062_v16 = vpack.c.bf16 %v622_v1, %v638_v3  ;;  %v502_v1 = vld [vmem:[%s3683_s11 + $0x68] sm:$0xff] }
  0x3a   : > { %3045 = vmatpush3.bf16.msra.mxu1 %v3512_v43  ;;  %v734_v43 = vrot.slane %v3710_v24, 1  ;;  %v3521_v24 = vld [vmem:[%s5257_s4 + $0xc0] sm:$0xff]   ;;  %v4068_v20 = vpack.c.bf16 %v4046_v6, %v4027_v57  ;;  %v3536_v3 = vld [vmem:[%s5257_s4 + $0x1a8] sm:$0xff]  }
  0x3b   : > { %3046 = vmatprep.subr.bf16.mxu1 %v3513_v46  ;;  %v3531_v46 = vld [vmem:[%s5257_s4 + $0x158] sm:$0xff]  }
  0x3c   : > { %3157 = vmatpush3.bf16.msra.mxu0 %v3528_v31  ;;  %v751_v55 = vsel %vm750_vm4, %v718_v35, %v734_v43  ;;  %v767_v56 = vsel %vm750_vm4, %v734_v43, %v718_v35  ;;  %v3537_v31 = vld [vmem:[%s5257_s4 + $0x148] sm:$0xff]   ;;  %v768_v43 = vsel %vm750_vm4, %v735_v12, %v719_v11 }
  0x3d   : > { %2637 = vmatmul.mubr.msk.bf16.gmra.mxu0 %vm3770_vm3, %v3920_v58  ;;  %2673 = vmatmul.mubr.msk.bf16.gmra.mxu1 %vm3770_vm3, %v3928_v62  ;;  %v2681_v15 = vpack.c.bf16 %v767_v56, %v751_v55  ;;  %v3538_v35 = vld [vmem:[%s5257_s4 + $0x108] sm:$0xff]   ;;  %v4118_v56 = vpack.c.bf16 %v768_v43, %v752_v33  ;;  %v3543_v33 = vld [vmem:[%s5257_s4 + $0x1d8] sm:$0xff]  }
  0x3e   : > { %3047 = vmatpush3.bf16.msra.mxu1 %v3515_v63  ;;  %1504 = vmatprep.mubr.bf16.mxu0 %v3941_v8  ;;  %v3523_v63 = vld [vmem:[%s5257_s4 + $0x80] sm:$0xff]   ;;  %v504_v43 = vld [vmem:[%s3683_s11 + $0x78] sm:$0xff] }
  0x3f   : > { %3048 = vmatprep.subr.bf16.mxu1 %v3517_v7  ;;  %1600 = vmatprep.mubr.bf16.mxu1 %v3945_v9  ;;  %v3525_v7 = vld [vmem:[%s5257_s4 + $0x1f8] sm:$0xff]  }
  0x40   : > { %3158 = vmatprep.subr.bf16.mxu0 %v3531_v46  ;;  %v3530_v46 = vld [vmem:[%s5257_s4 + $0x1b0] sm:$0xff]  }
  0x41   : > { %3159 = vmatpush3.bf16.msra.mxu0 %v3532_v53  ;;  %v736_v53 = vrot.slane %v3809_v5, 1  ;;  %v3539_v5 = vld [vmem:[%s5257_s4 + $0x1e0] sm:$0xff]  }
  0x42   : > { %3049 = vmatpush3.bf16.msra.mxu1 %v3518_v25  ;;  %3160 = vmatprep.subr.bf16.mxu0 %v3533_v59  ;;  %v3529_v25 = vld [vmem:[%s5257_s4 + $0x1f0] sm:$0xff]  }
  0x43   : > { %3050 = vmatprep.subr.bf16.mxu1 %v3519_v34  ;;  %v4089_v34 = vadd.f32 %v3691_v14, %v500_v40  ;;  %v753_v12 = vsel %vm750_vm4, %v720_v51, %v736_v53  ;;  %v737_v40 = vrot.slane %v3881_v42, 1 }
  0x45   : > { %2640 = vmatmul.mubr.msk.bf16.gmra.mxu0 %vm3770_vm3, %v3996_v44  ;;  %2676 = vmatmul.mubr.msk.bf16.gmra.mxu1 %vm3770_vm3, %v3998_v45  ;;  %v607_v59 = vrot.slane %v4089_v34, 7  ;;  %v4125_v4 = vpack.c.bf16 %v4089_v34, %v4076_v27 }
  0x46   : > { %3051 = vmatpush3.bf16.msra.mxu1 %v3520_v36  ;;  %1512 = vmatprep.mubr.bf16.mxu0 %v4005_v23 }
  0x47   : > { %3052 = vmatprep.subr.bf16.mxu1 %v3521_v24  ;;  %2679 = vmatprep.mubr.msk.bf16.mxu1 %vm3770_vm3, %v3847_v18  ;;  %v590_v18 = vrot.slane %v4027_v57, 7  ;;  %v3541_v24 = vld [vmem:[%s5257_s4 + $0x140] sm:$0xff]   ;;  %v624_v11 = vsel %vm617_vm0, %v591_v52, %v607_v59 }
  0x48   : > { %3161 = vmatpush3.bf16.msra.mxu0 %v3535_v13  ;;  %v769_v13 = vsel %vm750_vm4, %v736_v53, %v720_v51  ;;  %v3546_v53 = vld [vmem:[%s5257_s4 + $0x1d0] sm:$0xff]  }
  0x49   : > { %v623_v36 = vsel %vm617_vm0, %v590_v18, %v606_v39  ;;  %v639_v37 = vsel %vm617_vm0, %v606_v39, %v590_v18  ;;  %3162 = vmatprep.subr.bf16.mxu0 %v3537_v31  ;;  %v640_v18 = vsel %vm617_vm0, %v607_v59, %v591_v52  ;;  %v4164_v39 = vadd.f32 %v3691_v14, %v502_v1  ;;  %v503_v31 = vld [vmem:[%s3683_s11 + $0x70] sm:$0xff] }
  0x4a   : > { %3053 = vmatpush3.bf16.msra.mxu1 %v3523_v63  ;;  %v4116_v55 = vpack.c.bf16 %v623_v36, %v639_v37  ;;  %v501_v63 = vld [vmem:[%s3683_s11 + $0x60] sm:$0xff]  ;;  %v4177_v36 = vpack.c.bf16 %v624_v11, %v640_v18  ;;  %v4179_v42 = vpack.c.bf16 %v769_v13, %v753_v12  ;;  %v4214_v1 = vadd.f32 %v3691_v14, %v504_v43  ;;  %v3549_v13 = vld [vmem:[%s5257_s4 + $0x1c8] sm:$0xff]  }
  0x4b   : > { %3262 = vmatprep.subr.bf16.mxu1 %v3525_v7  ;;  %v3542_v7 = vld [vmem:[%s5257_s4 + $0x100] sm:$0xff]   ;;  %v4161_v17 = vadd.f32 %v3691_v14, %v501_v63  ;;  %v4211_v63 = vadd.f32 %v3691_v14, %v503_v31  ;;  %v722_v12 = vrot.slane %v3977_v28, 1  ;;  %v3550_v28 = vld [vmem:[%s5257_s4 + $0x188] sm:$0xff]  }
  0x4c   : > { %3163 = vmatpush3.bf16.msra.mxu0 %v3538_v35  ;;  %v749_v35 = vrot.slane %v3903_v48, 1  ;;  %v3544_v48 = vld [vmem:[%s5257_s4 + $0x198] sm:$0xff]   ;;  %v505_v31 = vld [vmem:[%s3683_s11 + $0x80] sm:$0xff] }
  0x4d   : > { %2643 = vmatmul.mubr.msk.bf16.gmra.mxu0 %vm3770_vm3, %v4062_v16  ;;  %2682 = vmatmul.mubr.msk.bf16.vlgmr.msra.gmra.mxu1 %vm4033_vm6, %v2681_v15  ;;  %v721_v15 = vrot.slane %v3878_v41, 1  ;;  %v3540_v41 = vld [vmem:[%s5257_s4 + $0x1a0] sm:$0xff]   ;;  %v4183_v37 = vpack.c.bf16 %v4164_v39, %v4161_v17  ;;  %v593_v18 = vrot.slane %v4211_v63, 7 }
  0x4e   : > { %3263 = vmatpush3.bf16.msra.mxu1 %v3526_v10  ;;  %1520 = vmatprep.mubr.bf16.mxu0 %v4068_v20  ;;  %v4139_v10 = vld [vmem:[%s5257_s4 + $0x238] sm:$0xff]  }
  0x4f   : > { %2685 = vmatprep.mubr.msk.bf16.mxu1 %vm3770_vm3, %v3920_v58  ;;  %3264 = vmatprep.subr.bf16.mxu1 %v3529_v25  ;;  %v733_v25 = vrot.slane %v3900_v47, 1  ;;  %v592_v47 = vrot.slane %v4161_v17, 7  ;;  %v754_v52 = vsel %vm750_vm4, %v721_v15, %v737_v40  ;;  %v770_v59 = vsel %vm750_vm4, %v737_v40, %v721_v15 }
  0x50   : > { %3164 = vmatprep.subr.bf16.mxu0 %v3541_v24  ;;  %v4227_v11 = vpack.c.bf16 %v770_v59, %v754_v52  ;;  %v609_v40 = vrot.slane %v4214_v1, 7  ;;  %v723_v59 = vrot.slane %v4027_v57, 1 }
  0x51   : > { %3165 = vmatpush3.bf16.msra.mxu0 %v3542_v7  ;;  %v782_v51 = vsel %vm750_vm4, %v749_v35, %v733_v25  ;;  %v3547_v7 = vld [vmem:[%s5257_s4 + $0x190] sm:$0xff]  }
  0x52   : > { %3265 = vmatpush3.bf16.msra.mxu1 %v3530_v46  ;;  %3398 = vmatprep.subr.bf16.mxu0 %v4139_v10  ;;  %v608_v46 = vrot.slane %v4164_v39, 7 }
  0x53   : > { %3266 = vmatprep.subr.bf16.mxu1 %v3534_v50  ;;  %v766_v50 = vsel %vm750_vm4, %v733_v25, %v749_v35  ;;  %v4240_v25 = vpack.c.bf16 %v4214_v1, %v4211_v63  ;;  %v3552_v35 = vld [vmem:[%s5257_s4 + $0x1c0] sm:$0xff]  }
  0x54   : > { %v4195_v24 = vpack.c.bf16 %v782_v51, %v766_v50  ;;  %v4269_v50 = vadd.f32 %v3691_v14, %v505_v31 }
  0x55   : > { %2646 = vmatmul.mubr.msk.bf16.gmra.mxu0 %vm3770_vm3, %v4116_v55  ;;  %2688 = vmatmul.mubr.msk.bf16.gmra.mxu1 %vm4033_vm6, %v4118_v56 }
  0x56   : > { %1528 = vmatprep.mubr.bf16.mxu0 %v4125_v4  ;;  %2691 = vmatprep.mubr.msk.bf16.mxu1 %vm3770_vm3, %v3996_v44 }
  0x57   : > { %3267 = vmatpush3.bf16.msra.mxu1 %v3536_v3  ;;  %v625_v3 = vsel %vm617_vm0, %v592_v47, %v608_v46 }
  0x58   : > { %3268 = vmatprep.subr.bf16.mxu1 %v3539_v5  ;;  %v641_v5 = vsel %vm617_vm0, %v608_v46, %v592_v47  ;;  %v642_v46 = vsel %vm617_vm0, %v609_v40, %v593_v18 }
  0x59   : > { %v4233_v15 = vpack.c.bf16 %v625_v3, %v641_v5  ;;  %v739_v3 = vrot.slane %v4046_v6, 1 }
  0x5b   : > { %3269 = vmatpush3.bf16.msra.mxu1 %v3540_v41  ;;  %5270 = vst [vmem:[#allocation3_spill] sm:$0xff] %v4233_v15  ;;  %v738_v41 = vrot.slane %v3980_v29, 1  ;;  %v626_v29 = vsel %vm617_vm0, %v593_v18, %v609_v40  ;;  %v508_v18 = vld [vmem:[%s3683_s11 + $0x98] sm:$0xff]  ;;  %v756_v57 = vsel %vm750_vm4, %v723_v59, %v739_v3  ;;  %v772_v6 = vsel %vm750_vm4, %v739_v3, %v723_v59  ;;  %v509_v59 = vld [vmem:[%s3683_s11 + $0xa0] sm:$0xff]  ;;  %v510_v3 = vld [vmem:[%s3683_s11 + $0xa8] sm:$0xff] }
  0x5c   : > { %3270 = vmatprep.subr.bf16.mxu1 %v3543_v33  ;;  %v506_v33 = vld [vmem:[%s3683_s11 + $0x88] sm:$0xff]  ;;  %v4277_v52 = vpack.c.bf16 %v626_v29, %v642_v46  ;;  %v724_v29 = vrot.slane %v4076_v27, 1 }
  0x5d   : > { %2649 = vmatmul.mubr.msk.bf16.gmra.mxu0 %vm3770_vm3, %v4177_v36  ;;  %2694 = vmatmul.mubr.msk.bf16.gmra.mxu1 %vm4033_vm6, %v4179_v42  ;;  %v755_v43 = vsel %vm750_vm4, %v722_v12, %v738_v41  ;;  %v771_v47 = vsel %vm750_vm4, %v738_v41, %v722_v12  ;;  %v4272_v51 = vadd.f32 %v3691_v14, %v506_v33 }
  0x5e   : > { %1536 = vmatprep.mubr.bf16.mxu0 %v4183_v37  ;;  %2697 = vmatprep.mubr.msk.bf16.mxu1 %vm3770_vm3, %v4062_v16  ;;  %5271 = vst [vmem:[#allocation4_spill] sm:$0xff] %v4277_v52  ;;  %v4313_v33 = vadd.f32 %v3691_v14, %v508_v18  ;;  %v4351_v18 = vadd.f32 %v3691_v14, %v510_v3 }
  0x5f   : > { %3271 = vmatpush3.bf16.msra.mxu1 %v3544_v48  ;;  %v3553_v48 = vld [vmem:[%s5257_s4 + $0x180] sm:$0xff]   ;;  %v4285_v5 = vpack.c.bf16 %v4272_v51, %v4269_v50  ;;  %v610_v12 = vrot.slane %v4272_v51, 7 }
  0x60   : > { %3272 = vmatprep.subr.bf16.mxu1 %v3546_v53  ;;  %v4279_v53 = vpack.c.bf16 %v771_v47, %v755_v43  ;;  %v740_v43 = vrot.slane %v4089_v34, 1 }
  0x62   : > { %v757_v27 = vsel %vm750_vm4, %v724_v29, %v740_v43  ;;  %v773_v34 = vsel %vm750_vm4, %v740_v43, %v724_v29 }
  0x63   : > { %3273 = vmatpush3.bf16.msra.mxu1 %v3547_v7  ;;  %v594_v7 = vrot.slane %v4269_v50, 7 }
  0x64   : > { %3274 = vmatprep.subr.bf16.mxu1 %v3549_v13  ;;  %v507_v13 = vld [vmem:[%s3683_s11 + $0x90] sm:$0xff] }
  0x65   : > { %2652 = vmatmul.mubr.msk.bf16.gmra.mxu0 %vm3770_vm3, %v4233_v15  ;;  %2700 = vmatmul.mubr.msk.bf16.gmra.mxu1 %vm4033_vm6, %v4227_v11  ;;  %v4302_v40 = vadd.f32 %v3691_v14, %v507_v13  ;;  %v627_v41 = vsel %vm617_vm0, %v594_v7, %v610_v12  ;;  %v643_v31 = vsel %vm617_vm0, %v610_v12, %v594_v7 }
  0x66   : > { %1544 = vmatprep.mubr.bf16.mxu0 %v4240_v25  ;;  %2703 = vmatprep.mubr.msk.bf16.mxu1 %vm3770_vm3, %v4116_v55  ;;  %v4340_v7 = vadd.f32 %v3691_v14, %v509_v59  ;;  %v612_v59 = vrot.slane %v4351_v18, 7 }
  0x67   : > { %3275 = vmatpush3.bf16.msra.mxu1 %v3550_v28  ;;  %v4315_v28 = vpack.c.bf16 %v627_v41, %v643_v31  ;;  %v4323_v47 = vpack.c.bf16 %v4313_v33, %v4302_v40  ;;  %v595_v46 = vrot.slane %v4302_v40, 7  ;;  %v725_v41 = vrot.slane %v4161_v17, 1 }
  0x68   : > { %3276 = vmatprep.subr.bf16.mxu1 %v3552_v35  ;;  %v4317_v35 = vpack.c.bf16 %v772_v6, %v756_v57  ;;  %v4355_v6 = vpack.c.bf16 %v773_v34, %v757_v27  ;;  %v741_v31 = vrot.slane %v4164_v39, 1  ;;  %v4361_v29 = vpack.c.bf16 %v4351_v18, %v4340_v7 }
  0x69   : > { %v596_v43 = vrot.slane %v4340_v7, 7 }
  0x6a   : > { %v758_v17 = vsel %vm750_vm4, %v725_v41, %v741_v31 }
  0x6b   : > { %3277 = vmatpush3.bf16.msra.mxu1 %v3553_v48  ;;  %v611_v48 = vrot.slane %v4313_v33, 7  ;;  %v629_v27 = vsel %vm617_vm0, %v596_v43, %v612_v59  ;;  %v645_v34 = vsel %vm617_vm0, %v612_v59, %v596_v43  ;;  %v742_v43 = vrot.slane %v4214_v1, 1 }
  0x6d   : > { %2655 = vmatmul.mubr.msk.bf16.gmra.mxu0 %vm3770_vm3, %v4277_v52  ;;  %2706 = vmatmul.mubr.msk.bf16.gmra.mxu1 %vm4033_vm6, %v4279_v53  ;;  %v628_v12 = vsel %vm617_vm0, %v595_v46, %v611_v48  ;;  %v644_v13 = vsel %vm617_vm0, %v611_v48, %v595_v46  ;;  %v519_v46 = vld [vmem:[%s3683_s11 + $0xf0] sm:$0xff]  ;;  %v520_v48 = vld [vmem:[%s3683_s11 + $0xf8] sm:$0xff]  ;;  %s459_s11 = scalar_lea.vmem %s5255_s2, %s2922_s13 }
  0x6e   : > { %1552 = vmatprep.mubr.bf16.mxu0 %v4285_v5  ;;  %2709 = vmatprep.mubr.msk.bf16.mxu1 %vm3770_vm3, %v4177_v36  ;;  %v4353_v57 = vpack.c.bf16 %v628_v12, %v644_v13  ;;  %v4376_v39 = vadd.f32 %v3691_v14, %v519_v46  ;;  %v4379_v3 = vadd.f32 %v3691_v14, %v520_v48 }
  0x6f   : > { %v774_v12 = vsel %vm750_vm4, %v741_v31, %v725_v41  ;;  %v4393_v46 = vpack.c.bf16 %v629_v27, %v645_v34  ;;  %v743_v31 = vrot.slane %v4272_v51, 1  ;;  %v744_v51 = vrot.slane %v4313_v33, 1  ;;  %v3554_v27 = vld [vmem:[%s5257_s4 + $0x220] sm:$0xff]   ;;  %v3555_v34 = vld [vmem:[%s5257_s4 + $0x218] sm:$0xff]  }
  0x70   : > { %v843_v13 = vrot.slane %v4376_v39, 1  ;;  %v844_v14 = vrot.slane %v4379_v3, 1  ;;  %v4395_v48 = vpack.c.bf16 %v774_v12, %v758_v17  ;;  %v4407_v41 = vpack.c.bf16 %v4379_v3, %v4376_v39  ;;  %v3548_v17 = vld [vmem:[%s5257_s4 + $0x230] sm:$0xff]  }
  0x72   : > { %v846_v9 = vsel %vm750_vm4, %v844_v14, %v843_v13 }
  0x75   : > { %2658 = vmatmul.mubr.msk.bf16.gmra.mxu0 %vm3770_vm3, %v4315_v28  ;;  %2712 = vmatmul.mubr.msk.bf16.gmra.mxu1 %vm4033_vm6, %v4317_v35 }
  0x76   : > { %1560 = vmatprep.mubr.bf16.mxu0 %v4323_v47  ;;  %2715 = vmatprep.mubr.msk.bf16.mxu1 %vm3770_vm3, %v4233_v15  ;;  %v726_v15 = vrot.slane %v4211_v63, 1 }
  0x78   : > { %v775_v63 = vsel %vm750_vm4, %v742_v43, %v726_v15 }
  0x7d   : > { %2661 = vmatmul.mubr.msk.bf16.gmra.mxu0 %vm3770_vm3, %v4353_v57  ;;  %2718 = vmatmul.mubr.msk.bf16.gmra.mxu1 %vm4033_vm6, %v4355_v6 }
  0x7e   : > { %1568 = vmatprep.mubr.bf16.mxu0 %v4361_v29  ;;  %2721 = vmatprep.mubr.msk.bf16.mxu1 %vm3770_vm3, %v4277_v52  ;;  %v845_v52 = vsel %vm750_vm4, %v843_v13, %v844_v14  ;;  %v729_v13 = vrot.slane %v4340_v7, 1  ;;  %v745_v14 = vrot.slane %v4351_v18, 1 }
  0x7f   : > { %v4403_v59 = vpack.c.bf16 %v846_v9, %v845_v52  ;;  %v759_v9 = vsel %vm750_vm4, %v726_v15, %v742_v43  ;;  %v727_v52 = vrot.slane %v4269_v50, 1  ;;  %v728_v50 = vrot.slane %v4302_v40, 1  ;;  %v3556_v43 = vld [vmem:[%s5257_s4 + $0x210] sm:$0xff]  }
  0x80   : > { %v4425_v1 = vpack.c.bf16 %v775_v63, %v759_v9  ;;  %v762_v7 = vsel %vm750_vm4, %v729_v13, %v745_v14  ;;  %v778_v18 = vsel %vm750_vm4, %v745_v14, %v729_v13  ;;  %v3557_v9 = vld [vmem:[%s5257_s4 + $0x208] sm:$0xff]  }
  0x81   : > { %v776_v15 = vsel %vm750_vm4, %v743_v31, %v727_v52  ;;  %v761_v40 = vsel %vm750_vm4, %v728_v50, %v744_v51  ;;  %v777_v33 = vsel %vm750_vm4, %v744_v51, %v728_v50  ;;  %v4498_v63 = vpack.c.bf16 %v778_v18, %v762_v7 }
  0x82   : > { %v4474_v12 = vpack.c.bf16 %v777_v33, %v761_v40 }
  0x85   : > { %2664 = vmatmul.mubr.msk.bf16.gmra.mxu0 %vm3770_vm3, %v4393_v46  ;;  %2724 = vmatmul.mubr.msk.bf16.gmra.mxu1 %vm4033_vm6, %v4395_v48 }
  0x86   : > { %2727 = vmatprep.mubr.msk.bf16.mxu1 %vm3770_vm3, %v4315_v28  ;;  %2775 = vmatprep.mubr.msk.bf16.mxu0 %vm4033_vm6, %v4118_v56  ;;  %v760_v56 = vsel %vm750_vm4, %v727_v52, %v743_v31  ;;  %v3558_v52 = vld [vmem:[%s5257_s4 + $0x200] sm:$0xff]   ;;  %v835_v31 = vrot.slane %v4376_v39, 7 }
  0x8d   : > { %2730 = vmatmul.mubr.msk.bf16.gmra.mxu1 %vm4033_vm6, %v4425_v1  ;;  %1803 = vmatmul.mubr.bf16.vlgmr.msra.gmra.mxu0 %v3796_v0  ;;  %v3551_v0 = vld [vmem:[%s5257_s4 + $0x228] sm:$0xff]  }
  0x8e   : > { %3399 = vmatpush3.bf16.msra.mxu0 %v4139_v10  ;;  %2733 = vmatprep.mubr.msk.bf16.mxu1 %vm3770_vm3, %v4353_v57  ;;  %v4450_v10 = vpack.c.bf16 %v776_v15, %v760_v56 }
  0x8f   : > { %2778 = vmatprep.mubr.msk.bf16.mxu0 %vm4033_vm6, %v4179_v42  ;;  %3400 = vmatprep.subr.bf16.mxu0 %v3548_v17 }
  0x92   : > { %3401 = vmatpush3.bf16.msra.mxu0 %v3548_v17  ;;  %v836_v17 = vrot.slane %v4379_v3, 7 }
  0x93   : > { %3402 = vmatprep.subr.bf16.mxu0 %v3551_v0 }
  0x94   : > { %v837_v56 = vsel %vm617_vm0, %v835_v31, %v836_v17  ;;  %v838_v39 = vsel %vm617_vm0, %v836_v17, %v835_v31  ;;  %v5273_v17 = vld [vmem:[#allocation2_spill] sm:$0xff] }
  0x95   : > { %2736 = vmatmul.mubr.msk.bf16.gmra.mxu1 %vm4033_vm6, %v4450_v10  ;;  %1811 = vmatmul.mubr.bf16.gmra.mxu0 %v3864_v32  ;;  %v4539_v3 = vpack.c.bf16 %v837_v56, %v838_v39  ;;  %v5274_v56 = vld [vmem:[#allocation4_spill] sm:$0xff] }
  0x96   : > { %2739 = vmatprep.mubr.msk.bf16.mxu1 %vm3770_vm3, %v4393_v46  ;;  %2781 = vmatprep.mubr.msk.bf16.mxu0 %vm4033_vm6, %v4227_v11 }
  0x97   : > { %3403 = vmatpush3.bf16.msra.mxu0 %v3551_v0 }
  0x98   : > { %3404 = vmatprep.subr.bf16.mxu0 %v3554_v27 }
  0x9b   : > { %3405 = vmatpush3.bf16.msra.mxu0 %v3554_v27  ;;  %v5272_v27 = vld [vmem:[#allocation3_spill] sm:$0xff] }
  0x9c   : > { %3406 = vmatprep.subr.bf16.mxu0 %v3555_v34 }
  0x9d   : > { %2742 = vmatmul.mubr.msk.bf16.gmra.mxu1 %vm4033_vm6, %v4474_v12  ;;  %1819 = vmatmul.mubr.bf16.gmra.mxu0 %v3941_v8 }
  0x9e   : > { %2745 = vmatprep.mubr.msk.bf16.mxu1 %vm3770_vm3, %v3779_v54  ;;  %2784 = vmatprep.mubr.msk.bf16.mxu0 %vm4033_vm6, %v4279_v53 }
  0x9f   : > { %3407 = vmatpush3.bf16.msra.mxu0 %v3555_v34 }
  0xa0   : > { %3408 = vmatprep.subr.bf16.mxu0 %v3556_v43 }
  0xa3   : > { %3409 = vmatpush3.bf16.msra.mxu0 %v3556_v43 }
  0xa4   : > { %3410 = vmatprep.subr.bf16.mxu0 %v3557_v9 }
  0xa5   : > { %2748 = vmatmul.mubr.msk.bf16.gmra.mxu1 %vm4033_vm6, %v4498_v63  ;;  %1827 = vmatmul.mubr.bf16.gmra.mxu0 %v4005_v23 }
  0xa6   : > { %2751 = vmatprep.mubr.msk.bf16.mxu1 %vm3770_vm3, %v3851_v22  ;;  %2787 = vmatprep.mubr.msk.bf16.mxu0 %vm4033_vm6, %v4317_v35 }
  0xa7   : > { %3411 = vmatpush3.bf16.msra.mxu0 %v3557_v9 }
  0xa8   : > { %3412 = vmatprep.subr.bf16.mxu0 %v3558_v52 }
  0xab   : > { %3413 = vmatpush3.bf16.msra.mxu0 %v3558_v52 }
  0xad   : > { %2754 = vmatmul.mubr.msk.bf16.gmra.mxu1 %vm4033_vm6, %v3859_v30  ;;  %1835 = vmatmul.mubr.bf16.gmra.mxu0 %v4068_v20 }
  0xae   : > { %2757 = vmatprep.mubr.msk.bf16.mxu1 %vm3770_vm3, %v3928_v62  ;;  %2790 = vmatprep.mubr.msk.bf16.mxu0 %vm4033_vm6, %v4355_v6 }
  0xb5   : > { %2760 = vmatmul.mubr.msk.bf16.gmra.mxu1 %vm4033_vm6, %v3925_v60  ;;  %1843 = vmatmul.mubr.bf16.gmra.mxu0 %v4125_v4 }
  0xb6   : > { %2763 = vmatprep.mubr.msk.bf16.mxu1 %vm3770_vm3, %v3998_v45  ;;  %2793 = vmatprep.mubr.msk.bf16.mxu0 %vm4033_vm6, %v4395_v48 }
  0xbd   : > { %2766 = vmatmul.mubr.msk.bf16.gmra.mxu1 %vm4033_vm6, %v3968_v21  ;;  %1851 = vmatmul.mubr.bf16.gmra.mxu0 %v4183_v37 }
  0xbe   : > { %2769 = vmatprep.mubr.msk.bf16.mxu1 %vm3770_vm3, %v4539_v3  ;;  %2796 = vmatprep.mubr.msk.bf16.mxu0 %vm4033_vm6, %v4425_v1 }
  0xc5   : > { %2772 = vmatmul.mubr.msk.bf16.gmra.mxu1 %vm4033_vm6, %v4195_v24  ;;  %1859 = vmatmul.mubr.bf16.gmra.mxu0 %v4240_v25 }
  0xc6   : > { %2799 = vmatprep.mubr.msk.bf16.mxu0 %vm4033_vm6, %v4450_v10  ;;  %1963 = vmatprep.mubr.bf16.mxu1 %v3864_v32 }
  0xcd   : > { %1867 = vmatmul.mubr.bf16.gmra.mxu0 %v4285_v5  ;;  %2823 = vmatmul.mubr.msk.bf16.vlgmr.msra.gmra.mxu1 %vm3770_vm3, %v3920_v58 }
  0xce   : > { %2802 = vmatprep.mubr.msk.bf16.mxu0 %vm4033_vm6, %v4474_v12  ;;  %1971 = vmatprep.mubr.bf16.mxu1 %v3941_v8 }
  0xd5   : > { %1875 = vmatmul.mubr.bf16.gmra.mxu0 %v4323_v47  ;;  %2826 = vmatmul.mubr.msk.bf16.gmra.mxu1 %vm3770_vm3, %v3996_v44 }
  0xd6   : > { %2805 = vmatprep.mubr.msk.bf16.mxu0 %vm4033_vm6, %v4498_v63  ;;  %1979 = vmatprep.mubr.bf16.mxu1 %v4005_v23 }
  0xdd   : > { %1883 = vmatmul.mubr.bf16.gmra.mxu0 %v4361_v29  ;;  %2829 = vmatmul.mubr.msk.bf16.gmra.mxu1 %vm3770_vm3, %v4062_v16 }
  0xde   : > { %2808 = vmatprep.mubr.msk.bf16.mxu0 %vm4033_vm6, %v3859_v30  ;;  %1987 = vmatprep.mubr.bf16.mxu1 %v4068_v20 }
  0xe5   : > { %1891 = vmatmul.mubr.bf16.gmra.mxu0 %v3717_v26  ;;  %2832 = vmatmul.mubr.msk.bf16.gmra.mxu1 %vm3770_vm3, %v4116_v55 }
  0xe6   : > { %2811 = vmatprep.mubr.msk.bf16.mxu0 %vm4033_vm6, %v3925_v60  ;;  %1995 = vmatprep.mubr.bf16.mxu1 %v4125_v4 }
  0xed   : > { %v2942_v32 = vpop.f32.mrf.mxu0  ;;  %v3014_v58 = vpop.f32.mrf.mxu1  ;;  %1899 = vmatmul.mubr.bf16.gmra.mxu0 %v3801_v2  ;;  %2835 = vmatmul.mubr.msk.bf16.gmra.mxu1 %vm3770_vm3, %v4177_v36 }
  0xee   : > { %2814 = vmatprep.mubr.msk.bf16.mxu0 %vm4033_vm6, %v3968_v21  ;;  %2003 = vmatprep.mubr.bf16.mxu1 %v4183_v37 }
  0xef   : > { %v2943_v8 = vpop.f32.mrf.mxu0  ;;  %v3015_v44 = vpop.f32.mrf.mxu1 }
  0xf0   : > { %v4599_v23 = vadd.f32 %v2943_v8, %v2942_v32  ;;  %v4601_v16 = vadd.f32 %v3015_v44, %v3014_v58 }
  0xf1   : > { %v2945_v20 = vpop.f32.mrf.mxu0  ;;  %v3017_v55 = vpop.f32.mrf.mxu1 }
  0xf3   : > { %v2946_v4 = vpop.f32.mrf.mxu0  ;;  %v3018_v15 = vpop.f32.mrf.mxu1 }
  0xf4   : > { %v4603_v0 = vadd.f32 %v2946_v4, %v2945_v20  ;;  %v4605_v50 = vadd.f32 %v3018_v15, %v3017_v55 }
  0xf5   : > { %v2948_v36 = vpop.f32.mrf.mxu0  ;;  %v3020_v51 = vpop.f32.mrf.mxu1  ;;  %1907 = vmatmul.mubr.bf16.gmra.mxu0 %v3875_v38  ;;  %2838 = vmatmul.mubr.msk.bf16.gmra.mxu1 %vm3770_vm3, %v5272_v27 }
  0xf6   : > { %2817 = vmatprep.mubr.msk.bf16.mxu0 %vm4033_vm6, %v4195_v24  ;;  %2011 = vmatprep.mubr.bf16.mxu1 %v4240_v25 }
  0xf7   : > { %v2949_v37 = vpop.f32.mrf.mxu0  ;;  %v3021_v40 = vpop.f32.mrf.mxu1 }
  0xf8   : > { %v4615_v33 = vadd.f32 %v2949_v37, %v2948_v36  ;;  %v4617_v34 = vadd.f32 %v3021_v40, %v3020_v51 }
  0xf9   : > { %v2951_v13 = vpop.f32.mrf.mxu0  ;;  %v3023_v14 = vpop.f32.mrf.mxu1 }
  0xfb   : > { %v2952_v43 = vpop.f32.mrf.mxu0  ;;  %v3024_v7 = vpop.f32.mrf.mxu1 }
  0xfc   : > { %v4619_v18 = vadd.f32 %v2952_v43, %v2951_v13  ;;  %v4621_v9 = vadd.f32 %v3024_v7, %v3023_v14 }
  0xfd   : > { %v2954_v52 = vpop.f32.mrf.mxu0  ;;  %v3026_v31 = vpop.f32.mrf.mxu1  ;;  %1915 = vmatmul.mubr.bf16.gmra.mxu0 %v5273_v17  ;;  %2841 = vmatmul.mubr.msk.bf16.gmra.mxu1 %vm3770_vm3, %v5274_v56 }
  0xfe   : > { %2820 = vmatprep.mubr.msk.bf16.mxu0 %vm4033_vm6, %v4403_v59  ;;  %2019 = vmatprep.mubr.bf16.mxu1 %v4285_v5 }
  0xff   : > { %v2955_v25 = vpop.f32.mrf.mxu0  ;;  %v3027_v39 = vpop.f32.mrf.mxu1 }
 0x100   : > { %v4631_v32 = vadd.f32 %v2955_v25, %v2954_v52  ;;  %v4633_v58 = vadd.f32 %v3027_v39, %v3026_v31 }
 0x101   : > { %v2957_v8 = vpop.f32.mrf.mxu0  ;;  %v3029_v44 = vpop.f32.mrf.mxu1 }
 0x103   : > { %v2958_v20 = vpop.f32.mrf.mxu0  ;;  %v3030_v55 = vpop.f32.mrf.mxu1 }
 0x104   : > { %v4635_v4 = vadd.f32 %v2958_v20, %v2957_v8  ;;  %v4637_v15 = vadd.f32 %v3030_v55, %v3029_v44 }
 0x105   : > { %v2960_v36 = vpop.f32.mrf.mxu0  ;;  %v3032_v51 = vpop.f32.mrf.mxu1  ;;  %1923 = vmatmul.mubr.bf16.gmra.mxu0 %v4407_v41  ;;  %2844 = vmatmul.mubr.msk.bf16.gmra.mxu1 %vm3770_vm3, %v4315_v28 }
 0x106   : > { %2027 = vmatprep.mubr.bf16.mxu1 %v4323_v47  ;;  %3414 = vmatprep.mubr.msk.bf16.mxu0 %vm4033_vm6, %v4179_v42  ;;  %v4668_v42 = vld [vmem:[%s5258_s5] ss:$0 sm:$0xff] }
 0x107   : > { %v2961_v5 = vpop.f32.mrf.mxu0  ;;  %v3033_v27 = vpop.f32.mrf.mxu1 }
 0x108   : > { %v4647_v37 = vadd.f32 %v2961_v5, %v2960_v36  ;;  %v4649_v40 = vadd.f32 %v3033_v27, %v3032_v51 }
 0x109   : > { %v2963_v13 = vpop.f32.mrf.mxu0  ;;  %v3035_v14 = vpop.f32.mrf.mxu1 }
 0x10b   : > { %v2964_v43 = vpop.f32.mrf.mxu0  ;;  %v3036_v7 = vpop.f32.mrf.mxu1 }
 0x10c   : > { %v4651_v52 = vadd.f32 %v2964_v43, %v2963_v13  ;;  %v4653_v31 = vadd.f32 %v3036_v7, %v3035_v14  ;;  %v1491_v14 = vadd.f32 %v4615_v33, %v4668_v42 }
 0x10d   : > { %v2966_v28 = vpop.f32.mrf.mxu0  ;;  %v3054_v47 = vpop.f32.mrf.mxu1  ;;  %2847 = vmatmul.mubr.msk.bf16.gmra.mxu1 %vm3770_vm3, %v4353_v57  ;;  %3415 = vmatmul.mubr.msk.bf16.vlgmr.msra.gmra.mxu0 %vm4033_vm6, %v4227_v11  ;;  %v1483_v57 = vadd.f32 %v4599_v23, %v4668_v42 }
 0x10e   : > { %2035 = vmatprep.mubr.bf16.mxu1 %v4361_v29  ;;  %3418 = vmatprep.mubr.msk.bf16.mxu0 %vm4033_vm6, %v4279_v53  ;;  %v1486_v53 = vadd.f32 %v4603_v0, %v4668_v42 }
 0x10f   : > { %v2967_v56 = vpop.f32.mrf.mxu0  ;;  %v3055_v25 = vpop.f32.mrf.mxu1 }
 0x110   : > { %v4672_v39 = vadd.f32 %v2967_v56, %v2966_v28  ;;  %v3056_v8 = vadd.f32 %v3055_v25, %v3054_v47 }
 0x111   : > { %v2969_v11 = vpop.f32.mrf.mxu0  ;;  %v3057_v44 = vpop.f32.mrf.mxu1 }
 0x112   : > { %v4674_v29 = vadd.f32 %v3056_v8, %v1483_v57 }
 0x113   : > { %v2970_v20 = vpop.f32.mrf.mxu0  ;;  %v3058_v55 = vpop.f32.mrf.mxu1 }
 0x114   : > { %v4678_v36 = vadd.f32 %v2970_v20, %v2969_v11  ;;  %v3059_v51 = vadd.f32 %v3058_v55, %v3057_v44  ;;  %v1499_v44 = vadd.f32 %v4631_v32, %v4668_v42 }
 0x115   : > { %v2972_v5 = vpop.f32.mrf.mxu0  ;;  %v3060_v27 = vpop.f32.mrf.mxu1  ;;  %2850 = vmatmul.mubr.msk.bf16.gmra.mxu1 %vm3770_vm3, %v4393_v46  ;;  %3419 = vmatmul.mubr.msk.bf16.gmra.mxu0 %vm4033_vm6, %v4317_v35 }
 0x116   : > { %v4686_v23 = vadd.f32 %v3059_v51, %v1486_v53  ;;  %2043 = vmatprep.mubr.bf16.mxu1 %v3717_v26  ;;  %3422 = vmatprep.mubr.msk.bf16.mxu0 %vm4033_vm6, %v4355_v6  ;;  %v1494_v26 = vadd.f32 %v4619_v18, %v4668_v42 }
 0x117   : > { %v2973_v0 = vpop.f32.mrf.mxu0  ;;  %v3061_v13 = vpop.f32.mrf.mxu1 }
 0x118   : > { %v4694_v43 = vadd.f32 %v2973_v0, %v2972_v5  ;;  %v3062_v46 = vadd.f32 %v3061_v13, %v3060_v27 }
 0x119   : > { %v2975_v7 = vpop.f32.mrf.mxu0  ;;  %v3063_v28 = vpop.f32.mrf.mxu1 }
 0x11a   : > { %v4696_v47 = vadd.f32 %v3062_v46, %v1491_v14  ;;  %v1507_v46 = vadd.f32 %v4647_v37, %v4668_v42 }
 0x11b   : > { %v2976_v35 = vpop.f32.mrf.mxu0  ;;  %v3064_v56 = vpop.f32.mrf.mxu1 }
 0x11c   : > { %v4700_v25 = vadd.f32 %v2976_v35, %v2975_v7  ;;  %v3065_v6 = vadd.f32 %v3064_v56, %v3063_v28 }
 0x11d   : > { %v2978_v57 = vpop.f32.mrf.mxu0  ;;  %v3066_v8 = vpop.f32.mrf.mxu1  ;;  %2853 = vmatmul.mubr.msk.bf16.gmra.mxu1 %vm3770_vm3, %v3779_v54  ;;  %3423 = vmatmul.mubr.msk.bf16.gmra.mxu0 %vm4033_vm6, %v4395_v48 }
 0x11e   : > { %v4708_v33 = vadd.f32 %v3065_v6, %v1494_v26  ;;  %2051 = vmatprep.mubr.bf16.mxu1 %v3801_v2  ;;  %3426 = vmatprep.mubr.msk.bf16.mxu0 %vm4033_vm6, %v4425_v1  ;;  %v1502_v2 = vadd.f32 %v4635_v4, %v4668_v42 }
 0x11f   : > { %v2979_v18 = vpop.f32.mrf.mxu0  ;;  %v3067_v11 = vpop.f32.mrf.mxu1 }
 0x120   : > { %v4716_v20 = vadd.f32 %v2979_v18, %v2978_v57  ;;  %v3068_v54 = vadd.f32 %v3067_v11, %v3066_v8  ;;  %v522_v18 = vld [vmem:[%s459_s11 + $0x8] sm:$0xff] }
 0x121   : > { %v2981_v55 = vpop.f32.mrf.mxu0  ;;  %v3069_v53 = vpop.f32.mrf.mxu1 }
 0x122   : > { %v4718_v51 = vadd.f32 %v3068_v54, %v1499_v44  ;;  %v1515_v54 = vadd.f32 %v4672_v39, %v4668_v42 }
 0x123   : > { %v2982_v48 = vpop.f32.mrf.mxu0  ;;  %v3070_v5 = vpop.f32.mrf.mxu1 }
 0x124   : > { %v4722_v27 = vadd.f32 %v2982_v48, %v2981_v55  ;;  %v3071_v1 = vadd.f32 %v3070_v5, %v3069_v53 }
 0x125   : > { %v2984_v0 = vpop.f32.mrf.mxu0  ;;  %v3072_v13 = vpop.f32.mrf.mxu1  ;;  %2856 = vmatmul.mubr.msk.bf16.gmra.mxu1 %vm3770_vm3, %v3851_v22  ;;  %3427 = vmatmul.mubr.msk.bf16.gmra.mxu0 %vm4033_vm6, %v4450_v10 }
 0x126   : > { %v4730_v32 = vadd.f32 %v3071_v1, %v1502_v2  ;;  %2059 = vmatprep.mubr.bf16.mxu1 %v3875_v38  ;;  %3430 = vmatprep.mubr.msk.bf16.mxu0 %vm4033_vm6, %v4474_v12  ;;  %v1510_v38 = vadd.f32 %v4651_v52, %v4668_v42  ;;  %v521_v52 = vld [vmem:[%s459_s11] sm:$0xff]  ;;  %v1534_v19 = vadd.f32 %v4722_v27, %v4668_v42 }
 0x127   : > { %v2985_v4 = vpop.f32.mrf.mxu0  ;;  %v3073_v14 = vpop.f32.mrf.mxu1 }
 0x128   : > { %v4738_v7 = vadd.f32 %v2985_v4, %v2984_v0  ;;  %v3074_v22 = vadd.f32 %v3073_v14, %v3072_v13  ;;  %v1518_v0 = vadd.f32 %v4678_v36, %v4668_v42 }
 0x129   : > { %v2987_v28 = vpop.f32.mrf.mxu0  ;;  %v3075_v35 = vpop.f32.mrf.mxu1 }
 0x12a   : > { %v4741_v10 = vadd.f32 %v3074_v22, %v1507_v46 }
 0x12b   : > { %v2988_v56 = vpop.f32.mrf.mxu0  ;;  %v3076_v26 = vpop.f32.mrf.mxu1 }
 0x12c   : > { %v4748_v12 = vadd.f32 %v2988_v56, %v2987_v28  ;;  %v3077_v37 = vadd.f32 %v3076_v26, %v3075_v35  ;;  %v1523_v56 = vadd.f32 %v4694_v43, %v4668_v42 }
 0x12d   : > { %v2990_v6 = vpop.f32.mrf.mxu0  ;;  %v3078_v57 = vpop.f32.mrf.mxu1  ;;  %2859 = vmatmul.mubr.msk.bf16.gmra.mxu1 %vm3770_vm3, %v3928_v62  ;;  %3431 = vmatmul.mubr.msk.bf16.gmra.mxu0 %vm4033_vm6, %v4498_v63 }
 0x12e   : > { %v4756_v8 = vadd.f32 %v3077_v37, %v1510_v38  ;;  %2067 = vmatprep.mubr.bf16.mxu1 %v5273_v17  ;;  %3434 = vmatprep.mubr.msk.bf16.mxu0 %vm4033_vm6, %v3859_v30  ;;  %v3559_v17 = vld [vmem:[%s5256_s3] ss:$0 sm:$0xff]  ;;  %v1542_v61 = vadd.f32 %v4748_v12, %v4668_v42 }
 0x12f   : > { %v2991_v11 = vpop.f32.mrf.mxu0  ;;  %v3079_v44 = vpop.f32.mrf.mxu1  ;;  %v564_v48 = vadd.f32 %v3559_v17, %v521_v52  ;;  %v565_v5 = vadd.f32 %v3559_v17, %v522_v18 }
 0x130   : > { %v4764_v62 = vadd.f32 %v2991_v11, %v2990_v6  ;;  %v3080_v55 = vadd.f32 %v3079_v44, %v3078_v57 }
 0x131   : > { %v2993_v53 = vpop.f32.mrf.mxu0  ;;  %v3081_v63 = vpop.f32.mrf.mxu1  ;;  %v576_v46 = vmul.f32 0.0, %v564_v48  ;;  %v577_v22 = vmul.f32 0.0, %v565_v5 }
 0x132   : > { %v4769_v2 = vadd.f32 %v3080_v55, %v1515_v54 }
 0x133   : > { %v2994_v30 = vpop.f32.mrf.mxu0  ;;  %v3082_v1 = vpop.f32.mrf.mxu1  ;;  %v850_v37 = vrot.slane %v576_v46, 7  ;;  %v851_v6 = vrot.slane %v577_v22, 7  ;;  %v857_v52 = vpack.c.bf16 %v577_v22, %v576_v46  ;;  %v859_v18 = vrot.slane %v577_v22, 1 }
 0x134   : > { %v4773_v13 = vadd.f32 %v2994_v30, %v2993_v53  ;;  %v3083_v39 = vadd.f32 %v3082_v1, %v3081_v63  ;;  %v1531_v30 = vadd.f32 %v4716_v20, %v4668_v42 }
 0x135   : > { %v2996_v4 = vpop.f32.mrf.mxu0  ;;  %v3084_v14 = vpop.f32.mrf.mxu1  ;;  %2862 = vmatmul.mubr.msk.bf16.gmra.mxu1 %vm3770_vm3, %v3998_v45  ;;  %3435 = vmatmul.mubr.msk.bf16.gmra.mxu0 %vm4033_vm6, %v3925_v60  ;;  %v852_v63 = vsel %vm617_vm0, %v850_v37, %v851_v6  ;;  %v853_v17 = vsel %vm617_vm0, %v851_v6, %v850_v37  ;;  %v1539_v6 = vadd.f32 %v4738_v7, %v4668_v42 }
 0x136   : > { %v4781_v28 = vadd.f32 %v3083_v39, %v1518_v0  ;;  %2075 = vmatprep.mubr.bf16.mxu1 %v4407_v41  ;;  %3438 = vmatprep.mubr.msk.bf16.mxu0 %vm4033_vm6, %v3968_v21  ;;  %v858_v41 = vrot.slane %v576_v46, 1  ;;  %v1526_v21 = vadd.f32 %v4700_v25, %v4668_v42 }
 0x137   : > { %v2997_v36 = vpop.f32.mrf.mxu0  ;;  %v3085_v35 = vpop.f32.mrf.mxu1 }
 0x138   : > { %v4789_v45 = vadd.f32 %v2997_v36, %v2996_v4  ;;  %v3086_v26 = vadd.f32 %v3085_v35, %v3084_v14  ;;  %v861_v48 = vsel %vm750_vm4, %v859_v18, %v858_v41  ;;  %v2867_v14 = vpack.c.bf16 %v852_v63, %v853_v17 }
 0x139   : > { %v2999_v38 = vpop.f32.mrf.mxu0  ;;  %v3087_v60 = vpop.f32.mrf.mxu1 }
 0x13a   : > { %v4791_v57 = vadd.f32 %v3086_v26, %v1523_v56 }
 0x13b   : > { %v3000_v11 = vpop.f32.mrf.mxu0  ;;  %v3088_v44 = vpop.f32.mrf.mxu1 }
 0x13c   : > { %v4795_v54 = vadd.f32 %v3000_v11, %v2999_v38  ;;  %v3089_v43 = vadd.f32 %v3088_v44, %v3087_v60 }
 0x13d   : > { %v3002_v55 = vpop.f32.mrf.mxu0  ;;  %v3090_v53 = vpop.f32.mrf.mxu1  ;;  %2865 = vmatmul.mubr.msk.bf16.gmra.mxu1 %vm3770_vm3, %v4539_v3  ;;  %3439 = vmatmul.mubr.msk.bf16.gmra.mxu0 %vm4033_vm6, %v4195_v24  ;;  %v860_v3 = vsel %vm750_vm4, %v858_v41, %v859_v18 }
 0x13e   : > { %v4807_v25 = vadd.f32 %v3089_v43, %v1526_v21  ;;  %2083 = vmatprep.mubr.bf16.mxu1 %v857_v52  ;;  %3442 = vmatprep.mubr.msk.bf16.mxu0 %vm4033_vm6, %v4403_v59  ;;  %v2915_v46 = vpack.c.bf16 %v861_v48, %v860_v3  ;;  %v1547_v3 = vadd.f32 %v4764_v62, %v4668_v42 }
 0x13f   : > { %v3003_v24 = vpop.f32.mrf.mxu0  ;;  %v3091_v5 = vpop.f32.mrf.mxu1 }
 0x140   : > { %v4818_v1 = vadd.f32 %v3003_v24, %v3002_v55  ;;  %v3092_v0 = vadd.f32 %v3091_v5, %v3090_v53 }
 0x141   : > { %v3005_v39 = vpop.f32.mrf.mxu0  ;;  %v3093_v4 = vpop.f32.mrf.mxu1 }
 0x142   : > { %v4820_v22 = vadd.f32 %v3092_v0, %v1531_v30 }
 0x143   : > { %v3006_v59 = vpop.f32.mrf.mxu0  ;;  %v3094_v36 = vpop.f32.mrf.mxu1 }
 0x144   : > { %v4824_v35 = vadd.f32 %v3006_v59, %v3005_v39  ;;  %v3095_v56 = vadd.f32 %v3094_v36, %v3093_v4 }
 0x145   : > { %v3008_v26 = vpop.f32.mrf.mxu0  ;;  %v3096_v38 = vpop.f32.mrf.mxu1  ;;  %2868 = vmatmul.mubr.msk.bf16.gmra.mxu1 %vm3770_vm3, %v2867_v14  ;;  %3443 = vmatmul.mubr.msk.bf16.gmra.mxu0 %vm4033_vm6, %v2915_v46  ;;  %v1550_v14 = vadd.f32 %v4773_v13, %v4668_v42 }
 0x146   : > { %v4830_v20 = vadd.f32 %v3095_v56, %v1534_v19 }
 0x147   : > { %v3009_v60 = vpop.f32.mrf.mxu0  ;;  %v3097_v37 = vpop.f32.mrf.mxu1 }
 0x148   : > { %v4834_v52 = vadd.f32 %v3009_v60, %v3008_v26  ;;  %v3098_v27 = vadd.f32 %v3097_v37, %v3096_v38 }
 0x149   : > { %v3011_v41 = vpop.f32.mrf.mxu0  ;;  %v3099_v18 = vpop.f32.mrf.mxu1 }
 0x14a   : > { %v4836_v11 = vadd.f32 %v3098_v27, %v1539_v6 }
 0x14b   : > { %v3012_v44 = vpop.f32.mrf.mxu0  ;;  %v3100_v49 = vpop.f32.mrf.mxu1 }
 0x14c   : > { %v4840_v21 = vadd.f32 %v3012_v44, %v3011_v41  ;;  %v3101_v43 = vadd.f32 %v3100_v49, %v3099_v18 }
 0x14d   : > { %v3102_v55 = vpop.f32.mrf.mxu1  ;;  %v3166_v53 = vpop.f32.mrf.mxu0 }
 0x14e   : > { %v4842_v63 = vadd.f32 %v3101_v43, %v1542_v61 }
 0x14f   : > { %v3103_v7 = vpop.f32.mrf.mxu1  ;;  %v3167_v17 = vpop.f32.mrf.mxu0 }
 0x150   : > { %v3104_v48 = vadd.f32 %v3103_v7, %v3102_v55  ;;  %v3168_v24 = vadd.f32 %v3167_v17, %v3166_v53 }
 0x151   : > { %v3105_v5 = vpop.f32.mrf.mxu1  ;;  %v3169_v30 = vpop.f32.mrf.mxu0 }
 0x152   : > { %v4846_v0 = vadd.f32 %v3104_v48, %v1547_v3  ;;  %v4849_v12 = vadd.f32 %v3168_v24, %v4674_v29  ;;  %v1555_v29 = vadd.f32 %v4789_v45, %v4668_v42 }
 0x153   : > { %v3106_v39 = vpop.f32.mrf.mxu1  ;;  %v3170_v4 = vpop.f32.mrf.mxu0 }
 0x154   : > { %v3107_v46 = vadd.f32 %v3106_v39, %v3105_v5  ;;  %v3171_v59 = vadd.f32 %v3170_v4, %v3169_v30 }
 0x155   : > { %v3108_v36 = vpop.f32.mrf.mxu1  ;;  %v3172_v19 = vpop.f32.mrf.mxu0 }
 0x156   : > { %v4853_v56 = vadd.f32 %v3107_v46, %v1550_v14  ;;  %v4856_v62 = vadd.f32 %v3171_v59, %v4686_v23  ;;  %v1558_v23 = vadd.f32 %v4795_v54, %v4668_v42 }
 0x157   : > { %v3109_v26 = vpop.f32.mrf.mxu1  ;;  %v3173_v38 = vpop.f32.mrf.mxu0 }
 0x158   : > { %v3110_v60 = vadd.f32 %v3109_v26, %v3108_v36  ;;  %v3174_v37 = vadd.f32 %v3173_v38, %v3172_v19 }
 0x159   : > { %v3111_v6 = vpop.f32.mrf.mxu1  ;;  %v3175_v27 = vpop.f32.mrf.mxu0 }
 0x15a   : > { %v4860_v41 = vadd.f32 %v3110_v60, %v1555_v29  ;;  %v4863_v13 = vadd.f32 %v3174_v37, %v4696_v47  ;;  %v1563_v47 = vadd.f32 %v4818_v1, %v4668_v42 }
 0x15b   : > { %v3112_v18 = vpop.f32.mrf.mxu1  ;;  %v3176_v44 = vpop.f32.mrf.mxu0 }
 0x15c   : > { %v3113_v49 = vadd.f32 %v3112_v18, %v3111_v6  ;;  %v3177_v61 = vadd.f32 %v3176_v44, %v3175_v27 }
 0x15d   : > { %v3114_v43 = vpop.f32.mrf.mxu1  ;;  %v3178_v55 = vpop.f32.mrf.mxu0 }
 0x15e   : > { %v4867_v53 = vadd.f32 %v3113_v49, %v1558_v23  ;;  %v4870_v45 = vadd.f32 %v3177_v61, %v4708_v33  ;;  %v1566_v33 = vadd.f32 %v4824_v35, %v4668_v42 }
 0x15f   : > { %v3115_v7 = vpop.f32.mrf.mxu1  ;;  %v3179_v17 = vpop.f32.mrf.mxu0 }
 0x160   : > { %v3116_v3 = vadd.f32 %v3115_v7, %v3114_v43  ;;  %v3180_v48 = vadd.f32 %v3179_v17, %v3178_v55 }
 0x161   : > { %v3117_v24 = vpop.f32.mrf.mxu1  ;;  %v3181_v5 = vpop.f32.mrf.mxu0 }
 0x162   : > { %v4874_v30 = vadd.f32 %v3116_v3, %v1563_v47  ;;  %v4877_v54 = vadd.f32 %v3180_v48, %v4718_v51  ;;  %v1571_v51 = vadd.f32 %v4834_v52, %v4668_v42 }
 0x163   : > { %v3118_v39 = vpop.f32.mrf.mxu1  ;;  %v3182_v4 = vpop.f32.mrf.mxu0 }
 0x164   : > { %v3119_v14 = vadd.f32 %v3118_v39, %v3117_v24  ;;  %v3183_v46 = vadd.f32 %v3182_v4, %v3181_v5 }
 0x165   : > { %v3120_v59 = vpop.f32.mrf.mxu1  ;;  %v3184_v36 = vpop.f32.mrf.mxu0 }
 0x166   : > { %v4881_v19 = vadd.f32 %v3119_v14, %v1566_v33  ;;  %v4884_v1 = vadd.f32 %v3183_v46, %v4730_v32  ;;  %v1574_v32 = vadd.f32 %v4840_v21, %v4668_v42 }
 0x167   : > { %v3121_v26 = vpop.f32.mrf.mxu1  ;;  %v3185_v38 = vpop.f32.mrf.mxu0 }
 0x168   : > { %v3122_v29 = vadd.f32 %v3121_v26, %v3120_v59  ;;  %v3186_v60 = vadd.f32 %v3185_v38, %v3184_v36 }
 0x169   : > { %v3123_v37 = vpop.f32.mrf.mxu1  ;;  %v3187_v6 = vpop.f32.mrf.mxu0 }
 0x16a   : > { %v4888_v27 = vadd.f32 %v3122_v29, %v1571_v51  ;;  %v4891_v35 = vadd.f32 %v3186_v60, %v4741_v10  ;;  %v1579_v10 = vadd.f32 %v4601_v16, %v4668_v42 }
 0x16b   : > { %v3124_v18 = vpop.f32.mrf.mxu1  ;;  %v3188_v44 = vpop.f32.mrf.mxu0 }
 0x16c   : > { %v3125_v23 = vadd.f32 %v3124_v18, %v3123_v37  ;;  %v3189_v49 = vadd.f32 %v3188_v44, %v3187_v6 }
 0x16d   : > { %v3126_v61 = vpop.f32.mrf.mxu1  ;;  %v3190_v43 = vpop.f32.mrf.mxu0 }
 0x16e   : > { %v4895_v55 = vadd.f32 %v3125_v23, %v1574_v32  ;;  %v4898_v52 = vadd.f32 %v3189_v49, %v4756_v8  ;;  %v1582_v8 = vadd.f32 %v4605_v50, %v4668_v42 }
 0x16f   : > { %v3127_v7 = vpop.f32.mrf.mxu1  ;;  %v3191_v17 = vpop.f32.mrf.mxu0 }
 0x170   : > { %v3128_v47 = vadd.f32 %v3127_v7, %v3126_v61  ;;  %v3192_v3 = vadd.f32 %v3191_v17, %v3190_v43 }
 0x171   : > { %v3129_v48 = vpop.f32.mrf.mxu1  ;;  %v3193_v24 = vpop.f32.mrf.mxu0 }
 0x172   : > { %v4902_v5 = vadd.f32 %v3128_v47, %v1579_v10  ;;  %v4905_v21 = vadd.f32 %v3192_v3, %v4769_v2  ;;  %v1587_v2 = vadd.f32 %v4617_v34, %v4668_v42 }
 0x173   : > { %v3130_v39 = vpop.f32.mrf.mxu1  ;;  %v3194_v4 = vpop.f32.mrf.mxu0 }
 0x174   : > { %v3131_v33 = vadd.f32 %v3130_v39, %v3129_v48  ;;  %v3195_v14 = vadd.f32 %v3194_v4, %v3193_v24 }
 0x175   : > { %v3132_v46 = vpop.f32.mrf.mxu1  ;;  %v3196_v59 = vpop.f32.mrf.mxu0 }
 0x176   : > { %v4909_v36 = vadd.f32 %v3131_v33, %v1582_v8  ;;  %v4912_v16 = vadd.f32 %v3195_v14, %v4781_v28  ;;  %v1590_v28 = vadd.f32 %v4621_v9, %v4668_v42 }
 0x177   : > { %v3133_v26 = vpop.f32.mrf.mxu1  ;;  %v3197_v38 = vpop.f32.mrf.mxu0 }
 0x178   : > { %v3134_v51 = vadd.f32 %v3133_v26, %v3132_v46  ;;  %v3198_v29 = vadd.f32 %v3197_v38, %v3196_v59 }
 0x179   : > { %v3135_v60 = vpop.f32.mrf.mxu1  ;;  %v3199_v37 = vpop.f32.mrf.mxu0 }
 0x17a   : > { %v4916_v6 = vadd.f32 %v3134_v51, %v1587_v2  ;;  %v4919_v50 = vadd.f32 %v3198_v29, %v4791_v57  ;;  %v1595_v57 = vadd.f32 %v4633_v58, %v4668_v42 }
 0x17b   : > { %v3136_v18 = vpop.f32.mrf.mxu1  ;;  %v3200_v44 = vpop.f32.mrf.mxu0 }
 0x17c   : > { %v3137_v32 = vadd.f32 %v3136_v18, %v3135_v60  ;;  %v3201_v23 = vadd.f32 %v3200_v44, %v3199_v37 }
 0x17d   : > { %v3138_v49 = vpop.f32.mrf.mxu1  ;;  %v3202_v61 = vpop.f32.mrf.mxu0 }
 0x17e   : > { %v4923_v43 = vadd.f32 %v3137_v32, %v1590_v28  ;;  %v4926_v34 = vadd.f32 %v3201_v23, %v4807_v25  ;;  %v1598_v25 = vadd.f32 %v4637_v15, %v4668_v42 }
 0x17f   : > { %v3139_v7 = vpop.f32.mrf.mxu1  ;;  %v3203_v17 = vpop.f32.mrf.mxu0 }
 0x180   : > { %v3140_v10 = vadd.f32 %v3139_v7, %v3138_v49  ;;  %v3204_v47 = vadd.f32 %v3203_v17, %v3202_v61 }
 0x181   : > { %v3141_v3 = vpop.f32.mrf.mxu1  ;;  %v3205_v48 = vpop.f32.mrf.mxu0 }
 0x182   : > { %v4930_v24 = vadd.f32 %v3140_v10, %v1595_v57  ;;  %v4933_v9 = vadd.f32 %v3204_v47, %v4820_v22  ;;  %v1603_v22 = vadd.f32 %v4649_v40, %v4668_v42 }
 0x183   : > { %v3142_v39 = vpop.f32.mrf.mxu1  ;;  %v3206_v4 = vpop.f32.mrf.mxu0 }
 0x184   : > { %v3143_v8 = vadd.f32 %v3142_v39, %v3141_v3  ;;  %v3207_v33 = vadd.f32 %v3206_v4, %v3205_v48 }
 0x185   : > { %v3144_v14 = vpop.f32.mrf.mxu1  ;;  %v3208_v46 = vpop.f32.mrf.mxu0 }
 0x186   : > { %v4937_v59 = vadd.f32 %v3143_v8, %v1598_v25  ;;  %v4940_v58 = vadd.f32 %v3207_v33, %v4830_v20  ;;  %v1606_v20 = vadd.f32 %v4653_v31, %v4668_v42 }
 0x187   : > { %v3145_v26 = vpop.f32.mrf.mxu1  ;;  %v3209_v38 = vpop.f32.mrf.mxu0 }
 0x188   : > { %v3146_v2 = vadd.f32 %v3145_v26, %v3144_v14  ;;  %v3210_v51 = vadd.f32 %v3209_v38, %v3208_v46 }
 0x189   : > { %v3147_v29 = vpop.f32.mrf.mxu1  ;;  %v3211_v60 = vpop.f32.mrf.mxu0 }
 0x18a   : > { %v4944_v37 = vadd.f32 %v3146_v2, %v1603_v22  ;;  %v4947_v15 = vadd.f32 %v3210_v51, %v4836_v11 }
 0x18b   : > { %v3148_v18 = vpop.f32.mrf.mxu1  ;;  %v3212_v44 = vpop.f32.mrf.mxu0 }
 0x18c   : > { %v3149_v28 = vadd.f32 %v3148_v18, %v3147_v29  ;;  %v3213_v32 = vadd.f32 %v3212_v44, %v3211_v60 }
 0x18d   : > { %v3214_v23 = vpop.f32.mrf.mxu0  ;;  %v4951_v49 = vpop.f32.mrf.mxu1 }
 0x18e   : > { %v4953_v40 = vadd.f32 %v3149_v28, %v1606_v20  ;;  %v4956_v61 = vadd.f32 %v3213_v32, %v4842_v63 }
 0x18f   : > { %v3215_v7 = vpop.f32.mrf.mxu0  ;;  %v4958_v17 = vpop.f32.mrf.mxu1 }
 0x190   : > { %v3216_v11 = vadd.f32 %v3215_v7, %v3214_v23 }
 0x191   : > { %v3217_v57 = vpop.f32.mrf.mxu0  ;;  %v4960_v10 = vpop.f32.mrf.mxu1 }
 0x192   : > { %v4963_v47 = vadd.f32 %v3216_v11, %v4846_v0 }
 0x193   : > { %v3218_v31 = vpop.f32.mrf.mxu0  ;;  %v4965_v42 = vpop.f32.mrf.mxu1 }
 0x194   : > { %v3219_v3 = vadd.f32 %v3218_v31, %v3217_v57 }
 0x195   : > { %v3220_v48 = vpop.f32.mrf.mxu0  ;;  %v4967_v39 = vpop.f32.mrf.mxu1 }
 0x196   : > { %v4970_v63 = vadd.f32 %v3219_v3, %v4853_v56 }
 0x197   : > { %v3221_v4 = vpop.f32.mrf.mxu0  ;;  %v4972_v25 = vpop.f32.mrf.mxu1 }
 0x198   : > { %5275 = vst [vmem:[#allocation3_spill] sm:$0xff] %v4970_v63  ;;  %v3222_v8 = vadd.f32 %v3221_v4, %v3220_v48 }
 0x199   : > { %v3223_v33 = vpop.f32.mrf.mxu0  ;;  %v4974_v14 = vpop.f32.mrf.mxu1 }
 0x19a   : > { %v4977_v0 = vadd.f32 %v3222_v8, %v4860_v41 }
 0x19b   : > { %v3224_v46 = vpop.f32.mrf.mxu0  ;;  %v4979_v26 = vpop.f32.mrf.mxu1 }
 0x19c   : > { %v3225_v38 = vadd.f32 %v3224_v46, %v3223_v33 }
 0x19d   : > { %v3226_v22 = vpop.f32.mrf.mxu0  ;;  %v4981_v2 = vpop.f32.mrf.mxu1 }
 0x19e   : > { %v4984_v56 = vadd.f32 %v3225_v38, %v4867_v53 }
 0x19f   : > { %v3227_v51 = vpop.f32.mrf.mxu0  ;;  %v4986_v29 = vpop.f32.mrf.mxu1 }
 0x1a0   : > { %v3228_v60 = vadd.f32 %v3227_v51, %v3226_v22 }
 0x1a1   : > { %v3229_v18 = vpop.f32.mrf.mxu0  ;;  %v4988_v44 = vpop.f32.mrf.mxu1 }
 0x1a2   : > { %v4991_v41 = vadd.f32 %v3228_v60, %v4874_v30 }
 0x1a3   : > { %v3230_v20 = vpop.f32.mrf.mxu0  ;;  %v4993_v28 = vpop.f32.mrf.mxu1 }
 0x1a4   : > { %5276 = vst [vmem:[#allocation2_spill] sm:$0xff] %v4991_v41  ;;  %v3231_v32 = vadd.f32 %v3230_v20, %v3229_v18 }
 0x1a5   : > { %v3232_v23 = vpop.f32.mrf.mxu0  ;;  %v4995_v7 = vpop.f32.mrf.mxu1 }
 0x1a6   : > { %v4998_v53 = vadd.f32 %v3231_v32, %v4881_v19 }
 0x1a7   : > { %v3233_v11 = vpop.f32.mrf.mxu0  ;;  %v5000_v57 = vpop.f32.mrf.mxu1 }
 0x1a8   : > { %5277 = vst [vmem:[#allocation4_spill] sm:$0xff] %v4998_v53  ;;  %v3234_v31 = vadd.f32 %v3233_v11, %v3232_v23 }
 0x1a9   : > { %v3235_v3 = vpop.f32.mrf.mxu0  ;;  %v5002_v48 = vpop.f32.mrf.mxu1 }
 0x1aa   : > { %v5005_v30 = vadd.f32 %v3234_v31, %v4888_v27 }
 0x1ab   : > { %v3236_v4 = vpop.f32.mrf.mxu0  ;;  %v5007_v8 = vpop.f32.mrf.mxu1 }
 0x1ac   : > { %5278 = vst [vmem:[#allocation5_spill] sm:$0xff] %v5005_v30  ;;  %v3237_v33 = vadd.f32 %v3236_v4, %v3235_v3 }
 0x1ad   : > { %v3238_v46 = vpop.f32.mrf.mxu0  ;;  %v5009_v38 = vpop.f32.mrf.mxu1 }
 0x1ae   : > { %v5012_v19 = vadd.f32 %v3237_v33, %v4895_v55 }
 0x1af   : > { %v3239_v22 = vpop.f32.mrf.mxu0  ;;  %v5014_v51 = vpop.f32.mrf.mxu1 }
 0x1b0   : > { %5279 = vst [vmem:[#allocation6_spill] sm:$0xff] %v5012_v19  ;;  %v3240_v60 = vadd.f32 %v3239_v22, %v3238_v46 }
 0x1b1   : > { %v3241_v18 = vpop.f32.mrf.mxu0  ;;  %v5016_v20 = vpop.f32.mrf.mxu1 }
 0x1b2   : > { %v5019_v27 = vadd.f32 %v3240_v60, %v4902_v5 }
 0x1b3   : > { %v3242_v32 = vpop.f32.mrf.mxu0  ;;  %v5021_v23 = vpop.f32.mrf.mxu1 }
 0x1b4   : > { %5280 = vst [vmem:[#allocation7_spill] sm:$0xff] %v5019_v27  ;;  %v3243_v11 = vadd.f32 %v3242_v32, %v3241_v18 }
 0x1b5   : > { %v3244_v31 = vpop.f32.mrf.mxu0  ;;  %v5023_v3 = vpop.f32.mrf.mxu1 }
 0x1b6   : > { %v5026_v55 = vadd.f32 %v3243_v11, %v4909_v36 }
 0x1b7   : > { %v3245_v4 = vpop.f32.mrf.mxu0  ;;  %v5028_v33 = vpop.f32.mrf.mxu1 }
 0x1b8   : > { %5281 = vst [vmem:[#allocation8_spill] sm:$0xff] %v5026_v55  ;;  %v3246_v46 = vadd.f32 %v3245_v4, %v3244_v31 }
 0x1b9   : > { %v3247_v22 = vpop.f32.mrf.mxu0  ;;  %v5030_v53 = vpop.f32.mrf.mxu1 }
 0x1ba   : > { %v5033_v5 = vadd.f32 %v3246_v46, %v4916_v6 }
 0x1bb   : > { %v3248_v60 = vpop.f32.mrf.mxu0  ;;  %v5035_v27 = vpop.f32.mrf.mxu1 }
 0x1bc   : > { %5282 = vst [vmem:[#allocation9_spill] sm:$0xff] %v5033_v5  ;;  %v3249_v18 = vadd.f32 %v3248_v60, %v3247_v22 }
 0x1bd   : > { %v3250_v32 = vpop.f32.mrf.mxu0  ;;  %v5037_v19 = vpop.f32.mrf.mxu1 }
 0x1be   : > { %v5040_v36 = vadd.f32 %v3249_v18, %v4923_v43 }
 0x1bf   : > { %v3251_v11 = vpop.f32.mrf.mxu0  ;;  %v5042_v55 = vpop.f32.mrf.mxu1 }
 0x1c0   : > { %5283 = vst [vmem:[#allocation10_spill] sm:$0xff] %v5040_v36  ;;  %v3252_v31 = vadd.f32 %v3251_v11, %v3250_v32  ;;  %v3286_v32 = vadd.f32 %v4972_v25, %v4967_v39  ;;  %v3289_v39 = vadd.f32 %v4979_v26, %v4974_v14  ;;  %v2253_v14 = vld [vmem:[%s5071_s21] sm:$0xff] }
 0x1c1   : > { %v3253_v4 = vpop.f32.mrf.mxu0  ;;  %v5044_v41 = vpop.f32.mrf.mxu1 }
 0x1c2   : > { %v5047_v6 = vadd.f32 %v3252_v31, %v4930_v24  ;;  %v3280_v31 = vadd.f32 %v4958_v17, %v4951_v49  ;;  %v1974_v49 = vadd.f32 %v3286_v32, %v4863_v13  ;;  %v3298_v13 = vadd.f32 %v5000_v57, %v4995_v7  ;;  %v2256_v32 = vld [vmem:[%s5071_s21 + $0x18] sm:$0xff] }
 0x1c3   : > { %v3254_v46 = vpop.f32.mrf.mxu0  ;;  %v5049_v5 = vpop.f32.mrf.mxu1  ;;  %v1977_v26 = vadd.f32 %v3289_v39, %v4870_v45  ;;  %v3292_v7 = vadd.f32 %v4986_v29, %v4981_v2  ;;  %v3295_v29 = vadd.f32 %v4993_v28, %v4988_v44  ;;  %v3310_v44 = vadd.f32 %v5028_v33, %v5023_v3 }
 0x1c4   : > { %v3255_v22 = vadd.f32 %v3254_v46, %v3253_v4  ;;  %v1990_v2 = vadd.f32 %v3298_v13, %v4891_v35 }
 0x1c5   : > { %v3256_v60 = vpop.f32.mrf.mxu0  ;;  %v5051_v30 = vpop.f32.mrf.mxu1 }
 0x1c6   : > { %v5054_v43 = vadd.f32 %v3255_v22, %v4937_v59 }
 0x1c7   : > { %v3257_v18 = vpop.f32.mrf.mxu0  ;;  %v5056_v36 = vpop.f32.mrf.mxu1 }
 0x1c8   : > { %5284 = vst [vmem:[#allocation11_spill] sm:$0xff] %v5054_v43  ;;  %v3258_v11 = vadd.f32 %v3257_v18, %v3256_v60  ;;  %v2255_v60 = vld [vmem:[%s5071_s21 + $0x10] sm:$0xff]  ;;  %v1966_v43 = vadd.f32 %v3280_v31, %v4849_v12 }
 0x1c9   : > { %v3259_v63 = vpop.f32.mrf.mxu0  ;;  %v5060_v24 = vpop.f32.mrf.mxu1 }
 0x1ca   : > { %v5065_v4 = vadd.f32 %v3258_v11, %v4944_v37  ;;  %v3283_v37 = vadd.f32 %v4965_v42, %v4960_v10 }
 0x1cb   : > { %v3260_v59 = vpop.f32.mrf.mxu0  ;;  %v5073_v46 = vpop.f32.mrf.mxu1 }
 0x1cc   : > { %5285 = vst [vmem:[#allocation12_spill] sm:$0xff] %v5065_v4  ;;  %v3261_v25 = vadd.f32 %v3260_v59, %v3259_v63  ;;  %v1969_v31 = vadd.f32 %v3283_v37, %v4856_v62  ;;  %v3301_v59 = vadd.f32 %v5007_v8, %v5002_v48 }
 0x1cd   : > { %v5080_v17 = vpop.f32.mrf.mxu1  ;;  %v3416_v22 = vpop.f32.mrf.mxu0 }
 0x1ce   : > { %v5084_v18 = vadd.f32 %v3261_v25, %v4953_v40  ;;  %v2135_v11 = vadd.f32 %v3416_v22, %v1974_v49  ;;  %v2254_v49 = vld [vmem:[%s5071_s21 + $0x8] sm:$0xff]  ;;  %v1993_v35 = vadd.f32 %v3301_v59, %v4898_v52 }
 0x1cf   : > { %v5087_v4 = vpop.f32.mrf.mxu1  ;;  %v2126_v63 = vpop.f32.mrf.mxu0 }
 0x1d0   : > { %v2287_v10 = vadd.f32 %v2255_v60, %v2135_v11  ;;  %v2127_v42 = vadd.f32 %v2126_v63, %v1966_v43  ;;  %v2259_v63 = vld [vmem:[%s5071_s21 + $0x30] sm:$0xff] }
 0x1d1   : > { %v5099_v40 = vpop.f32.mrf.mxu1  ;;  %v3417_v12 = vpop.f32.mrf.mxu0 }
 0x1d2   : > { %v2319_v57 = vmax.f32 %v2287_v10, 0.0  ;;  %v2285_v43 = vadd.f32 %v2253_v14, %v2127_v42  ;;  %v2138_v45 = vadd.f32 %v3417_v12, %v1977_v26  ;;  %v1982_v10 = vadd.f32 %v3292_v7, %v4877_v54  ;;  %v2257_v12 = vld [vmem:[%s5071_s21 + $0x20] sm:$0xff] }
 0x1d3   : > { %v5107_v39 = vpop.f32.mrf.mxu1  ;;  %v2129_v25 = vpop.f32.mrf.mxu0  ;;  %v1985_v54 = vadd.f32 %v3295_v29, %v4884_v1  ;;  %v3304_v7 = vadd.f32 %v5014_v51, %v5009_v38  ;;  %v2006_v38 = vadd.f32 %v3310_v44, %v4919_v50  ;;  %v3307_v51 = vadd.f32 %v5021_v23, %v5016_v20  ;;  %v2263_v29 = vld [vmem:[%s5071_s21 + $0x50] sm:$0xff]  ;;  %v2264_v44 = vld [vmem:[%s5071_s21 + $0x58] sm:$0xff] }
 0x1d4   : > { %2351 = vst [vmem:[%s5097_s28 + $0x10] sm:$0xff] %v2319_v57  ;;  %v2317_v22 = vmax.f32 %v2285_v43, 0.0  ;;  %v2288_v60 = vadd.f32 %v2256_v32, %v2138_v45  ;;  %v2130_v62 = vadd.f32 %v2129_v25, %v1969_v31  ;;  %v2260_v43 = vld [vmem:[%s5071_s21 + $0x38] sm:$0xff]  ;;  %v3313_v45 = vadd.f32 %v5035_v27, %v5030_v53 }
 0x1d5   : > { %v5114_v37 = vpop.f32.mrf.mxu1  ;;  %v3420_v11 = vpop.f32.mrf.mxu0  ;;  %v3322_v20 = vadd.f32 %v5056_v36, %v5051_v30 }
 0x1d6   : > { %2349 = vst [vmem:[%s5097_s28] sm:$0xff] %v2317_v22  ;;  %v2320_v48 = vmax.f32 %v2288_v60, 0.0  ;;  %v2286_v8 = vadd.f32 %v2254_v49, %v2130_v62  ;;  %v2151_v14 = vadd.f32 %v3420_v11, %v1990_v2  ;;  %v2258_v49 = vld [vmem:[%s5071_s21 + $0x28] sm:$0xff]  ;;  %v2009_v50 = vadd.f32 %v3313_v45, %v4926_v34 }
 0x1d7   : > { %v5119_v42 = vpop.f32.mrf.mxu1  ;;  %v2142_v26 = vpop.f32.mrf.mxu0 }
 0x1d8   : > { %2352 = vst [vmem:[%s5097_s28 + $0x18] sm:$0xff] %v2320_v48  ;;  %v2318_v28 = vmax.f32 %v2286_v8, 0.0  ;;  %v2291_v13 = vadd.f32 %v2259_v63, %v2151_v14  ;;  %v2143_v32 = vadd.f32 %v2142_v26, %v1982_v10  ;;  %v1998_v63 = vadd.f32 %v3304_v7, %v4905_v21  ;;  %v2261_v14 = vld [vmem:[%s5071_s21 + $0x40] sm:$0xff] }
 0x1d9   : > { %v5126_v31 = vpop.f32.mrf.mxu1  ;;  %v3421_v57 = vpop.f32.mrf.mxu0  ;;  %v2001_v21 = vadd.f32 %v3307_v51, %v4912_v16 }
 0x1da   : > { %2350 = vst [vmem:[%s5097_s28 + $0x8] sm:$0xff] %v2318_v28  ;;  %v2323_v52 = vmax.f32 %v2291_v13, 0.0  ;;  %v2289_v3 = vadd.f32 %v2257_v12, %v2143_v32  ;;  %v2154_v33 = vadd.f32 %v3421_v57, %v1993_v35  ;;  %v3316_v28 = vadd.f32 %v5042_v55, %v5037_v19 }
 0x1db   : > { %v5135_v59 = vpop.f32.mrf.mxu1  ;;  %v2145_v25 = vpop.f32.mrf.mxu0  ;;  %v3325_v13 = vadd.f32 %v5073_v46, %v5060_v24  ;;  %v2022_v19 = vadd.f32 %v3322_v20, %v4947_v15  ;;  %v3319_v55 = vadd.f32 %v5049_v5, %v5044_v41  ;;  %v3334_v15 = vadd.f32 %v5119_v42, %v5114_v37 }
 0x1dc   : > { %2355 = vst [vmem:[%s5097_s28 + $0x30] sm:$0xff] %v2323_v52  ;;  %v2321_v22 = vmax.f32 %v2289_v3, 0.0  ;;  %v2292_v1 = vadd.f32 %v2260_v43, %v2154_v33  ;;  %v2146_v60 = vadd.f32 %v2145_v25, %v1985_v54  ;;  %v2262_v43 = vld [vmem:[%s5071_s21 + $0x48] sm:$0xff]  ;;  %v2267_v33 = vld [vmem:[%s5071_s21 + $0x70] sm:$0xff]  ;;  %v2014_v25 = vadd.f32 %v3316_v28, %v4933_v9  ;;  %v2269_v28 = vld [vmem:[%s5071_s21 + $0x80] sm:$0xff] }
 0x1dd   : > { %v5142_v62 = vpop.f32.mrf.mxu1  ;;  %v3424_v2 = vpop.f32.mrf.mxu0  ;;  %v3328_v9 = vadd.f32 %v5087_v4, %v5080_v17  ;;  %v3337_v42 = vadd.f32 %v5135_v59, %v5126_v31  ;;  %v2038_v4 = vadd.f32 %v3334_v15, %v4977_v0  ;;  %v3331_v17 = vadd.f32 %v5107_v39, %v5099_v40 }
 0x1de   : > { %2353 = vst [vmem:[%s5097_s28 + $0x20] sm:$0xff] %v2321_v22  ;;  %v2324_v53 = vmax.f32 %v2292_v1, 0.0  ;;  %v2290_v27 = vadd.f32 %v2258_v49, %v2146_v60  ;;  %v2167_v11 = vadd.f32 %v3424_v2, %v2006_v38  ;;  %v2265_v1 = vld [vmem:[%s5071_s21 + $0x60] sm:$0xff]  ;;  %v2025_v60 = vadd.f32 %v3325_v13, %v4956_v61 }
 0x1df   : > { %v5147_v48 = vpop.f32.mrf.mxu1  ;;  %v2158_v8 = vpop.f32.mrf.mxu0 }
 0x1e0   : > { %2356 = vst [vmem:[%s5097_s28 + $0x38] sm:$0xff] %v2324_v53  ;;  %v2322_v23 = vmax.f32 %v2290_v27, 0.0  ;;  %v2295_v10 = vadd.f32 %v2263_v29, %v2167_v11  ;;  %v2159_v26 = vadd.f32 %v2158_v8, %v1998_v63  ;;  %v2268_v29 = vld [vmem:[%s5071_s21 + $0x78] sm:$0xff]  ;;  %v2017_v53 = vadd.f32 %v3319_v55, %v4940_v58  ;;  %v2266_v8 = vld [vmem:[%s5071_s21 + $0x68] sm:$0xff] }
 0x1e1   : > { %v5154_v12 = vpop.f32.mrf.mxu1  ;;  %v3425_v35 = vpop.f32.mrf.mxu0 }
 0x1e2   : > { %2354 = vst [vmem:[%s5097_s28 + $0x28] sm:$0xff] %v2322_v23  ;;  %v2327_v34 = vmax.f32 %v2295_v10, 0.0  ;;  %v2293_v30 = vadd.f32 %v2261_v14, %v2159_v26  ;;  %v2170_v36 = vadd.f32 %v3425_v35, %v2009_v50  ;;  %v2271_v10 = vld [vmem:[%s5071_s21 + $0x90] sm:$0xff]  ;;  %v2030_v35 = vadd.f32 %v3328_v9, %v4963_v47 }
 0x1e3   : > { %v5163_v32 = vpop.f32.mrf.mxu1  ;;  %v2161_v57 = vpop.f32.mrf.mxu0  ;;  %v3340_v47 = vadd.f32 %v5147_v48, %v5142_v62 }
 0x1e4   : > { %2359 = vst [vmem:[%s5097_s28 + $0x50] sm:$0xff] %v2327_v34  ;;  %v2325_v54 = vmax.f32 %v2293_v30, 0.0  ;;  %v2296_v16 = vadd.f32 %v2264_v44, %v2170_v36  ;;  %v2162_v7 = vadd.f32 %v2161_v57, %v2001_v21  ;;  %v2041_v34 = vadd.f32 %v3337_v42, %v4984_v56  ;;  %v2272_v57 = vld [vmem:[%s5071_s21 + $0x98] sm:$0xff] }
 0x1e5   : > { %v3344_v52 = vpop.f32.mrf.mxu1  ;;  %v3428_v3 = vpop.f32.mrf.mxu0  ;;  %v3343_v62 = vadd.f32 %v5163_v32, %v5154_v12  ;;  %v2276_v42 = vld [vmem:[%s5071_s21 + $0xb8] sm:$0xff] }
 0x1e6   : > { %2357 = vst [vmem:[%s5097_s28 + $0x40] sm:$0xff] %v2325_v54  ;;  %v2328_v24 = vmax.f32 %v2296_v16, 0.0  ;;  %v2294_v46 = vadd.f32 %v2262_v43, %v2162_v7  ;;  %v2183_v45 = vadd.f32 %v3428_v3, %v2022_v19  ;;  %v5286_v43 = vld [vmem:[#allocation3_spill] sm:$0xff] }
 0x1e7   : > { %v3345_v49 = vpop.f32.mrf.mxu1  ;;  %v2174_v22 = vpop.f32.mrf.mxu0  ;;  %v2033_v54 = vadd.f32 %v3331_v17, %v5286_v43  ;;  %v2270_v3 = vld [vmem:[%s5071_s21 + $0x88] sm:$0xff] }
 0x1e8   : > { %2360 = vst [vmem:[%s5097_s28 + $0x58] sm:$0xff] %v2328_v24  ;;  %v2326_v41 = vmax.f32 %v2294_v46, 0.0  ;;  %v2299_v5 = vadd.f32 %v2267_v33, %v2183_v45  ;;  %v2175_v38 = vadd.f32 %v2174_v22, %v2014_v25  ;;  %v3346_v0 = vadd.f32 %v3345_v49, %v3344_v52  ;;  %v5287_v45 = vld [vmem:[#allocation5_spill] sm:$0xff]  ;;  %v2275_v22 = vld [vmem:[%s5071_s21 + $0xb0] sm:$0xff] }
 0x1e9   : > { %v3347_v51 = vpop.f32.mrf.mxu1  ;;  %v3429_v2 = vpop.f32.mrf.mxu0 }
 0x1ea   : > { %2358 = vst [vmem:[%s5097_s28 + $0x48] sm:$0xff] %v2326_v41  ;;  %v2331_v61 = vmax.f32 %v2299_v5, 0.0  ;;  %v2297_v27 = vadd.f32 %v2265_v1, %v2175_v38  ;;  %v2186_v37 = vadd.f32 %v3429_v2, %v2025_v60  ;;  %v2054_v25 = vadd.f32 %v3346_v0, %v5287_v45  ;;  %v5288_v41 = vld [vmem:[#allocation2_spill] sm:$0xff] }
 0x1eb   : > { %v3348_v11 = vpop.f32.mrf.mxu1  ;;  %v2177_v63 = vpop.f32.mrf.mxu0  ;;  %v2046_v5 = vadd.f32 %v3340_v47, %v5288_v41  ;;  %v2273_v2 = vld [vmem:[%s5071_s21 + $0xa0] sm:$0xff] }
 0x1ec   : > { %2363 = vst [vmem:[%s5097_s28 + $0x70] sm:$0xff] %v2331_v61  ;;  %v2329_v14 = vmax.f32 %v2297_v27, 0.0  ;;  %v2300_v50 = vadd.f32 %v2268_v29, %v2186_v37  ;;  %v2178_v58 = vadd.f32 %v2177_v63, %v2017_v53  ;;  %v3349_v19 = vadd.f32 %v3348_v11, %v3347_v51  ;;  %v5289_v29 = vld [vmem:[#allocation6_spill] sm:$0xff]  ;;  %v5290_v11 = vld [vmem:[#allocation4_spill] sm:$0xff] }
 0x1ed   : > { %v3350_v20 = vpop.f32.mrf.mxu1  ;;  %v3432_v23 = vpop.f32.mrf.mxu0  ;;  %v2049_v63 = vadd.f32 %v3343_v62, %v5290_v11 }
 0x1ee   : > { %2361 = vst [vmem:[%s5097_s28 + $0x60] sm:$0xff] %v2329_v14  ;;  %v2332_v31 = vmax.f32 %v2300_v50, 0.0  ;;  %v2298_v59 = vadd.f32 %v2266_v8, %v2178_v58  ;;  %v2199_v26 = vadd.f32 %v3432_v23, %v2038_v4  ;;  %v2057_v53 = vadd.f32 %v3349_v19, %v5289_v29  ;;  %v2274_v23 = vld [vmem:[%s5071_s21 + $0xa8] sm:$0xff] }
 0x1ef   : > { %v3351_v44 = vpop.f32.mrf.mxu1  ;;  %v2190_v21 = vpop.f32.mrf.mxu0 }
 0x1f0   : > { %2364 = vst [vmem:[%s5097_s28 + $0x78] sm:$0xff] %v2332_v31  ;;  %v2330_v40 = vmax.f32 %v2298_v59, 0.0  ;;  %v2303_v39 = vadd.f32 %v2271_v10, %v2199_v26  ;;  %v2191_v30 = vadd.f32 %v2190_v21, %v2030_v35  ;;  %v3352_v8 = vadd.f32 %v3351_v44, %v3350_v20  ;;  %v5291_v10 = vld [vmem:[#allocation9_spill] sm:$0xff] }
 0x1f1   : > { %v3353_v36 = vpop.f32.mrf.mxu1  ;;  %v3433_v13 = vpop.f32.mrf.mxu0 }
 0x1f2   : > { %2362 = vst [vmem:[%s5097_s28 + $0x68] sm:$0xff] %v2330_v40  ;;  %v2335_v16 = vmax.f32 %v2303_v39, 0.0  ;;  %v2301_v56 = vadd.f32 %v2269_v28, %v2191_v30  ;;  %v2202_v7 = vadd.f32 %v3433_v13, %v2041_v34  ;;  %v2279_v34 = vld [vmem:[%s5071_s21 + $0xd0] sm:$0xff]  ;;  %v5292_v30 = vld [vmem:[#allocation7_spill] sm:$0xff] }
 0x1f3   : > { %v3354_v55 = vpop.f32.mrf.mxu1  ;;  %v2193_v52 = vpop.f32.mrf.mxu0  ;;  %v2062_v13 = vadd.f32 %v3352_v8, %v5292_v30  ;;  %v5296_v8 = vld [vmem:[#allocation11_spill] sm:$0xff] }
 0x1f4   : > { %2367 = vst [vmem:[%s5097_s28 + $0x90] sm:$0xff] %v2335_v16  ;;  %v2333_v33 = vmax.f32 %v2301_v56, 0.0  ;;  %v2304_v24 = vadd.f32 %v2272_v57, %v2202_v7  ;;  %v2194_v46 = vadd.f32 %v2193_v52, %v2033_v54  ;;  %v3355_v28 = vadd.f32 %v3354_v55, %v3353_v36  ;;  %v2277_v54 = vld [vmem:[%s5071_s21 + $0xc0] sm:$0xff]  ;;  %v2280_v52 = vld [vmem:[%s5071_s21 + $0xd8] sm:$0xff] }
 0x1f5   : > { %v3356_v48 = vpop.f32.mrf.mxu1  ;;  %v3436_v49 = vpop.f32.mrf.mxu0  ;;  %v5293_v56 = vld [vmem:[#allocation10_spill] sm:$0xff] }
 0x1f6   : > { %2365 = vst [vmem:[%s5097_s28 + $0x80] sm:$0xff] %v2333_v33  ;;  %v2336_v1 = vmax.f32 %v2304_v24, 0.0  ;;  %v2302_v60 = vadd.f32 %v2270_v3, %v2194_v46  ;;  %v2215_v15 = vadd.f32 %v3436_v49, %v2054_v25  ;;  %v5294_v3 = vld [vmem:[#allocation8_spill] sm:$0xff]  ;;  %v2278_v49 = vld [vmem:[%s5071_s21 + $0xc8] sm:$0xff] }
 0x1f7   : > { %v3357_v38 = vpop.f32.mrf.mxu1  ;;  %v2206_v51 = vpop.f32.mrf.mxu0  ;;  %v2065_v33 = vadd.f32 %v3355_v28, %v5294_v3 }
 0x1f8   : > { %2368 = vst [vmem:[%s5097_s28 + $0x98] sm:$0xff] %v2336_v1  ;;  %v2334_v9 = vmax.f32 %v2302_v60, 0.0  ;;  %v2307_v12 = vadd.f32 %v2275_v22, %v2215_v15  ;;  %v3358_v32 = vadd.f32 %v3357_v38, %v3356_v48  ;;  %v2207_v61 = vadd.f32 %v2206_v51, %v2046_v5 }
 0x1f9   : > { %v3359_v27 = vpop.f32.mrf.mxu1  ;;  %v3437_v37 = vpop.f32.mrf.mxu0 }
 0x1fa   : > { %2366 = vst [vmem:[%s5097_s28 + $0x88] sm:$0xff] %v2334_v9  ;;  %v2339_v14 = vmax.f32 %v2307_v12, 0.0  ;;  %v2305_v50 = vadd.f32 %v2273_v2, %v2207_v61  ;;  %v2218_v58 = vadd.f32 %v3437_v37, %v2057_v53  ;;  %v2070_v31 = vadd.f32 %v3358_v32, %v5291_v10  ;;  %v2281_v9 = vld [vmem:[%s5071_s21 + $0xe0] sm:$0xff] }
 0x1fb   : > { %v3360_v4 = vpop.f32.mrf.mxu1  ;;  %v2209_v17 = vpop.f32.mrf.mxu0 }
 0x1fc   : > { %2371 = vst [vmem:[%s5097_s28 + $0xb0] sm:$0xff] %v2339_v14  ;;  %v2337_v59 = vmax.f32 %v2305_v50, 0.0  ;;  %v2308_v26 = vadd.f32 %v2276_v42, %v2218_v58  ;;  %v3361_v35 = vadd.f32 %v3360_v4, %v3359_v27  ;;  %v2210_v21 = vadd.f32 %v2209_v17, %v2049_v63  ;;  %v5295_v42 = vld [vmem:[#allocation12_spill] sm:$0xff]  ;;  %v2282_v4 = vld [vmem:[%s5071_s21 + $0xe8] sm:$0xff] }
 0x1fd   : > { %v3362_v20 = vpop.f32.mrf.mxu1  ;;  %v3440_v44 = vpop.f32.mrf.mxu0  ;;  %v2283_v50 = vld [vmem:[%s5071_s21 + $0xf0] sm:$0xff] }
 0x1fe   : > { %2369 = vst [vmem:[%s5097_s28 + $0xa0] sm:$0xff] %v2337_v59  ;;  %v2340_v0 = vmax.f32 %v2308_v26, 0.0  ;;  %v2306_v40 = vadd.f32 %v2274_v23, %v2210_v21  ;;  %v2231_v39 = vadd.f32 %v3440_v44, %v2070_v31  ;;  %v2073_v7 = vadd.f32 %v3361_v35, %v5293_v56  ;;  %v2284_v21 = vld [vmem:[%s5071_s21 + $0xf8] sm:$0xff] }
 0x1ff   : > { %v3363_v57 = vpop.f32.mrf.mxu1  ;;  %v2222_v43 = vpop.f32.mrf.mxu0 }
 0x200   : > { %2372 = vst [vmem:[%s5097_s28 + $0xb8] sm:$0xff] %v2340_v0  ;;  %v2338_v47 = vmax.f32 %v2306_v40, 0.0  ;;  %v2311_v16 = vadd.f32 %v2279_v34, %v2231_v39  ;;  %v2223_v36 = vadd.f32 %v2222_v43, %v2062_v13  ;;  %v3364_v46 = vadd.f32 %v3363_v57, %v3362_v20 }
 0x201   : > { %v3365_v19 = vpop.f32.mrf.mxu1  ;;  %v3441_v55 = vpop.f32.mrf.mxu0 }
 0x202   : > { %2370 = vst [vmem:[%s5097_s28 + $0xa8] sm:$0xff] %v2338_v47  ;;  %v2343_v24 = vmax.f32 %v2311_v16, 0.0  ;;  %v2309_v45 = vadd.f32 %v2277_v54, %v2223_v36  ;;  %v2234_v25 = vadd.f32 %v3441_v55, %v2073_v7  ;;  %v2078_v2 = vadd.f32 %v3364_v46, %v5047_v6 }
 0x203   : > { %v3366_v62 = vpop.f32.mrf.mxu1  ;;  %v2225_v48 = vpop.f32.mrf.mxu0 }
 0x204   : > { %2375 = vst [vmem:[%s5097_s28 + $0xd0] sm:$0xff] %v2343_v24  ;;  %v2341_v22 = vmax.f32 %v2309_v45, 0.0  ;;  %v2312_v1 = vadd.f32 %v2280_v52, %v2234_v25  ;;  %v2226_v60 = vadd.f32 %v2225_v48, %v2065_v33  ;;  %v3367_v38 = vadd.f32 %v3366_v62, %v3365_v19 }
 0x205   : > { %v3368_v15 = vpop.f32.mrf.mxu1  ;;  %v3444_v41 = vpop.f32.mrf.mxu0 }
 0x206   : > { %2373 = vst [vmem:[%s5097_s28 + $0xc0] sm:$0xff] %v2341_v22  ;;  %v2344_v5 = vmax.f32 %v2312_v1, 0.0  ;;  %v2310_v51 = vadd.f32 %v2278_v49, %v2226_v60  ;;  %v2081_v14 = vadd.f32 %v3367_v38, %v5296_v8 }
 0x207   : > { %v3369_v29 = vpop.f32.mrf.mxu1  ;;  %v2238_v53 = vpop.f32.mrf.mxu0 }
 0x208   : > { %2376 = vst [vmem:[%s5097_s28 + $0xd8] sm:$0xff] %v2344_v5  ;;  %v2342_v12 = vmax.f32 %v2310_v51, 0.0  ;;  %v3370_v32 = vadd.f32 %v3369_v29, %v3368_v15  ;;  %v2239_v61 = vadd.f32 %v2238_v53, %v2078_v2 }
 0x209   : > { %v3371_v27 = vpop.f32.mrf.mxu1  ;;  %v3445_v37 = vpop.f32.mrf.mxu0 }
 0x20a   : > { %2374 = vst [vmem:[%s5097_s28 + $0xc8] sm:$0xff] %v2342_v12  ;;  %v2086_v11 = vadd.f32 %v3370_v32, %v5295_v42  ;;  %v2313_v63 = vadd.f32 %v2281_v9, %v2239_v61 }
 0x20b   : > { %v3372_v6 = vpop.f32.mrf.mxu1  ;;  %v2241_v58 = vpop.f32.mrf.mxu0 }
 0x20c   : > { %v2247_v17 = vadd.f32 %v3444_v41, %v2086_v11  ;;  %v2345_v23 = vmax.f32 %v2313_v63, 0.0  ;;  %v3373_v10 = vadd.f32 %v3372_v6, %v3371_v27  ;;  %v2242_v31 = vadd.f32 %v2241_v58, %v2081_v14 }
 0x20e   : > { %v2315_v59 = vadd.f32 %v2283_v50, %v2247_v17  ;;  %2377 = vst [vmem:[%s5097_s28 + $0xe0] sm:$0xff] %v2345_v23  ;;  %v2089_v26 = vadd.f32 %v3373_v10, %v5084_v18  ;;  %v2314_v35 = vadd.f32 %v2282_v4, %v2242_v31 }
 0x210   : > { %v2347_v28 = vmax.f32 %v2315_v59, 0.0  ;;  %v2250_v20 = vadd.f32 %v3445_v37, %v2089_v26  ;;  %v2346_v44 = vmax.f32 %v2314_v35, 0.0 }
 0x212   : > { %2379 = vst [vmem:[%s5097_s28 + $0xf0] sm:$0xff] %v2347_v28  ;;  %v2316_v34 = vadd.f32 %v2284_v21, %v2250_v20  ;;  %2378 = vst [vmem:[%s5097_s28 + $0xe8] sm:$0xff] %v2346_v44 }
 0x214   : > { %v2348_v0 = vmax.f32 %v2316_v34, 0.0 }
 0x216   : > { %2380 = vst [vmem:[%s5097_s28 + $0xf8] sm:$0xff] %v2348_v0 }
 0x217 PF: > { %s17_s26 = sadd.s32 1, %s3582_s26   ;;  %s5297_s24 = smov %s3578_s25 }
 0x218   : > { %p14_p5 = scmp.ge.s32.totalorder %s17_s26, 4   ;;  %s5298_s25 = smov %s5300_s27 }
 0x21a   :  { %16 = sbr.rel (!%p14_p5) target bundleno = 2 (0x2), region = 87 }

// kernel: residual_block_forward.2
= control target key start
LH: loop header
LB: loop body
LE: loop exit
PB: predicated region body
PF: predicated region fallthrough
CT: control target
= control target key end

     0   :  { %s3641_s24 = smov 0   ;;  %s3643_s25 = smov 0   ;;  %s5158_s0 = inlined_call_operand.vmem [shape: f32[2,16,16,128], index: 0, kind: input, shape index: {}, may-alias: {0,1,2}]   ;;  %s5159_s1 = inlined_call_operand.vmem [shape: f32[2,16,16,128], index: 1, kind: input, shape index: {}, may-alias: {0,1,2}]   ;;  %s5160_s2 = inlined_call_operand.vmem [shape: f32[2,16,16,128], index: 2, kind: input, shape index: {}, may-alias: {0,1,2}]   ;;  %s5161_s3 = inlined_call_operand.vmem [shape: bf16[1152,128], index: 3, kind: input, shape index: {}]   ;;  %s5162_s4 = inlined_call_operand.vmem [shape: f32[1,128], index: 4, kind: input, shape index: {}]   ;;  %s5163_s5 = inlined_call_operand.vmem [shape: f32[2,16,16,128], index: 5, kind: output, shape index: {0}]   ;;  %s5164_s6 = inlined_call_operand.vmem [shape: f32[2,1,1,128], index: 6, kind: output, shape index: {1}]   ;;  %s5165_s7 = inlined_call_operand.vmem [shape: f32[2,1,1,128], index: 7, kind: output, shape index: {2}]  }
   0x1   :  { %s3645_s26 = smov 0  }
   0x2 LB: > { %s30_s27 = sadd.s32 1, %s3594_s25  ;;  %p2565_p0 = scmp.ge.s32.totalorder %s3598_s26, 1  ;;  %s3598_s26 = sphi %s3645_s26, %s18_s26   ;;  %s3594_s25 = sphi %s3643_s25, %s5198_s25   ;;  %s3590_s24 = sphi %s3641_s24, %s5197_s24  }
   0x3   : > { %p32_p1 = scmp.ge.s32.totalorder %s30_s27, 2  ;;  %p328_p2 = scmp.lt.s32.totalorder %s3598_s26, 3 }
   0x5   : > { %s5200_s27 = smov (%p32_p1, %s30_s27), 0  ;;  %p329_p3 = pnand %p2565_p0, %p328_p2 }
   0x7   : > { %332 = sbr.rel (%p329_p3) target bundleno = 550 (0x226), region = 40 }
   0xc   : > { %v3504_v0 = vld [vmem:[%s5161_s3 + $0x78] sm:$0xff]   ;;  %v3506_v2 = vld [vmem:[%s5161_s3 + $0x70] sm:$0xff]   ;;  %p406_p4 = scmp.lt.s32.totalorder %s3590_s24, 1  ;;  %v3508_v4 = vld [vmem:[%s5161_s3 + $0x68] sm:$0xff]   ;;  %v513_v9 = vlaneseq  ;;  %vm3600_vm3 = vmmov 1  }
   0xd   : > { %v3505_v1 = vld [vmem:[%s5161_s3 + $0x38] sm:$0xff]   ;;  %2943 = vmatprep.subr.bf16.mxu0 %v3504_v0  ;;  %3463 = vmatprep.subr.bf16.mxu1 %v3504_v0  ;;  %v3507_v3 = vld [vmem:[%s5161_s3 + $0x30] sm:$0xff]   ;;  %v3509_v5 = vld [vmem:[%s5161_s3 + $0x28] sm:$0xff]  }
   0xe   : > { %2944 = vmatpush3.bf16.msra.mxu0 %v3505_v1  ;;  %3471 = vmatpush3.bf16.msra.mxu1 %v3505_v1  ;;  %s5202_s24 = smov (!%p406_p4, %s3590_s24), 1  ;;  %v3510_v6 = vld [vmem:[%s5161_s3 + $0x60] sm:$0xff]   ;;  %v3512_v8 = vld [vmem:[%s5161_s3 + $0x58] sm:$0xff]   ;;  %v3514_v11 = vld [vmem:[%s5161_s3 + $0x50] sm:$0xff]   ;;  %v3707_v14 = vshrl.u32 %v513_v9, 7 }
   0xf   : > { %2945 = vmatprep.subr.bf16.mxu0 %v3506_v2  ;;  %3464 = vmatprep.subr.bf16.mxu1 %v3506_v2  ;;  %s3683_s19 = sshll.u32 %s5202_s24, 8  ;;  %v3511_v7 = vld [vmem:[%s5161_s3 + $0x20] sm:$0xff]   ;;  %v3513_v10 = vld [vmem:[%s5161_s3 + $0x18] sm:$0xff]   ;;  %v3515_v20 = vld [vmem:[%s5161_s3 + $0x10] sm:$0xff]   ;;  %s460_s8 = scalar_lea.vmem %s5164_s6, %s5202_s24 }
  0x10   : > { %s414_s30 = scalar_lea.vmem %s5158_s0, %s3683_s19  ;;  %s3699_s10 = scalar_lea.vmem %s5159_s1, %s3683_s19  ;;  %v3516_v22 = vld [vmem:[%s5161_s3 + $0x48] sm:$0xff]   ;;  %vm552_vm0 = vcmp.lt.s32.totalorder %v3707_v14, 1  ;;  %v3518_v28 = vld [vmem:[%s5161_s3 + $0x40] sm:$0xff]   ;;  %vm685_vm1 = vcmp.lt.s32.totalorder %v3707_v14, 7  ;;  %v3520_v35 = vld [vmem:[%s5161_s3 + $0xf8] sm:$0xff]   ;;  %vm516_vm2 = vcmp.ge.s32.totalorder %v3707_v14, 1 }
  0x11   : > { %v465_v12 = vld [vmem:[%s414_s30] sm:$0xff]  ;;  %v466_v13 = vld [vmem:[%s414_s30 + $0x8] sm:$0xff]  ;;  %v489_v17 = vld [vmem:[%s3699_s10 + $0xb0] sm:$0xff]  ;;  %s2940_s20 = sadd.s32 240, %s3683_s19  ;;  %s5019_s29 = scalar_lea.vmem %s5163_s5, %s3683_s19 }
  0x12   : > { %2946 = vmatpush3.bf16.msra.mxu0 %v3507_v3  ;;  %3472 = vmatpush3.bf16.msra.mxu1 %v3507_v3  ;;  %v3709_v15 = vmul.f32 0.0, %v465_v12  ;;  %v3711_v16 = vmul.f32 0.0, %v466_v13  ;;  %v490_v18 = vld [vmem:[%s3699_s10 + $0xb8] sm:$0xff]  ;;  %v3517_v23 = vld [vmem:[%s5161_s3 + $0x8] sm:$0xff]   ;;  %v532_v24 = vrot.slane %v489_v17, 7  ;;  %v3519_v29 = vld [vmem:[%s5161_s3] sm:$0xff]   ;;  %s442_s22 = scalar_lea.vmem %s5160_s2, %s2940_s20  ;;  %s463_s12 = scalar_lea.vmem %s5165_s7, %s5202_s24 }
  0x13   : > { %2947 = vmatprep.subr.bf16.mxu0 %v3508_v4  ;;  %3465 = vmatprep.subr.bf16.mxu1 %v3508_v4  ;;  %v3715_v19 = vpack.c.bf16 %v490_v18, %v489_v17  ;;  %v548_v25 = vrot.slane %v490_v18, 7  ;;  %v665_v30 = vrot.slane %v489_v17, 1  ;;  %v681_v31 = vrot.slane %v490_v18, 1  ;;  %v3739_v32 = vld [vmem:[%s3699_s10] sm:$0xff]  ;;  %v3521_v36 = vld [vmem:[%s5161_s3 + $0x178] sm:$0xff]   ;;  %v3753_v37 = vld [vmem:[%s3699_s10 + $0x8] sm:$0xff] }
  0x14   : > { %v637_v21 = vpack.c.bf16 %v3711_v16, %v3709_v15  ;;  %v520_v26 = vrot.slane %v3709_v15, 7  ;;  %v536_v27 = vrot.slane %v3711_v16, 7  ;;  %v491_v38 = vld [vmem:[%s3699_s10 + $0xc0] sm:$0xff]  ;;  %v492_v41 = vld [vmem:[%s3699_s10 + $0xc8] sm:$0xff]  ;;  %v3522_v43 = vld [vmem:[%s5161_s3 + $0xb8] sm:$0xff]   ;;  %v521_v44 = vrot.slane %v3739_v32, 7 }
  0x15   : > { %1511 = vmatprep.mubr.bf16.mxu1 %v3715_v19  ;;  %v565_v33 = vsel %vm552_vm0, %v532_v24, %v548_v25  ;;  %v581_v34 = vsel %vm552_vm0, %v548_v25, %v532_v24  ;;  %v537_v45 = vrot.slane %v3753_v37, 7  ;;  %v698_v46 = vsel %vm685_vm1, %v665_v30, %v681_v31  ;;  %vm3772_vm4 = vmpackc.low %vm3600_vm3, %vm516_vm2  ;;  %v3523_v52 = vld [vmem:[%s5161_s3 + $0x138] sm:$0xff]   ;;  %v3524_v54 = vld [vmem:[%s5161_s3 + $0xf0] sm:$0xff]  }
  0x16   : > { %2948 = vmatpush3.bf16.msra.mxu0 %v3509_v5  ;;  %3473 = vmatpush3.bf16.msra.mxu1 %v3509_v5  ;;  %v553_v39 = vsel %vm552_vm0, %v520_v26, %v536_v27  ;;  %v569_v40 = vsel %vm552_vm0, %v536_v27, %v520_v26  ;;  %v3762_v42 = vpack.c.bf16 %v565_v33, %v581_v34  ;;  %v533_v49 = vrot.slane %v491_v38, 7  ;;  %v3525_v56 = vld [vmem:[%s5161_s3 + $0xb0] sm:$0xff]   ;;  %v3526_v3 = vld [vmem:[%s5161_s3 + $0xe8] sm:$0xff]   ;;  %v3821_v4 = vld [vmem:[%s3699_s10 + $0x18] sm:$0xff] }
  0x17   : > { %2949 = vmatprep.subr.bf16.mxu0 %v3510_v6  ;;  %3466 = vmatprep.subr.bf16.mxu1 %v3510_v6  ;;  %v2648_v48 = vpack.c.bf16 %v553_v39, %v569_v40  ;;  %v549_v50 = vrot.slane %v492_v41, 7  ;;  %v714_v51 = vsel %vm685_vm1, %v681_v31, %v665_v30  ;;  %v3788_v55 = vpack.c.bf16 %v3753_v37, %v3739_v32  ;;  %v3529_v60 = vld [vmem:[%s5161_s3 + $0x170] sm:$0xff]   ;;  %v494_v6 = vld [vmem:[%s3699_s10 + $0xd8] sm:$0xff]  ;;  %v3527_v18 = vld [vmem:[%s5161_s3 + $0xa8] sm:$0xff]  }
  0x18   : > { %1415 = vmatprep.mubr.bf16.mxu0 %v637_v21  ;;  %v3781_v53 = vpack.c.bf16 %v714_v51, %v698_v46  ;;  %v3793_v57 = vpack.c.bf16 %v492_v41, %v491_v38  ;;  %v666_v58 = vrot.slane %v491_v38, 1  ;;  %v554_v59 = vsel %vm552_vm0, %v521_v44, %v537_v45  ;;  %v3531_v61 = vld [vmem:[%s5161_s3 + $0x130] sm:$0xff]   ;;  %v3528_v21 = vld [vmem:[%s5161_s3 + $0xe0] sm:$0xff]   ;;  %v3537_v30 = vld [vmem:[%s5161_s3 + $0x168] sm:$0xff]  }
  0x19   : > { %v3804_v62 = vld [vmem:[%s3699_s10 + $0x10] sm:$0xff]  ;;  %v682_v63 = vrot.slane %v492_v41, 1  ;;  %v570_v0 = vsel %vm552_vm0, %v537_v45, %v521_v44  ;;  %v566_v1 = vsel %vm552_vm0, %v533_v49, %v549_v50  ;;  %v582_v2 = vsel %vm552_vm0, %v549_v50, %v533_v49  ;;  %v3850_v25 = vld [vmem:[%s3699_s10 + $0x20] sm:$0xff]  ;;  %v3539_v38 = vld [vmem:[%s5161_s3 + $0x128] sm:$0xff]  }
  0x1a   : > { %2950 = vmatpush3.bf16.msra.mxu0 %v3511_v7  ;;  %3474 = vmatpush3.bf16.msra.mxu1 %v3511_v7  ;;  %v493_v5 = vld [vmem:[%s3699_s10 + $0xd0] sm:$0xff]  ;;  %v3827_v7 = vpack.c.bf16 %v554_v59, %v570_v0  ;;  %v522_v9 = vrot.slane %v3804_v62, 7  ;;  %v550_v12 = vrot.slane %v494_v6, 7  ;;  %v683_v24 = vrot.slane %v494_v6, 1  ;;  %v3530_v26 = vld [vmem:[%s5161_s3 + $0xa0] sm:$0xff]   ;;  %v3533_v51 = vld [vmem:[%s5161_s3 + $0x98] sm:$0xff]  }
  0x1b   : > { %2951 = vmatprep.subr.bf16.mxu0 %v3512_v8  ;;  %3467 = vmatprep.subr.bf16.mxu1 %v3512_v8  ;;  %v3829_v8 = vpack.c.bf16 %v566_v1, %v582_v2  ;;  %v699_v13 = vsel %vm685_vm1, %v666_v58, %v682_v63  ;;  %v715_v17 = vsel %vm685_vm1, %v682_v63, %v666_v58  ;;  %v523_v44 = vrot.slane %v3850_v25, 7  ;;  %v3534_v58 = vld [vmem:[%s5161_s3 + $0xd0] sm:$0xff]   ;;  %v3544_v1 = vld [vmem:[%s5161_s3 + $0x160] sm:$0xff]  }
  0x1c   : > { %v3885_v39 = vpack.c.bf16 %v715_v17, %v699_v13  ;;  %v653_v13 = vrot.slane %v3709_v15, 1  ;;  %v669_v17 = vrot.slane %v3711_v16, 1  ;;  %v515_v16 = vadd.s32 8, %v3707_v14 }
  0x1e   : > { %2952 = vmatpush3.bf16.msra.mxu0 %v3513_v10  ;;  %3475 = vmatpush3.bf16.msra.mxu1 %v3513_v10  ;;  %v538_v10 = vrot.slane %v3821_v4, 7  ;;  %vm519_vm5 = vcmp.le.s32.totalorder %v515_v16, 14 }
  0x1f   : > { %2953 = vmatprep.subr.bf16.mxu0 %v3514_v11  ;;  %3468 = vmatprep.subr.bf16.mxu1 %v3514_v11  ;;  %v534_v11 = vrot.slane %v493_v5, 7  ;;  %vm4017_vm6 = vmpackc.low %vm519_vm5, %vm3600_vm3 }
  0x20   : > { %v555_v27 = vsel %vm552_vm0, %v522_v9, %v538_v10  ;;  %v571_v31 = vsel %vm552_vm0, %v538_v10, %v522_v9 }
  0x21   : > { %v567_v33 = vsel %vm552_vm0, %v534_v11, %v550_v12  ;;  %v583_v34 = vsel %vm552_vm0, %v550_v12, %v534_v11  ;;  %v3889_v41 = vpack.c.bf16 %v555_v27, %v571_v31  ;;  %v3536_v11 = vld [vmem:[%s5161_s3 + $0xc8] sm:$0xff]   ;;  %v3546_v12 = vld [vmem:[%s5161_s3 + $0x158] sm:$0xff]   ;;  %v3540_v27 = vld [vmem:[%s5161_s3 + $0xc0] sm:$0xff]   ;;  %v686_v31 = vsel %vm685_vm1, %v653_v13, %v669_v17 }
  0x22   : > { %2954 = vmatpush3.bf16.msra.mxu0 %v3515_v20  ;;  %3476 = vmatpush3.bf16.msra.mxu1 %v3515_v20  ;;  %v3842_v20 = vpack.c.bf16 %v3821_v4, %v3804_v62 }
  0x23   : > { %2955 = vmatprep.subr.bf16.mxu0 %v3516_v22  ;;  %3469 = vmatprep.subr.bf16.mxu1 %v3516_v22  ;;  %v3847_v22 = vpack.c.bf16 %v494_v6, %v493_v5  ;;  %v3545_v6 = vld [vmem:[%s5161_s3 + $0x120] sm:$0xff]  }
  0x26   : > { %2956 = vmatpush3.bf16.msra.mxu0 %v3517_v23  ;;  %3477 = vmatpush3.bf16.msra.mxu1 %v3517_v23  ;;  %v667_v23 = vrot.slane %v493_v5, 1  ;;  %v3936_v5 = vld [vmem:[%s3699_s10 + $0x38] sm:$0xff] }
  0x27   : > { %2957 = vmatprep.subr.bf16.mxu0 %v3518_v28  ;;  %3470 = vmatprep.subr.bf16.mxu1 %v3518_v28  ;;  %v3858_v28 = vld [vmem:[%s3699_s10 + $0x28] sm:$0xff] }
  0x28   : > { %v700_v40 = vsel %vm685_vm1, %v667_v23, %v683_v24  ;;  %v716_v45 = vsel %vm685_vm1, %v683_v24, %v667_v23  ;;  %v539_v46 = vrot.slane %v3858_v28, 7 }
  0x29   : > { %v3897_v50 = vpack.c.bf16 %v716_v45, %v700_v40  ;;  %v3542_v40 = vld [vmem:[%s5161_s3 + $0x1f8] sm:$0xff]   ;;  %v4007_v45 = vld [vmem:[%s3699_s10 + $0x48] sm:$0xff] }
  0x2a   : > { %2958 = vmatpush3.bf16.msra.mxu0 %v3519_v29  ;;  %3478 = vmatpush3.bf16.msra.mxu1 %v3519_v29  ;;  %v495_v29 = vld [vmem:[%s3699_s10 + $0xe0] sm:$0xff]  ;;  %v572_v63 = vsel %vm552_vm0, %v539_v46, %v523_v44 }
  0x2b   : > { %3055 = vmatprep.subr.bf16.mxu1 %v3520_v35  ;;  %3167 = vmatprep.subr.bf16.mxu0 %v3521_v36  ;;  %v3532_v35 = vld [vmem:[%s5161_s3 + $0xd8] sm:$0xff]   ;;  %v496_v36 = vld [vmem:[%s3699_s10 + $0xe8] sm:$0xff] }
  0x2c   : > { %v551_v49 = vrot.slane %v496_v36, 7  ;;  %v3909_v59 = vpack.c.bf16 %v496_v36, %v495_v29 }
  0x2d   : > { %2649 = vmatmul.mubr.msk.bf16.vlgmr.msra.gmra.mxu0 %vm3772_vm4, %v2648_v48  ;;  %2685 = vmatmul.mubr.msk.bf16.vlgmr.msra.gmra.mxu1 %vm3772_vm4, %v3762_v42  ;;  %v535_v48 = vrot.slane %v495_v29, 7 }
  0x2e   : > { %3056 = vmatpush3.bf16.msra.mxu1 %v3522_v43  ;;  %3168 = vmatpush3.bf16.msra.mxu0 %v3523_v52  ;;  %v3891_v43 = vpack.c.bf16 %v567_v33, %v583_v34  ;;  %v3904_v52 = vpack.c.bf16 %v3858_v28, %v3850_v25  ;;  %5171 = vst [vmem:[#allocation2_spill] sm:$0xff] %v3909_v59  ;;  %v3541_v33 = vld [vmem:[%s5161_s3 + $0x80] sm:$0xff]   ;;  %v3550_v34 = vld [vmem:[%s5161_s3 + $0x150] sm:$0xff]  }
  0x2f   : > { %3057 = vmatprep.subr.bf16.mxu1 %v3524_v54  ;;  %1423 = vmatprep.mubr.bf16.mxu0 %v3788_v55  ;;  %v668_v54 = vrot.slane %v495_v29, 1  ;;  %v568_v0 = vsel %vm552_vm0, %v535_v48, %v551_v49  ;;  %v584_v2 = vsel %vm552_vm0, %v551_v49, %v535_v48  ;;  %v3548_v29 = vld [vmem:[%s5161_s3 + $0x118] sm:$0xff]   ;;  %v654_v49 = vrot.slane %v3739_v32, 1 }
  0x30   : > { %1519 = vmatprep.mubr.bf16.mxu1 %v3793_v57  ;;  %3169 = vmatprep.subr.bf16.mxu0 %v3529_v60  ;;  %v3535_v60 = vld [vmem:[%s5161_s3 + $0x90] sm:$0xff]   ;;  %v3959_v23 = vpack.c.bf16 %v568_v0, %v584_v2  ;;  %v541_v32 = vrot.slane %v4007_v45, 7 }
  0x31   : > { %v4044_v0 = vld [vmem:[%s3699_s10 + $0x50] sm:$0xff] }
  0x32   : > { %3058 = vmatpush3.bf16.msra.mxu1 %v3525_v56  ;;  %3170 = vmatpush3.bf16.msra.mxu0 %v3531_v61  ;;  %v684_v56 = vrot.slane %v496_v36, 1  ;;  %v556_v61 = vsel %vm552_vm0, %v523_v44, %v539_v46  ;;  %v4004_v44 = vld [vmem:[%s3699_s10 + $0x40] sm:$0xff]  ;;  %v3551_v46 = vld [vmem:[%s5161_s3 + $0x110] sm:$0xff]  }
  0x33   : > { %3059 = vmatprep.subr.bf16.mxu1 %v3526_v3  ;;  %3171 = vmatprep.subr.bf16.mxu0 %v3537_v30  ;;  %v3933_v3 = vld [vmem:[%s3699_s10 + $0x30] sm:$0xff] }
  0x34   : > { %v701_v9 = vsel %vm685_vm1, %v668_v54, %v684_v56  ;;  %v717_v10 = vsel %vm685_vm1, %v684_v56, %v668_v54  ;;  %v524_v24 = vrot.slane %v3933_v3, 7  ;;  %v3965_v15 = vpack.c.bf16 %v3936_v5, %v3933_v3  ;;  %v3543_v56 = vld [vmem:[%s5161_s3 + $0x1b8] sm:$0xff]  }
  0x35   : > { %2652 = vmatmul.mubr.msk.bf16.gmra.mxu0 %vm3772_vm4, %v3827_v7  ;;  %2688 = vmatmul.mubr.msk.bf16.gmra.mxu1 %vm3772_vm4, %v3829_v8  ;;  %v3974_v30 = vpack.c.bf16 %v717_v10, %v701_v9  ;;  %v3549_v10 = vld [vmem:[%s5161_s3 + $0x1b0] sm:$0xff]  }
  0x36   : > { %3060 = vmatpush3.bf16.msra.mxu1 %v3527_v18  ;;  %1431 = vmatprep.mubr.bf16.mxu0 %v3842_v20  ;;  %v3538_v18 = vld [vmem:[%s5161_s3 + $0x88] sm:$0xff]  }
  0x37   : > { %3061 = vmatprep.subr.bf16.mxu1 %v3528_v21  ;;  %1527 = vmatprep.mubr.bf16.mxu1 %v3847_v22  ;;  %v3957_v21 = vpack.c.bf16 %v556_v61, %v572_v63  ;;  %v3554_v61 = vld [vmem:[%s5161_s3 + $0x148] sm:$0xff]  }
  0x38   : > { %3172 = vmatpush3.bf16.msra.mxu0 %v3539_v38 }
  0x39   : > { %3173 = vmatprep.subr.bf16.mxu0 %v3544_v1  ;;  %v3555_v1 = vld [vmem:[%s5161_s3 + $0x108] sm:$0xff]  }
  0x3a   : > { %3062 = vmatpush3.bf16.msra.mxu1 %v3530_v26  ;;  %v540_v26 = vrot.slane %v3936_v5, 7 }
  0x3b   : > { %3063 = vmatprep.subr.bf16.mxu1 %v3532_v35  ;;  %v702_v35 = vsel %vm685_vm1, %v669_v17, %v653_v13  ;;  %v3552_v13 = vld [vmem:[%s5161_s3 + $0x1e8] sm:$0xff]   ;;  %v671_v17 = vrot.slane %v3821_v4, 1 }
  0x3c   : > { %3174 = vmatpush3.bf16.msra.mxu0 %v3545_v6  ;;  %v557_v36 = vsel %vm552_vm0, %v524_v24, %v540_v26  ;;  %v573_v38 = vsel %vm552_vm0, %v540_v26, %v524_v24  ;;  %v2699_v48 = vpack.c.bf16 %v702_v35, %v686_v31  ;;  %v526_v26 = vrot.slane %v4044_v0, 7  ;;  %v3553_v4 = vld [vmem:[%s5161_s3 + $0x1a8] sm:$0xff]   ;;  %v3559_v31 = vld [vmem:[%s5161_s3 + $0x100] sm:$0xff]  }
  0x3d   : > { %2655 = vmatmul.mubr.msk.bf16.gmra.mxu0 %vm3772_vm4, %v3889_v41  ;;  %2691 = vmatmul.mubr.msk.bf16.gmra.mxu1 %vm3772_vm4, %v3891_v43  ;;  %v4014_v54 = vpack.c.bf16 %v557_v36, %v573_v38  ;;  %v4106_v35 = vld [vmem:[%s3699_s10 + $0x60] sm:$0xff] }
  0x3e   : > { %3064 = vmatpush3.bf16.msra.mxu1 %v3533_v51  ;;  %1439 = vmatprep.mubr.bf16.mxu0 %v3904_v52  ;;  %v670_v51 = vrot.slane %v3753_v37, 1  ;;  %v4028_v37 = vpack.c.bf16 %v4007_v45, %v4004_v44 }
  0x3f   : > { %3065 = vmatprep.subr.bf16.mxu1 %v3534_v58  ;;  %1535 = vmatprep.mubr.bf16.mxu1 %v3909_v59  ;;  %v525_v58 = vrot.slane %v4004_v44, 7 }
  0x40   : > { %3175 = vmatprep.subr.bf16.mxu0 %v3546_v12  ;;  %v687_v63 = vsel %vm685_vm1, %v654_v49, %v670_v51  ;;  %v703_v9 = vsel %vm685_vm1, %v670_v51, %v654_v49  ;;  %v4064_v12 = vld [vmem:[%s3699_s10 + $0x58] sm:$0xff]  ;;  %v656_v51 = vrot.slane %v3850_v25, 1 }
  0x41   : > { %3176 = vmatpush3.bf16.msra.mxu0 %v3548_v29  ;;  %v558_v2 = vsel %vm552_vm0, %v525_v58, %v541_v32  ;;  %v574_v6 = vsel %vm552_vm0, %v541_v32, %v525_v58  ;;  %v4072_v24 = vpack.c.bf16 %v703_v9, %v687_v63  ;;  %v542_v16 = vrot.slane %v4064_v12, 7  ;;  %v3556_v29 = vld [vmem:[%s5161_s3 + $0x1e0] sm:$0xff]   ;;  %v3560_v49 = vld [vmem:[%s5161_s3 + $0x1d8] sm:$0xff]  }
  0x42   : > { %3066 = vmatpush3.bf16.msra.mxu1 %v3535_v60  ;;  %3177 = vmatprep.subr.bf16.mxu0 %v3550_v34  ;;  %v3547_v60 = vld [vmem:[%s5161_s3 + $0x1f0] sm:$0xff]   ;;  %v3562_v25 = vld [vmem:[%s5161_s3 + $0x198] sm:$0xff]  }
  0x43   : > { %3067 = vmatprep.subr.bf16.mxu1 %v3536_v11  ;;  %v655_v11 = vrot.slane %v3804_v62, 1  ;;  %v3558_v62 = vld [vmem:[%s5161_s3 + $0x140] sm:$0xff]   ;;  %v559_v36 = vsel %vm552_vm0, %v526_v26, %v542_v16  ;;  %v575_v38 = vsel %vm552_vm0, %v542_v16, %v526_v26  ;;  %v673_v26 = vrot.slane %v3936_v5, 1 }
  0x44   : > { %v4130_v58 = vpack.c.bf16 %v559_v36, %v575_v38  ;;  %v3569_v5 = vld [vmem:[%s5161_s3 + $0x1c0] sm:$0xff]  }
  0x45   : > { %2658 = vmatmul.mubr.msk.bf16.gmra.mxu0 %vm3772_vm4, %v3957_v21  ;;  %2694 = vmatmul.mubr.msk.bf16.gmra.mxu1 %vm3772_vm4, %v3959_v23  ;;  %v688_v34 = vsel %vm685_vm1, %v655_v11, %v671_v17 }
  0x46   : > { %3068 = vmatpush3.bf16.msra.mxu1 %v3538_v18  ;;  %1447 = vmatprep.mubr.bf16.mxu0 %v3965_v15  ;;  %v4070_v18 = vpack.c.bf16 %v558_v2, %v574_v6 }
  0x47   : > { %3069 = vmatprep.subr.bf16.mxu1 %v3540_v27  ;;  %2697 = vmatprep.mubr.msk.bf16.mxu1 %vm3772_vm4, %v3827_v7  ;;  %v4081_v27 = vpack.c.bf16 %v4064_v12, %v4044_v0 }
  0x48   : > { %3178 = vmatpush3.bf16.msra.mxu0 %v3551_v46  ;;  %v4119_v46 = vld [vmem:[%s3699_s10 + $0x68] sm:$0xff] }
  0x49   : > { %3179 = vmatprep.subr.bf16.mxu0 %v3554_v61  ;;  %v543_v61 = vrot.slane %v4119_v46, 7  ;;  %v4138_v63 = vpack.c.bf16 %v4119_v46, %v4106_v35 }
  0x4a   : > { %3070 = vmatpush3.bf16.msra.mxu1 %v3541_v33  ;;  %v4095_v33 = vld [vmem:[%s5161_s3 + $0x238] sm:$0xff]  }
  0x4b   : > { %3279 = vmatprep.subr.bf16.mxu1 %v3542_v40  ;;  %v704_v40 = vsel %vm685_vm1, %v671_v17, %v655_v11  ;;  %v4168_v11 = vld [vmem:[%s3699_s10 + $0x78] sm:$0xff]  ;;  %v3566_v17 = vld [vmem:[%s5161_s3 + $0x1c8] sm:$0xff]  }
  0x4c   : > { %3180 = vmatpush3.bf16.msra.mxu0 %v3555_v1  ;;  %v4132_v32 = vpack.c.bf16 %v704_v40, %v688_v34 }
  0x4d   : > { %2661 = vmatmul.mubr.msk.bf16.gmra.mxu0 %vm3772_vm4, %v4014_v54  ;;  %2700 = vmatmul.mubr.msk.bf16.vlgmr.msra.gmra.mxu1 %vm4017_vm6, %v2699_v48  ;;  %v3557_v48 = vld [vmem:[%s5161_s3 + $0x1a0] sm:$0xff]  }
  0x4e   : > { %3280 = vmatpush3.bf16.msra.mxu1 %v3543_v56  ;;  %1455 = vmatprep.mubr.bf16.mxu0 %v4028_v37  ;;  %v672_v56 = vrot.slane %v3858_v28, 1  ;;  %v3563_v28 = vld [vmem:[%s5161_s3 + $0x1d0] sm:$0xff]  }
  0x4f   : > { %2703 = vmatprep.mubr.msk.bf16.mxu1 %vm3772_vm4, %v3889_v41  ;;  %3281 = vmatprep.subr.bf16.mxu1 %v3547_v60  ;;  %v527_v60 = vrot.slane %v4106_v35, 7 }
  0x50   : > { %3181 = vmatprep.subr.bf16.mxu0 %v3558_v62  ;;  %v689_v1 = vsel %vm685_vm1, %v656_v51, %v672_v56  ;;  %v705_v9 = vsel %vm685_vm1, %v672_v56, %v656_v51  ;;  %v657_v62 = vrot.slane %v3933_v3, 1  ;;  %v3568_v3 = vld [vmem:[%s5161_s3 + $0x188] sm:$0xff]   ;;  %v3571_v56 = vld [vmem:[%s5161_s3 + $0x180] sm:$0xff]  }
  0x51   : > { %3182 = vmatpush3.bf16.msra.mxu0 %v3559_v31  ;;  %v560_v2 = vsel %vm552_vm0, %v527_v60, %v543_v61  ;;  %v576_v6 = vsel %vm552_vm0, %v543_v61, %v527_v60  ;;  %v544_v31 = vrot.slane %v4168_v11, 7  ;;  %v4216_v51 = vld [vmem:[%s3699_s10 + $0x88] sm:$0xff]  ;;  %v658_v60 = vrot.slane %v4004_v44, 1 }
  0x52   : > { %3282 = vmatpush3.bf16.msra.mxu1 %v3549_v10  ;;  %3415 = vmatprep.subr.bf16.mxu0 %v4095_v33  ;;  %v4165_v10 = vld [vmem:[%s3699_s10 + $0x70] sm:$0xff]  ;;  %v4178_v16 = vpack.c.bf16 %v560_v2, %v576_v6  ;;  %v690_v36 = vsel %vm685_vm1, %v657_v62, %v673_v26  ;;  %v674_v61 = vrot.slane %v4007_v45, 1  ;;  %v545_v2 = vrot.slane %v4216_v51, 7 }
  0x53   : > { %3283 = vmatprep.subr.bf16.mxu1 %v3552_v13  ;;  %v3565_v13 = vld [vmem:[%s5161_s3 + $0x190] sm:$0xff]   ;;  %v4186_v34 = vpack.c.bf16 %v4168_v11, %v4165_v10 }
  0x54   : > { %v691_v44 = vsel %vm685_vm1, %v658_v60, %v674_v61 }
  0x55   : > { %2664 = vmatmul.mubr.msk.bf16.gmra.mxu0 %vm3772_vm4, %v4070_v18  ;;  %2706 = vmatmul.mubr.msk.bf16.gmra.mxu1 %vm4017_vm6, %v4072_v24 }
  0x56   : > { %1463 = vmatprep.mubr.bf16.mxu0 %v4081_v27  ;;  %2709 = vmatprep.mubr.msk.bf16.mxu1 %vm3772_vm4, %v3957_v21 }
  0x57   : > { %3284 = vmatpush3.bf16.msra.mxu1 %v3553_v4  ;;  %v4180_v4 = vpack.c.bf16 %v705_v9, %v689_v1 }
  0x58   : > { %3285 = vmatprep.subr.bf16.mxu1 %v3556_v29  ;;  %v528_v29 = vrot.slane %v4165_v10, 7 }
  0x5a   : > { %v561_v38 = vsel %vm552_vm0, %v528_v29, %v544_v31  ;;  %v577_v40 = vsel %vm552_vm0, %v544_v31, %v528_v29  ;;  %v675_v29 = vrot.slane %v4064_v12, 1 }
  0x5b   : > { %3286 = vmatpush3.bf16.msra.mxu1 %v3557_v48  ;;  %v706_v48 = vsel %vm685_vm1, %v673_v26, %v657_v62  ;;  %v4255_v62 = vld [vmem:[%s3699_s10 + $0x98] sm:$0xff]  ;;  %v659_v26 = vrot.slane %v4044_v0, 1 }
  0x5c   : > { %3287 = vmatprep.subr.bf16.mxu1 %v3560_v49  ;;  %v4213_v49 = vld [vmem:[%s3699_s10 + $0x80] sm:$0xff] }
  0x5d   : > { %2667 = vmatmul.mubr.msk.bf16.gmra.mxu0 %vm3772_vm4, %v4130_v58  ;;  %2712 = vmatmul.mubr.msk.bf16.gmra.mxu1 %vm4017_vm6, %v4132_v32  ;;  %v529_v1 = vrot.slane %v4213_v49, 7  ;;  %v4231_v6 = vpack.c.bf16 %v4216_v51, %v4213_v49  ;;  %v692_v0 = vsel %vm685_vm1, %v659_v26, %v675_v29 }
  0x5e   : > { %1471 = vmatprep.mubr.bf16.mxu0 %v4138_v63  ;;  %2715 = vmatprep.mubr.msk.bf16.mxu1 %vm3772_vm4, %v4014_v54 }
  0x5f   : > { %3288 = vmatpush3.bf16.msra.mxu1 %v3562_v25  ;;  %v4223_v25 = vpack.c.bf16 %v561_v38, %v577_v40  ;;  %v562_v45 = vsel %vm552_vm0, %v529_v1, %v545_v2  ;;  %v578_v9 = vsel %vm552_vm0, %v545_v2, %v529_v1  ;;  %v676_v1 = vrot.slane %v4119_v46, 1 }
  0x60   : > { %3289 = vmatprep.subr.bf16.mxu1 %v3563_v28  ;;  %v4225_v28 = vpack.c.bf16 %v706_v48, %v690_v36  ;;  %v4259_v31 = vpack.c.bf16 %v562_v45, %v578_v9  ;;  %v546_v36 = vrot.slane %v4255_v62, 7  ;;  %v708_v48 = vsel %vm685_vm1, %v675_v29, %v659_v26 }
  0x61   : > { %5174 = vst [vmem:[#allocation3_spill] sm:$0xff] %v4223_v25 }
  0x63   : > { %3290 = vmatpush3.bf16.msra.mxu1 %v3565_v13  ;;  %v707_v13 = vsel %vm685_vm1, %v674_v61, %v658_v60  ;;  %v4291_v60 = vld [vmem:[%s3699_s10 + $0xa8] sm:$0xff]  ;;  %v660_v61 = vrot.slane %v4106_v35, 1 }
  0x64   : > { %3291 = vmatprep.subr.bf16.mxu1 %v3566_v17  ;;  %v4252_v17 = vld [vmem:[%s3699_s10 + $0x90] sm:$0xff]  ;;  %v547_v9 = vrot.slane %v4291_v60, 7 }
  0x65   : > { %2670 = vmatmul.mubr.msk.bf16.gmra.mxu0 %vm3772_vm4, %v4178_v16  ;;  %2718 = vmatmul.mubr.msk.bf16.gmra.mxu1 %vm4017_vm6, %v4180_v4  ;;  %v4267_v38 = vpack.c.bf16 %v4255_v62, %v4252_v17  ;;  %v693_v35 = vsel %vm685_vm1, %v660_v61, %v676_v1  ;;  %v709_v29 = vsel %vm685_vm1, %v676_v1, %v660_v61  ;;  %v661_v61 = vrot.slane %v4165_v10, 1 }
  0x66   : > { %1479 = vmatprep.mubr.bf16.mxu0 %v4186_v34  ;;  %2721 = vmatprep.mubr.msk.bf16.mxu1 %vm3772_vm4, %v4070_v18  ;;  %v677_v1 = vrot.slane %v4168_v11, 1 }
  0x67   : > { %3292 = vmatpush3.bf16.msra.mxu1 %v3568_v3  ;;  %v4261_v3 = vpack.c.bf16 %v707_v13, %v691_v44  ;;  %v4297_v44 = vpack.c.bf16 %v708_v48, %v692_v0  ;;  %v4333_v48 = vpack.c.bf16 %v709_v29, %v693_v35  ;;  %v662_v35 = vrot.slane %v4213_v49, 1 }
  0x68   : > { %3293 = vmatprep.subr.bf16.mxu1 %v3569_v5  ;;  %v530_v5 = vrot.slane %v4252_v17, 7  ;;  %v694_v10 = vsel %vm685_vm1, %v661_v61, %v677_v1  ;;  %v710_v11 = vsel %vm685_vm1, %v677_v1, %v661_v61  ;;  %v679_v29 = vrot.slane %v4255_v62, 1 }
  0x69   : > { %v680_v1 = vrot.slane %v4291_v60, 1 }
  0x6a   : > { %v563_v12 = vsel %vm552_vm0, %v530_v5, %v546_v36  ;;  %v579_v40 = vsel %vm552_vm0, %v546_v36, %v530_v5  ;;  %v4324_v5 = vld [vmem:[%s3699_s10 + $0xf0] sm:$0xff]  ;;  %v4327_v36 = vld [vmem:[%s3699_s10 + $0xf8] sm:$0xff] }
  0x6b   : > { %3294 = vmatpush3.bf16.msra.mxu1 %v3571_v56  ;;  %v4288_v56 = vld [vmem:[%s3699_s10 + $0xa0] sm:$0xff]  ;;  %v4295_v2 = vpack.c.bf16 %v563_v12, %v579_v40  ;;  %v778_v0 = vrot.slane %v4324_v5, 1  ;;  %v779_v12 = vrot.slane %v4327_v36, 1  ;;  %v4345_v59 = vpack.c.bf16 %v4327_v36, %v4324_v5 }
  0x6c   : > { %v531_v45 = vrot.slane %v4288_v56, 7  ;;  %v4303_v13 = vpack.c.bf16 %v4291_v60, %v4288_v56  ;;  %v664_v61 = vrot.slane %v4288_v56, 1 }
  0x6d   : > { %2673 = vmatmul.mubr.msk.bf16.gmra.mxu0 %vm3772_vm4, %v4223_v25  ;;  %2724 = vmatmul.mubr.msk.bf16.gmra.mxu1 %vm4017_vm6, %v4225_v28 }
  0x6e   : > { %1487 = vmatprep.mubr.bf16.mxu0 %v4231_v6  ;;  %2727 = vmatprep.mubr.msk.bf16.mxu1 %vm3772_vm4, %v4130_v58  ;;  %v564_v46 = vsel %vm552_vm0, %v531_v45, %v547_v9  ;;  %v580_v26 = vsel %vm552_vm0, %v547_v9, %v531_v45  ;;  %v781_v45 = vsel %vm685_vm1, %v779_v12, %v778_v0 }
  0x6f   : > { %v4331_v40 = vpack.c.bf16 %v564_v46, %v580_v26  ;;  %v678_v46 = vrot.slane %v4216_v51, 1  ;;  %v3564_v26 = vld [vmem:[%s5161_s3 + $0x230] sm:$0xff]   ;;  %v663_v51 = vrot.slane %v4252_v17, 1  ;;  %v697_v56 = vsel %vm685_vm1, %v664_v61, %v680_v1 }
  0x70   : > { %v713_v60 = vsel %vm685_vm1, %v680_v1, %v664_v61 }
  0x71   : > { %v711_v49 = vsel %vm685_vm1, %v678_v46, %v662_v35  ;;  %v696_v17 = vsel %vm685_vm1, %v663_v51, %v679_v29  ;;  %v712_v62 = vsel %vm685_vm1, %v679_v29, %v663_v51 }
  0x75   : > { %2676 = vmatmul.mubr.msk.bf16.gmra.mxu0 %vm3772_vm4, %v4259_v31  ;;  %2730 = vmatmul.mubr.msk.bf16.gmra.mxu1 %vm4017_vm6, %v4261_v3 }
  0x76   : > { %1495 = vmatprep.mubr.bf16.mxu0 %v4267_v38  ;;  %2733 = vmatprep.mubr.msk.bf16.mxu1 %vm3772_vm4, %v4178_v16 }
  0x7d   : > { %2679 = vmatmul.mubr.msk.bf16.gmra.mxu0 %vm3772_vm4, %v4295_v2  ;;  %2736 = vmatmul.mubr.msk.bf16.gmra.mxu1 %vm4017_vm6, %v4297_v44 }
  0x7e   : > { %1503 = vmatprep.mubr.bf16.mxu0 %v4303_v13  ;;  %2739 = vmatprep.mubr.msk.bf16.mxu1 %vm3772_vm4, %v4223_v25  ;;  %v780_v25 = vsel %vm685_vm1, %v778_v0, %v779_v12  ;;  %v3570_v0 = vld [vmem:[%s5161_s3 + $0x220] sm:$0xff]   ;;  %v3572_v12 = vld [vmem:[%s5161_s3 + $0x218] sm:$0xff]  }
  0x7f   : > { %v4341_v9 = vpack.c.bf16 %v781_v45, %v780_v25  ;;  %v4363_v25 = vpack.c.bf16 %v710_v11, %v694_v10  ;;  %v4412_v45 = vpack.c.bf16 %v712_v62, %v696_v17  ;;  %v3573_v10 = vld [vmem:[%s5161_s3 + $0x210] sm:$0xff]   ;;  %v3574_v11 = vld [vmem:[%s5161_s3 + $0x208] sm:$0xff]  }
  0x85   : > { %2682 = vmatmul.mubr.msk.bf16.gmra.mxu0 %vm3772_vm4, %v4331_v40  ;;  %2742 = vmatmul.mubr.msk.bf16.gmra.mxu1 %vm4017_vm6, %v4333_v48 }
  0x86   : > { %2745 = vmatprep.mubr.msk.bf16.mxu1 %vm3772_vm4, %v4259_v31  ;;  %2793 = vmatprep.mubr.msk.bf16.mxu0 %vm4017_vm6, %v4072_v24  ;;  %v695_v24 = vsel %vm685_vm1, %v662_v35, %v678_v46  ;;  %v4436_v35 = vpack.c.bf16 %v713_v60, %v697_v56  ;;  %v3575_v46 = vld [vmem:[%s5161_s3 + $0x200] sm:$0xff]  }
  0x8d   : > { %2748 = vmatmul.mubr.msk.bf16.gmra.mxu1 %vm4017_vm6, %v4363_v25  ;;  %1738 = vmatmul.mubr.bf16.vlgmr.msra.gmra.mxu0 %v3788_v55  ;;  %v3567_v55 = vld [vmem:[%s5161_s3 + $0x228] sm:$0xff]  }
  0x8e   : > { %3416 = vmatpush3.bf16.msra.mxu0 %v4095_v33  ;;  %2751 = vmatprep.mubr.msk.bf16.mxu1 %vm3772_vm4, %v4295_v2  ;;  %v4388_v33 = vpack.c.bf16 %v711_v49, %v695_v24  ;;  %v771_v24 = vrot.slane %v4327_v36, 7 }
  0x8f   : > { %2796 = vmatprep.mubr.msk.bf16.mxu0 %vm4017_vm6, %v4132_v32  ;;  %3417 = vmatprep.subr.bf16.mxu0 %v3564_v26 }
  0x92   : > { %3418 = vmatpush3.bf16.msra.mxu0 %v3564_v26  ;;  %v770_v26 = vrot.slane %v4324_v5, 7 }
  0x93   : > { %3419 = vmatprep.subr.bf16.mxu0 %v3567_v55 }
  0x94   : > { %v772_v49 = vsel %vm552_vm0, %v770_v26, %v771_v24  ;;  %v773_v5 = vsel %vm552_vm0, %v771_v24, %v770_v26  ;;  %v5175_v26 = vld [vmem:[#allocation2_spill] sm:$0xff]  ;;  %v5176_v24 = vld [vmem:[#allocation3_spill] sm:$0xff] }
  0x95   : > { %2754 = vmatmul.mubr.msk.bf16.gmra.mxu1 %vm4017_vm6, %v4388_v33  ;;  %1746 = vmatmul.mubr.bf16.gmra.mxu0 %v3842_v20  ;;  %v4477_v36 = vpack.c.bf16 %v772_v49, %v773_v5 }
  0x96   : > { %2757 = vmatprep.mubr.msk.bf16.mxu1 %vm3772_vm4, %v4331_v40  ;;  %2799 = vmatprep.mubr.msk.bf16.mxu0 %vm4017_vm6, %v4180_v4 }
  0x97   : > { %3420 = vmatpush3.bf16.msra.mxu0 %v3567_v55 }
  0x98   : > { %3421 = vmatprep.subr.bf16.mxu0 %v3570_v0 }
  0x9b   : > { %3422 = vmatpush3.bf16.msra.mxu0 %v3570_v0 }
  0x9c   : > { %3423 = vmatprep.subr.bf16.mxu0 %v3572_v12 }
  0x9d   : > { %2760 = vmatmul.mubr.msk.bf16.gmra.mxu1 %vm4017_vm6, %v4412_v45  ;;  %1754 = vmatmul.mubr.bf16.gmra.mxu0 %v3904_v52 }
  0x9e   : > { %2763 = vmatprep.mubr.msk.bf16.mxu1 %vm3772_vm4, %v3762_v42  ;;  %2802 = vmatprep.mubr.msk.bf16.mxu0 %vm4017_vm6, %v4225_v28 }
  0x9f   : > { %3424 = vmatpush3.bf16.msra.mxu0 %v3572_v12 }
  0xa0   : > { %3425 = vmatprep.subr.bf16.mxu0 %v3573_v10 }
  0xa3   : > { %3426 = vmatpush3.bf16.msra.mxu0 %v3573_v10 }
  0xa4   : > { %3427 = vmatprep.subr.bf16.mxu0 %v3574_v11 }
  0xa5   : > { %2766 = vmatmul.mubr.msk.bf16.gmra.mxu1 %vm4017_vm6, %v4436_v35  ;;  %1762 = vmatmul.mubr.bf16.gmra.mxu0 %v3965_v15 }
  0xa6   : > { %2769 = vmatprep.mubr.msk.bf16.mxu1 %vm3772_vm4, %v3829_v8  ;;  %2805 = vmatprep.mubr.msk.bf16.mxu0 %vm4017_vm6, %v4261_v3 }
  0xa7   : > { %3428 = vmatpush3.bf16.msra.mxu0 %v3574_v11 }
  0xa8   : > { %3429 = vmatprep.subr.bf16.mxu0 %v3575_v46 }
  0xab   : > { %3430 = vmatpush3.bf16.msra.mxu0 %v3575_v46 }
  0xad   : > { %2772 = vmatmul.mubr.msk.bf16.gmra.mxu1 %vm4017_vm6, %v3781_v53  ;;  %1770 = vmatmul.mubr.bf16.gmra.mxu0 %v4028_v37 }
  0xae   : > { %2775 = vmatprep.mubr.msk.bf16.mxu1 %vm3772_vm4, %v3891_v43  ;;  %2808 = vmatprep.mubr.msk.bf16.mxu0 %vm4017_vm6, %v4297_v44 }
  0xb5   : > { %2778 = vmatmul.mubr.msk.bf16.gmra.mxu1 %vm4017_vm6, %v3885_v39  ;;  %1778 = vmatmul.mubr.bf16.gmra.mxu0 %v4081_v27 }
  0xb6   : > { %2781 = vmatprep.mubr.msk.bf16.mxu1 %vm3772_vm4, %v3959_v23  ;;  %2811 = vmatprep.mubr.msk.bf16.mxu0 %vm4017_vm6, %v4333_v48 }
  0xbd   : > { %2784 = vmatmul.mubr.msk.bf16.gmra.mxu1 %vm4017_vm6, %v3897_v50  ;;  %1786 = vmatmul.mubr.bf16.gmra.mxu0 %v4138_v63 }
  0xbe   : > { %2787 = vmatprep.mubr.msk.bf16.mxu1 %vm3772_vm4, %v4477_v36  ;;  %2814 = vmatprep.mubr.msk.bf16.mxu0 %vm4017_vm6, %v4363_v25 }
  0xc5   : > { %2790 = vmatmul.mubr.msk.bf16.gmra.mxu1 %vm4017_vm6, %v3974_v30  ;;  %1794 = vmatmul.mubr.bf16.gmra.mxu0 %v4186_v34 }
  0xc6   : > { %2817 = vmatprep.mubr.msk.bf16.mxu0 %vm4017_vm6, %v4388_v33  ;;  %1898 = vmatprep.mubr.bf16.mxu1 %v3842_v20 }
  0xcd   : > { %1802 = vmatmul.mubr.bf16.gmra.mxu0 %v4231_v6  ;;  %2841 = vmatmul.mubr.msk.bf16.vlgmr.msra.gmra.mxu1 %vm3772_vm4, %v3889_v41 }
  0xce   : > { %2820 = vmatprep.mubr.msk.bf16.mxu0 %vm4017_vm6, %v4412_v45  ;;  %1906 = vmatprep.mubr.bf16.mxu1 %v3904_v52 }
  0xd5   : > { %1810 = vmatmul.mubr.bf16.gmra.mxu0 %v4267_v38  ;;  %2844 = vmatmul.mubr.msk.bf16.gmra.mxu1 %vm3772_vm4, %v3957_v21 }
  0xd6   : > { %2823 = vmatprep.mubr.msk.bf16.mxu0 %vm4017_vm6, %v4436_v35  ;;  %1914 = vmatprep.mubr.bf16.mxu1 %v3965_v15 }
  0xdd   : > { %1818 = vmatmul.mubr.bf16.gmra.mxu0 %v4303_v13  ;;  %2847 = vmatmul.mubr.msk.bf16.gmra.mxu1 %vm3772_vm4, %v4014_v54 }
  0xde   : > { %2826 = vmatprep.mubr.msk.bf16.mxu0 %vm4017_vm6, %v3781_v53  ;;  %1922 = vmatprep.mubr.bf16.mxu1 %v4028_v37 }
  0xe5   : > { %1826 = vmatmul.mubr.bf16.gmra.mxu0 %v3715_v19  ;;  %2850 = vmatmul.mubr.msk.bf16.gmra.mxu1 %vm3772_vm4, %v4070_v18 }
  0xe6   : > { %2829 = vmatprep.mubr.msk.bf16.mxu0 %vm4017_vm6, %v3885_v39  ;;  %1930 = vmatprep.mubr.bf16.mxu1 %v4081_v27 }
  0xed   : > { %v2959_v20 = vpop.f32.mrf.mxu0  ;;  %v3031_v41 = vpop.f32.mrf.mxu1  ;;  %1834 = vmatmul.mubr.bf16.gmra.mxu0 %v3793_v57  ;;  %2853 = vmatmul.mubr.msk.bf16.gmra.mxu1 %vm3772_vm4, %v4130_v58 }
  0xee   : > { %2832 = vmatprep.mubr.msk.bf16.mxu0 %vm4017_vm6, %v3897_v50  ;;  %1938 = vmatprep.mubr.bf16.mxu1 %v4138_v63 }
  0xef   : > { %v2960_v52 = vpop.f32.mrf.mxu0  ;;  %v3032_v21 = vpop.f32.mrf.mxu1 }
  0xf0   : > { %v4537_v15 = vadd.f32 %v2960_v52, %v2959_v20  ;;  %v4539_v54 = vadd.f32 %v3032_v21, %v3031_v41 }
  0xf1   : > { %v2962_v37 = vpop.f32.mrf.mxu0  ;;  %v3034_v18 = vpop.f32.mrf.mxu1 }
  0xf3   : > { %v2963_v27 = vpop.f32.mrf.mxu0  ;;  %v3035_v55 = vpop.f32.mrf.mxu1 }
  0xf4   : > { %v4541_v51 = vadd.f32 %v2963_v27, %v2962_v37  ;;  %v4543_v29 = vadd.f32 %v3035_v55, %v3034_v18 }
  0xf5   : > { %v2965_v58 = vpop.f32.mrf.mxu0  ;;  %v3037_v0 = vpop.f32.mrf.mxu1  ;;  %1842 = vmatmul.mubr.bf16.gmra.mxu0 %v3847_v22  ;;  %2856 = vmatmul.mubr.msk.bf16.gmra.mxu1 %vm3772_vm4, %v4178_v16 }
  0xf6   : > { %2835 = vmatprep.mubr.msk.bf16.mxu0 %vm4017_vm6, %v3974_v30  ;;  %1946 = vmatprep.mubr.bf16.mxu1 %v4186_v34 }
  0xf7   : > { %v2966_v63 = vpop.f32.mrf.mxu0  ;;  %v3038_v17 = vpop.f32.mrf.mxu1 }
  0xf8   : > { %v4553_v62 = vadd.f32 %v2966_v63, %v2965_v58  ;;  %v4555_v12 = vadd.f32 %v3038_v17, %v3037_v0 }
  0xf9   : > { %v2968_v61 = vpop.f32.mrf.mxu0  ;;  %v3040_v1 = vpop.f32.mrf.mxu1 }
  0xfb   : > { %v2969_v10 = vpop.f32.mrf.mxu0  ;;  %v3041_v56 = vpop.f32.mrf.mxu1 }
  0xfc   : > { %v4557_v60 = vadd.f32 %v2969_v10, %v2968_v61  ;;  %v4559_v11 = vadd.f32 %v3041_v56, %v3040_v1 }
  0xfd   : > { %v2971_v16 = vpop.f32.mrf.mxu0  ;;  %v3043_v46 = vpop.f32.mrf.mxu1  ;;  %1850 = vmatmul.mubr.bf16.gmra.mxu0 %v5175_v26  ;;  %2859 = vmatmul.mubr.msk.bf16.gmra.mxu1 %vm3772_vm4, %v5176_v24 }
  0xfe   : > { %2838 = vmatprep.mubr.msk.bf16.mxu0 %vm4017_vm6, %v4341_v9  ;;  %1954 = vmatprep.mubr.bf16.mxu1 %v4231_v6 }
  0xff   : > { %v2972_v34 = vpop.f32.mrf.mxu0  ;;  %v3044_v49 = vpop.f32.mrf.mxu1 }
 0x100   : > { %v4569_v5 = vadd.f32 %v2972_v34, %v2971_v16  ;;  %v4571_v20 = vadd.f32 %v3044_v49, %v3043_v46 }
 0x101   : > { %v2974_v41 = vpop.f32.mrf.mxu0  ;;  %v3046_v52 = vpop.f32.mrf.mxu1 }
 0x103   : > { %v2975_v21 = vpop.f32.mrf.mxu0  ;;  %v3047_v37 = vpop.f32.mrf.mxu1 }
 0x104   : > { %v4573_v18 = vadd.f32 %v2975_v21, %v2974_v41  ;;  %v4575_v27 = vadd.f32 %v3047_v37, %v3046_v52 }
 0x105   : > { %v2977_v55 = vpop.f32.mrf.mxu0  ;;  %v3049_v58 = vpop.f32.mrf.mxu1  ;;  %1858 = vmatmul.mubr.bf16.gmra.mxu0 %v4345_v59  ;;  %2862 = vmatmul.mubr.msk.bf16.gmra.mxu1 %vm3772_vm4, %v4259_v31  ;;  %v4596_v31 = vld [vmem:[%s5162_s4] ss:$0 sm:$0xff] }
 0x106   : > { %1962 = vmatprep.mubr.bf16.mxu1 %v4267_v38  ;;  %3431 = vmatprep.mubr.msk.bf16.mxu0 %vm4017_vm6, %v4132_v32  ;;  %v1418_v49 = vadd.f32 %v4537_v15, %v4596_v31 }
 0x107   : > { %v2978_v6 = vpop.f32.mrf.mxu0  ;;  %v3050_v0 = vpop.f32.mrf.mxu1 }
 0x108   : > { %v4585_v63 = vadd.f32 %v2978_v6, %v2977_v55  ;;  %v4587_v17 = vadd.f32 %v3050_v0, %v3049_v58 }
 0x109   : > { %v2980_v61 = vpop.f32.mrf.mxu0  ;;  %v3052_v1 = vpop.f32.mrf.mxu1 }
 0x10b   : > { %v2981_v10 = vpop.f32.mrf.mxu0  ;;  %v3053_v56 = vpop.f32.mrf.mxu1 }
 0x10c   : > { %v4589_v16 = vadd.f32 %v2981_v10, %v2980_v61  ;;  %v4591_v46 = vadd.f32 %v3053_v56, %v3052_v1  ;;  %v1426_v1 = vadd.f32 %v4553_v62, %v4596_v31 }
 0x10d   : > { %v2983_v32 = vpop.f32.mrf.mxu0  ;;  %v3071_v38 = vpop.f32.mrf.mxu1  ;;  %2865 = vmatmul.mubr.msk.bf16.gmra.mxu1 %vm3772_vm4, %v4295_v2  ;;  %3432 = vmatmul.mubr.msk.bf16.vlgmr.msra.gmra.mxu0 %vm4017_vm6, %v4180_v4 }
 0x10e   : > { %1970 = vmatprep.mubr.bf16.mxu1 %v4303_v13  ;;  %3435 = vmatprep.mubr.msk.bf16.mxu0 %vm4017_vm6, %v4225_v28  ;;  %v1421_v13 = vadd.f32 %v4541_v51, %v4596_v31 }
 0x10f   : > { %v2984_v24 = vpop.f32.mrf.mxu0  ;;  %v3072_v34 = vpop.f32.mrf.mxu1 }
 0x110   : > { %v4610_v41 = vadd.f32 %v2984_v24, %v2983_v32  ;;  %v3073_v52 = vadd.f32 %v3072_v34, %v3071_v38 }
 0x111   : > { %v2986_v21 = vpop.f32.mrf.mxu0  ;;  %v3074_v2 = vpop.f32.mrf.mxu1 }
 0x112   : > { %v4612_v37 = vadd.f32 %v3073_v52, %v1418_v49 }
 0x113   : > { %v2987_v55 = vpop.f32.mrf.mxu0  ;;  %v3075_v4 = vpop.f32.mrf.mxu1 }
 0x114   : > { %v4616_v58 = vadd.f32 %v2987_v55, %v2986_v21  ;;  %v3076_v28 = vadd.f32 %v3075_v4, %v3074_v2  ;;  %v1434_v2 = vadd.f32 %v4569_v5, %v4596_v31 }
 0x115   : > { %v2989_v6 = vpop.f32.mrf.mxu0  ;;  %v3077_v0 = vpop.f32.mrf.mxu1  ;;  %2868 = vmatmul.mubr.msk.bf16.gmra.mxu1 %vm3772_vm4, %v4331_v40  ;;  %3436 = vmatmul.mubr.msk.bf16.gmra.mxu0 %vm4017_vm6, %v4261_v3 }
 0x116   : > { %v4624_v15 = vadd.f32 %v3076_v28, %v1421_v13  ;;  %1978 = vmatprep.mubr.bf16.mxu1 %v3715_v19  ;;  %3439 = vmatprep.mubr.msk.bf16.mxu0 %vm4017_vm6, %v4297_v44  ;;  %v1429_v19 = vadd.f32 %v4557_v60, %v4596_v31 }
 0x117   : > { %v2990_v51 = vpop.f32.mrf.mxu0  ;;  %v3078_v61 = vpop.f32.mrf.mxu1 }
 0x118   : > { %v4632_v10 = vadd.f32 %v2990_v51, %v2989_v6  ;;  %v3079_v40 = vadd.f32 %v3078_v61, %v3077_v0 }
 0x119   : > { %v2992_v56 = vpop.f32.mrf.mxu0  ;;  %v3080_v32 = vpop.f32.mrf.mxu1 }
 0x11a   : > { %v4634_v38 = vadd.f32 %v3079_v40, %v1426_v1  ;;  %v1442_v40 = vadd.f32 %v4585_v63, %v4596_v31 }
 0x11b   : > { %v2993_v3 = vpop.f32.mrf.mxu0  ;;  %v3081_v24 = vpop.f32.mrf.mxu1 }
 0x11c   : > { %v4638_v34 = vadd.f32 %v2993_v3, %v2992_v56  ;;  %v3082_v44 = vadd.f32 %v3081_v24, %v3080_v32 }
 0x11d   : > { %v2995_v49 = vpop.f32.mrf.mxu0  ;;  %v3083_v52 = vpop.f32.mrf.mxu1  ;;  %2871 = vmatmul.mubr.msk.bf16.gmra.mxu1 %vm3772_vm4, %v3762_v42  ;;  %3440 = vmatmul.mubr.msk.bf16.gmra.mxu0 %vm4017_vm6, %v4333_v48 }
 0x11e   : > { %v4646_v62 = vadd.f32 %v3082_v44, %v1429_v19  ;;  %1986 = vmatprep.mubr.bf16.mxu1 %v3793_v57  ;;  %3443 = vmatprep.mubr.msk.bf16.mxu0 %vm4017_vm6, %v4363_v25  ;;  %v1437_v57 = vadd.f32 %v4573_v18, %v4596_v31 }
 0x11f   : > { %v2996_v60 = vpop.f32.mrf.mxu0  ;;  %v3084_v21 = vpop.f32.mrf.mxu1 }
 0x120   : > { %v4654_v55 = vadd.f32 %v2996_v60, %v2995_v49  ;;  %v3085_v42 = vadd.f32 %v3084_v21, %v3083_v52 }
 0x121   : > { %v2998_v4 = vpop.f32.mrf.mxu0  ;;  %v3086_v13 = vpop.f32.mrf.mxu1 }
 0x122   : > { %v4656_v28 = vadd.f32 %v3085_v42, %v1434_v2 }
 0x123   : > { %v2999_v48 = vpop.f32.mrf.mxu0  ;;  %v3087_v6 = vpop.f32.mrf.mxu1 }
 0x124   : > { %v4660_v0 = vadd.f32 %v2999_v48, %v2998_v4  ;;  %v3088_v25 = vadd.f32 %v3087_v6, %v3086_v13  ;;  %v500_v13 = vld [vmem:[%s442_s22 + $0x8] sm:$0xff]  ;;  %v1453_v6 = vadd.f32 %v4616_v58, %v4596_v31 }
 0x125   : > { %v3001_v51 = vpop.f32.mrf.mxu0  ;;  %v3089_v61 = vpop.f32.mrf.mxu1  ;;  %2874 = vmatmul.mubr.msk.bf16.gmra.mxu1 %vm3772_vm4, %v3829_v8  ;;  %3444 = vmatmul.mubr.msk.bf16.gmra.mxu0 %vm4017_vm6, %v4388_v33 }
 0x126   : > { %v4668_v5 = vadd.f32 %v3088_v25, %v1437_v57  ;;  %1994 = vmatprep.mubr.bf16.mxu1 %v3847_v22  ;;  %3447 = vmatprep.mubr.msk.bf16.mxu0 %vm4017_vm6, %v4412_v45  ;;  %v1445_v22 = vadd.f32 %v4589_v16, %v4596_v31  ;;  %v1469_v14 = vadd.f32 %v4660_v0, %v4596_v31 }
 0x127   : > { %v3002_v18 = vpop.f32.mrf.mxu0  ;;  %v3090_v1 = vpop.f32.mrf.mxu1 }
 0x128   : > { %v4676_v56 = vadd.f32 %v3002_v18, %v3001_v51  ;;  %v3091_v8 = vadd.f32 %v3090_v1, %v3089_v61  ;;  %v512_v18 = vmul.f32 0.0, %v500_v13 }
 0x129   : > { %v3004_v32 = vpop.f32.mrf.mxu0  ;;  %v3092_v3 = vpop.f32.mrf.mxu1 }
 0x12a   : > { %v4678_v33 = vadd.f32 %v3091_v8, %v1442_v40  ;;  %v1458_v8 = vadd.f32 %v4632_v10, %v4596_v31 }
 0x12b   : > { %v3005_v24 = vpop.f32.mrf.mxu0  ;;  %v3093_v19 = vpop.f32.mrf.mxu1 }
 0x12c   : > { %v4682_v44 = vadd.f32 %v3005_v24, %v3004_v32  ;;  %v3094_v45 = vadd.f32 %v3093_v19, %v3092_v3  ;;  %v786_v19 = vrot.slane %v512_v18, 7 }
 0x12d   : > { %v3007_v49 = vpop.f32.mrf.mxu0  ;;  %v3095_v52 = vpop.f32.mrf.mxu1  ;;  %2877 = vmatmul.mubr.msk.bf16.gmra.mxu1 %vm3772_vm4, %v3891_v43  ;;  %3448 = vmatmul.mubr.msk.bf16.gmra.mxu0 %vm4017_vm6, %v4436_v35  ;;  %v1450_v43 = vadd.f32 %v4610_v41, %v4596_v31 }
 0x12e   : > { %v4691_v63 = vadd.f32 %v3094_v45, %v1445_v22  ;;  %2002 = vmatprep.mubr.bf16.mxu1 %v5175_v26  ;;  %3451 = vmatprep.mubr.msk.bf16.mxu0 %vm4017_vm6, %v3781_v53  ;;  %v499_v26 = vld [vmem:[%s442_s22] sm:$0xff]  ;;  %v1477_v7 = vadd.f32 %v4682_v44, %v4596_v31 }
 0x12f   : > { %v3008_v16 = vpop.f32.mrf.mxu0  ;;  %v3096_v60 = vpop.f32.mrf.mxu1  ;;  %v511_v41 = vmul.f32 0.0, %v499_v26 }
 0x130   : > { %v4702_v21 = vadd.f32 %v3008_v16, %v3007_v49  ;;  %v3097_v35 = vadd.f32 %v3096_v60, %v3095_v52  ;;  %v794_v49 = vrot.slane %v512_v18, 1 }
 0x131   : > { %v3010_v2 = vpop.f32.mrf.mxu0  ;;  %v3098_v42 = vpop.f32.mrf.mxu1  ;;  %v785_v24 = vrot.slane %v511_v41, 7  ;;  %v792_v45 = vpack.c.bf16 %v512_v18, %v511_v41 }
 0x132   : > { %v4704_v4 = vadd.f32 %v3097_v35, %v1450_v43 }
 0x133   : > { %v3011_v48 = vpop.f32.mrf.mxu0  ;;  %v3099_v53 = vpop.f32.mrf.mxu1 }
 0x134   : > { %v4708_v57 = vadd.f32 %v3011_v48, %v3010_v2  ;;  %v3100_v25 = vadd.f32 %v3099_v53, %v3098_v42  ;;  %v787_v2 = vsel %vm552_vm0, %v785_v24, %v786_v19  ;;  %v788_v42 = vsel %vm552_vm0, %v786_v19, %v785_v24 }
 0x135   : > { %v3013_v51 = vpop.f32.mrf.mxu0  ;;  %v3101_v61 = vpop.f32.mrf.mxu1  ;;  %2880 = vmatmul.mubr.msk.bf16.gmra.mxu1 %vm3772_vm4, %v3959_v23  ;;  %3452 = vmatmul.mubr.msk.bf16.gmra.mxu0 %vm4017_vm6, %v3885_v39  ;;  %v1466_v48 = vadd.f32 %v4654_v55, %v4596_v31  ;;  %v1474_v19 = vadd.f32 %v4676_v56, %v4596_v31 }
 0x136   : > { %v4716_v1 = vadd.f32 %v3100_v25, %v1453_v6  ;;  %2010 = vmatprep.mubr.bf16.mxu1 %v4345_v59  ;;  %3455 = vmatprep.mubr.msk.bf16.mxu0 %vm4017_vm6, %v3897_v50  ;;  %v793_v59 = vrot.slane %v511_v41, 1  ;;  %v1461_v50 = vadd.f32 %v4638_v34, %v4596_v31 }
 0x137   : > { %v3014_v58 = vpop.f32.mrf.mxu0  ;;  %v3102_v40 = vpop.f32.mrf.mxu1 }
 0x138   : > { %v4724_v23 = vadd.f32 %v3014_v58, %v3013_v51  ;;  %v3103_v32 = vadd.f32 %v3102_v40, %v3101_v61  ;;  %v796_v26 = vsel %vm685_vm1, %v794_v49, %v793_v59  ;;  %v2885_v61 = vpack.c.bf16 %v787_v2, %v788_v42 }
 0x139   : > { %v3016_v3 = vpop.f32.mrf.mxu0  ;;  %v3104_v39 = vpop.f32.mrf.mxu1 }
 0x13a   : > { %v4726_v22 = vadd.f32 %v3103_v32, %v1458_v8 }
 0x13b   : > { %v3017_v52 = vpop.f32.mrf.mxu0  ;;  %v3105_v16 = vpop.f32.mrf.mxu1 }
 0x13c   : > { %v4730_v60 = vadd.f32 %v3017_v52, %v3016_v3  ;;  %v3106_v10 = vadd.f32 %v3105_v16, %v3104_v39 }
 0x13d   : > { %v3019_v43 = vpop.f32.mrf.mxu0  ;;  %v3107_v35 = vpop.f32.mrf.mxu1  ;;  %2883 = vmatmul.mubr.msk.bf16.gmra.mxu1 %vm3772_vm4, %v4477_v36  ;;  %3456 = vmatmul.mubr.msk.bf16.gmra.mxu0 %vm4017_vm6, %v3974_v30  ;;  %v795_v36 = vsel %vm685_vm1, %v793_v59, %v794_v49 }
 0x13e   : > { %v4742_v34 = vadd.f32 %v3106_v10, %v1461_v50  ;;  %2018 = vmatprep.mubr.bf16.mxu1 %v792_v45  ;;  %3459 = vmatprep.mubr.msk.bf16.mxu0 %vm4017_vm6, %v4341_v9  ;;  %v2933_v41 = vpack.c.bf16 %v796_v26, %v795_v36  ;;  %v1482_v36 = vadd.f32 %v4702_v21, %v4596_v31 }
 0x13f   : > { %v3020_v30 = vpop.f32.mrf.mxu0  ;;  %v3108_v13 = vpop.f32.mrf.mxu1 }
 0x140   : > { %v4753_v53 = vadd.f32 %v3020_v30, %v3019_v43  ;;  %v3109_v6 = vadd.f32 %v3108_v13, %v3107_v35 }
 0x141   : > { %v3022_v25 = vpop.f32.mrf.mxu0  ;;  %v3110_v51 = vpop.f32.mrf.mxu1 }
 0x142   : > { %v4755_v18 = vadd.f32 %v3109_v6, %v1466_v48 }
 0x143   : > { %v3023_v9 = vpop.f32.mrf.mxu0  ;;  %v3111_v58 = vpop.f32.mrf.mxu1 }
 0x144   : > { %v4759_v40 = vadd.f32 %v3023_v9, %v3022_v25  ;;  %v3112_v8 = vadd.f32 %v3111_v58, %v3110_v51 }
 0x145   : > { %v3025_v32 = vpop.f32.mrf.mxu0  ;;  %v3113_v3 = vpop.f32.mrf.mxu1  ;;  %2886 = vmatmul.mubr.msk.bf16.gmra.mxu1 %vm3772_vm4, %v2885_v61  ;;  %3460 = vmatmul.mubr.msk.bf16.gmra.mxu0 %vm4017_vm6, %v2933_v41  ;;  %v1485_v61 = vadd.f32 %v4708_v57, %v4596_v31 }
 0x146   : > { %v4765_v55 = vadd.f32 %v3112_v8, %v1469_v14 }
 0x147   : > { %v3026_v39 = vpop.f32.mrf.mxu0  ;;  %v3114_v24 = vpop.f32.mrf.mxu1 }
 0x148   : > { %v4769_v45 = vadd.f32 %v3026_v39, %v3025_v32  ;;  %v3115_v0 = vadd.f32 %v3114_v24, %v3113_v3 }
 0x149   : > { %v3028_v59 = vpop.f32.mrf.mxu0  ;;  %v3116_v49 = vpop.f32.mrf.mxu1 }
 0x14a   : > { %v4771_v52 = vadd.f32 %v3115_v0, %v1474_v19 }
 0x14b   : > { %v3029_v16 = vpop.f32.mrf.mxu0  ;;  %v3117_v47 = vpop.f32.mrf.mxu1 }
 0x14c   : > { %v4775_v50 = vadd.f32 %v3029_v16, %v3028_v59  ;;  %v3118_v10 = vadd.f32 %v3117_v47, %v3116_v49 }
 0x14d   : > { %v3119_v43 = vpop.f32.mrf.mxu1  ;;  %v3183_v35 = vpop.f32.mrf.mxu0 }
 0x14e   : > { %v4777_v2 = vadd.f32 %v3118_v10, %v1477_v7 }
 0x14f   : > { %v3120_v56 = vpop.f32.mrf.mxu1  ;;  %v3184_v42 = vpop.f32.mrf.mxu0 }
 0x150   : > { %v3121_v26 = vadd.f32 %v3120_v56, %v3119_v43  ;;  %v3185_v30 = vadd.f32 %v3184_v42, %v3183_v35 }
 0x151   : > { %v3122_v13 = vpop.f32.mrf.mxu1  ;;  %v3186_v48 = vpop.f32.mrf.mxu0 }
 0x152   : > { %v4781_v6 = vadd.f32 %v3121_v26, %v1482_v36  ;;  %v4784_v44 = vadd.f32 %v3185_v30, %v4612_v37  ;;  %v1490_v37 = vadd.f32 %v4724_v23, %v4596_v31 }
 0x153   : > { %v3123_v25 = vpop.f32.mrf.mxu1  ;;  %v3187_v51 = vpop.f32.mrf.mxu0 }
 0x154   : > { %v3124_v41 = vadd.f32 %v3123_v25, %v3122_v13  ;;  %v3188_v9 = vadd.f32 %v3187_v51, %v3186_v48 }
 0x155   : > { %v3125_v58 = vpop.f32.mrf.mxu1  ;;  %v3189_v14 = vpop.f32.mrf.mxu0 }
 0x156   : > { %v4788_v8 = vadd.f32 %v3124_v41, %v1485_v61  ;;  %v4791_v21 = vadd.f32 %v3188_v9, %v4624_v15  ;;  %v1493_v15 = vadd.f32 %v4730_v60, %v4596_v31 }
 0x157   : > { %v3126_v32 = vpop.f32.mrf.mxu1  ;;  %v3190_v3 = vpop.f32.mrf.mxu0 }
 0x158   : > { %v3127_v39 = vadd.f32 %v3126_v32, %v3125_v58  ;;  %v3191_v24 = vadd.f32 %v3190_v3, %v3189_v14 }
 0x159   : > { %v3128_v19 = vpop.f32.mrf.mxu1  ;;  %v3192_v0 = vpop.f32.mrf.mxu0 }
 0x15a   : > { %v4795_v59 = vadd.f32 %v3127_v39, %v1490_v37  ;;  %v4798_v57 = vadd.f32 %v3191_v24, %v4634_v38  ;;  %v1498_v38 = vadd.f32 %v4753_v53, %v4596_v31 }
 0x15b   : > { %v3129_v49 = vpop.f32.mrf.mxu1  ;;  %v3193_v16 = vpop.f32.mrf.mxu0 }
 0x15c   : > { %v3130_v47 = vadd.f32 %v3129_v49, %v3128_v19  ;;  %v3194_v7 = vadd.f32 %v3193_v16, %v3192_v0 }
 0x15d   : > { %v3131_v10 = vpop.f32.mrf.mxu1  ;;  %v3195_v43 = vpop.f32.mrf.mxu0 }
 0x15e   : > { %v4802_v35 = vadd.f32 %v3130_v47, %v1493_v15  ;;  %v4805_v23 = vadd.f32 %v3194_v7, %v4646_v62  ;;  %v1501_v62 = vadd.f32 %v4759_v40, %v4596_v31 }
 0x15f   : > { %v3132_v56 = vpop.f32.mrf.mxu1  ;;  %v3196_v42 = vpop.f32.mrf.mxu0 }
 0x160   : > { %v3133_v36 = vadd.f32 %v3132_v56, %v3131_v10  ;;  %v3197_v26 = vadd.f32 %v3196_v42, %v3195_v43 }
 0x161   : > { %v3134_v30 = vpop.f32.mrf.mxu1  ;;  %v3198_v13 = vpop.f32.mrf.mxu0 }
 0x162   : > { %v4809_v48 = vadd.f32 %v3133_v36, %v1498_v38  ;;  %v4812_v60 = vadd.f32 %v3197_v26, %v4656_v28  ;;  %v1506_v28 = vadd.f32 %v4769_v45, %v4596_v31 }
 0x163   : > { %v3135_v25 = vpop.f32.mrf.mxu1  ;;  %v3199_v51 = vpop.f32.mrf.mxu0 }
 0x164   : > { %v3136_v61 = vadd.f32 %v3135_v25, %v3134_v30  ;;  %v3200_v41 = vadd.f32 %v3199_v51, %v3198_v13 }
 0x165   : > { %v3137_v9 = vpop.f32.mrf.mxu1  ;;  %v3201_v58 = vpop.f32.mrf.mxu0 }
 0x166   : > { %v4816_v14 = vadd.f32 %v3136_v61, %v1501_v62  ;;  %v4819_v53 = vadd.f32 %v3200_v41, %v4668_v5  ;;  %v1509_v5 = vadd.f32 %v4775_v50, %v4596_v31 }
 0x167   : > { %v3138_v32 = vpop.f32.mrf.mxu1  ;;  %v3202_v3 = vpop.f32.mrf.mxu0 }
 0x168   : > { %v3139_v37 = vadd.f32 %v3138_v32, %v3137_v9  ;;  %v3203_v39 = vadd.f32 %v3202_v3, %v3201_v58 }
 0x169   : > { %v3140_v24 = vpop.f32.mrf.mxu1  ;;  %v3204_v19 = vpop.f32.mrf.mxu0 }
 0x16a   : > { %v4823_v0 = vadd.f32 %v3139_v37, %v1506_v28  ;;  %v4826_v40 = vadd.f32 %v3203_v39, %v4678_v33  ;;  %v1514_v33 = vadd.f32 %v4539_v54, %v4596_v31 }
 0x16b   : > { %v3141_v49 = vpop.f32.mrf.mxu1  ;;  %v3205_v16 = vpop.f32.mrf.mxu0 }
 0x16c   : > { %v3142_v15 = vadd.f32 %v3141_v49, %v3140_v24  ;;  %v3206_v47 = vadd.f32 %v3205_v16, %v3204_v19 }
 0x16d   : > { %v3143_v7 = vpop.f32.mrf.mxu1  ;;  %v3207_v10 = vpop.f32.mrf.mxu0 }
 0x16e   : > { %v4830_v43 = vadd.f32 %v3142_v15, %v1509_v5  ;;  %v4833_v45 = vadd.f32 %v3206_v47, %v4691_v63  ;;  %v1517_v63 = vadd.f32 %v4543_v29, %v4596_v31 }
 0x16f   : > { %v3144_v56 = vpop.f32.mrf.mxu1  ;;  %v3208_v42 = vpop.f32.mrf.mxu0 }
 0x170   : > { %v3145_v38 = vadd.f32 %v3144_v56, %v3143_v7  ;;  %v3209_v36 = vadd.f32 %v3208_v42, %v3207_v10 }
 0x171   : > { %v3146_v26 = vpop.f32.mrf.mxu1  ;;  %v3210_v30 = vpop.f32.mrf.mxu0 }
 0x172   : > { %v4837_v13 = vadd.f32 %v3145_v38, %v1514_v33  ;;  %v4840_v50 = vadd.f32 %v3209_v36, %v4704_v4  ;;  %v1522_v4 = vadd.f32 %v4555_v12, %v4596_v31 }
 0x173   : > { %v3147_v25 = vpop.f32.mrf.mxu1  ;;  %v3211_v51 = vpop.f32.mrf.mxu0 }
 0x174   : > { %v3148_v62 = vadd.f32 %v3147_v25, %v3146_v26  ;;  %v3212_v61 = vadd.f32 %v3211_v51, %v3210_v30 }
 0x175   : > { %v3149_v41 = vpop.f32.mrf.mxu1  ;;  %v3213_v9 = vpop.f32.mrf.mxu0 }
 0x176   : > { %v4844_v58 = vadd.f32 %v3148_v62, %v1517_v63  ;;  %v4847_v54 = vadd.f32 %v3212_v61, %v4716_v1  ;;  %v1525_v1 = vadd.f32 %v4559_v11, %v4596_v31 }
 0x177   : > { %v3150_v32 = vpop.f32.mrf.mxu1  ;;  %v3214_v3 = vpop.f32.mrf.mxu0 }
 0x178   : > { %v3151_v28 = vadd.f32 %v3150_v32, %v3149_v41  ;;  %v3215_v37 = vadd.f32 %v3214_v3, %v3213_v9 }
 0x179   : > { %v3152_v39 = vpop.f32.mrf.mxu1  ;;  %v3216_v24 = vpop.f32.mrf.mxu0 }
 0x17a   : > { %v4851_v19 = vadd.f32 %v3151_v28, %v1522_v4  ;;  %v4854_v29 = vadd.f32 %v3215_v37, %v4726_v22  ;;  %v1530_v22 = vadd.f32 %v4571_v20, %v4596_v31 }
 0x17b   : > { %v3153_v49 = vpop.f32.mrf.mxu1  ;;  %v3217_v16 = vpop.f32.mrf.mxu0 }
 0x17c   : > { %v3154_v5 = vadd.f32 %v3153_v49, %v3152_v39  ;;  %v3218_v15 = vadd.f32 %v3217_v16, %v3216_v24 }
 0x17d   : > { %v3155_v47 = vpop.f32.mrf.mxu1  ;;  %v3219_v7 = vpop.f32.mrf.mxu0 }
 0x17e   : > { %v4858_v10 = vadd.f32 %v3154_v5, %v1525_v1  ;;  %v4861_v12 = vadd.f32 %v3218_v15, %v4742_v34  ;;  %v1533_v34 = vadd.f32 %v4575_v27, %v4596_v31 }
 0x17f   : > { %v3156_v56 = vpop.f32.mrf.mxu1  ;;  %v3220_v42 = vpop.f32.mrf.mxu0 }
 0x180   : > { %v3157_v33 = vadd.f32 %v3156_v56, %v3155_v47  ;;  %v3221_v38 = vadd.f32 %v3220_v42, %v3219_v7 }
 0x181   : > { %v3158_v36 = vpop.f32.mrf.mxu1  ;;  %v3222_v26 = vpop.f32.mrf.mxu0 }
 0x182   : > { %v4865_v30 = vadd.f32 %v3157_v33, %v1530_v22  ;;  %v4868_v11 = vadd.f32 %v3221_v38, %v4755_v18  ;;  %v1538_v18 = vadd.f32 %v4587_v17, %v4596_v31 }
 0x183   : > { %v3159_v25 = vpop.f32.mrf.mxu1  ;;  %v3223_v51 = vpop.f32.mrf.mxu0 }
 0x184   : > { %v3160_v63 = vadd.f32 %v3159_v25, %v3158_v36  ;;  %v3224_v62 = vadd.f32 %v3223_v51, %v3222_v26 }
 0x185   : > { %v3161_v61 = vpop.f32.mrf.mxu1  ;;  %v3225_v41 = vpop.f32.mrf.mxu0 }
 0x186   : > { %v4872_v9 = vadd.f32 %v3160_v63, %v1533_v34  ;;  %v4875_v20 = vadd.f32 %v3224_v62, %v4765_v55  ;;  %v1541_v55 = vadd.f32 %v4591_v46, %v4596_v31 }
 0x187   : > { %v3162_v32 = vpop.f32.mrf.mxu1  ;;  %v3226_v3 = vpop.f32.mrf.mxu0 }
 0x188   : > { %v3163_v4 = vadd.f32 %v3162_v32, %v3161_v61  ;;  %v3227_v28 = vadd.f32 %v3226_v3, %v3225_v41 }
 0x189   : > { %v3164_v37 = vpop.f32.mrf.mxu1  ;;  %v3228_v39 = vpop.f32.mrf.mxu0 }
 0x18a   : > { %v4879_v24 = vadd.f32 %v3163_v4, %v1538_v18  ;;  %v4882_v27 = vadd.f32 %v3227_v28, %v4771_v52 }
 0x18b   : > { %v3165_v49 = vpop.f32.mrf.mxu1  ;;  %v3229_v16 = vpop.f32.mrf.mxu0 }
 0x18c   : > { %v3166_v1 = vadd.f32 %v3165_v49, %v3164_v37  ;;  %v3230_v5 = vadd.f32 %v3229_v16, %v3228_v39 }
 0x18d   : > { %v3231_v15 = vpop.f32.mrf.mxu0  ;;  %v4886_v47 = vpop.f32.mrf.mxu1 }
 0x18e   : > { %v4888_v17 = vadd.f32 %v3166_v1, %v1541_v55  ;;  %v4891_v7 = vadd.f32 %v3230_v5, %v4777_v2 }
 0x18f   : > { %v3232_v56 = vpop.f32.mrf.mxu0  ;;  %v4893_v42 = vpop.f32.mrf.mxu1 }
 0x190   : > { %v3233_v52 = vadd.f32 %v3232_v56, %v3231_v15 }
 0x191   : > { %v3234_v22 = vpop.f32.mrf.mxu0  ;;  %v4895_v33 = vpop.f32.mrf.mxu1 }
 0x192   : > { %v4898_v38 = vadd.f32 %v3233_v52, %v4781_v6 }
 0x193   : > { %v3235_v46 = vpop.f32.mrf.mxu0  ;;  %v4900_v31 = vpop.f32.mrf.mxu1 }
 0x194   : > { %v3236_v36 = vadd.f32 %v3235_v46, %v3234_v22 }
 0x195   : > { %v3237_v26 = vpop.f32.mrf.mxu0  ;;  %v4902_v25 = vpop.f32.mrf.mxu1 }
 0x196   : > { %v4905_v2 = vadd.f32 %v3236_v36, %v4788_v8 }
 0x197   : > { %v3238_v51 = vpop.f32.mrf.mxu0  ;;  %v4907_v34 = vpop.f32.mrf.mxu1 }
 0x198   : > { %v3239_v63 = vadd.f32 %v3238_v51, %v3237_v26 }
 0x199   : > { %v3240_v62 = vpop.f32.mrf.mxu0  ;;  %v4909_v61 = vpop.f32.mrf.mxu1 }
 0x19a   : > { %v4912_v6 = vadd.f32 %v3239_v63, %v4795_v59 }
 0x19b   : > { %v3241_v41 = vpop.f32.mrf.mxu0  ;;  %v4914_v32 = vpop.f32.mrf.mxu1 }
 0x19c   : > { %v3242_v3 = vadd.f32 %v3241_v41, %v3240_v62 }
 0x19d   : > { %v3243_v18 = vpop.f32.mrf.mxu0  ;;  %v4916_v4 = vpop.f32.mrf.mxu1 }
 0x19e   : > { %v4919_v8 = vadd.f32 %v3242_v3, %v4802_v35 }
 0x19f   : > { %v3244_v28 = vpop.f32.mrf.mxu0  ;;  %v4921_v37 = vpop.f32.mrf.mxu1 }
 0x1a0   : > { %v3245_v39 = vadd.f32 %v3244_v28, %v3243_v18 }
 0x1a1   : > { %v3246_v49 = vpop.f32.mrf.mxu0  ;;  %v4923_v16 = vpop.f32.mrf.mxu1 }
 0x1a2   : > { %v4926_v59 = vadd.f32 %v3245_v39, %v4809_v48 }
 0x1a3   : > { %v3247_v55 = vpop.f32.mrf.mxu0  ;;  %v4928_v1 = vpop.f32.mrf.mxu1 }
 0x1a4   : > { %5177 = vst [vmem:[#allocation2_spill] sm:$0xff] %v4926_v59  ;;  %v3248_v5 = vadd.f32 %v3247_v55, %v3246_v49 }
 0x1a5   : > { %v3249_v15 = vpop.f32.mrf.mxu0  ;;  %v4930_v56 = vpop.f32.mrf.mxu1 }
 0x1a6   : > { %v4933_v35 = vadd.f32 %v3248_v5, %v4816_v14 }
 0x1a7   : > { %v3250_v52 = vpop.f32.mrf.mxu0  ;;  %v4935_v22 = vpop.f32.mrf.mxu1 }
 0x1a8   : > { %5178 = vst [vmem:[#allocation3_spill] sm:$0xff] %v4933_v35  ;;  %v3251_v46 = vadd.f32 %v3250_v52, %v3249_v15 }
 0x1a9   : > { %v3252_v36 = vpop.f32.mrf.mxu0  ;;  %v4937_v26 = vpop.f32.mrf.mxu1 }
 0x1aa   : > { %v4940_v48 = vadd.f32 %v3251_v46, %v4823_v0 }
 0x1ab   : > { %v3253_v51 = vpop.f32.mrf.mxu0  ;;  %v4942_v63 = vpop.f32.mrf.mxu1 }
 0x1ac   : > { %5179 = vst [vmem:[#allocation4_spill] sm:$0xff] %v4940_v48  ;;  %v3254_v62 = vadd.f32 %v3253_v51, %v3252_v36 }
 0x1ad   : > { %v3255_v41 = vpop.f32.mrf.mxu0  ;;  %v4944_v3 = vpop.f32.mrf.mxu1 }
 0x1ae   : > { %v4947_v14 = vadd.f32 %v3254_v62, %v4830_v43 }
 0x1af   : > { %v3256_v18 = vpop.f32.mrf.mxu0  ;;  %v4949_v28 = vpop.f32.mrf.mxu1 }
 0x1b0   : > { %5180 = vst [vmem:[#allocation5_spill] sm:$0xff] %v4947_v14  ;;  %v3257_v39 = vadd.f32 %v3256_v18, %v3255_v41 }
 0x1b1   : > { %v3258_v49 = vpop.f32.mrf.mxu0  ;;  %v4951_v55 = vpop.f32.mrf.mxu1 }
 0x1b2   : > { %v4954_v0 = vadd.f32 %v3257_v39, %v4837_v13 }
 0x1b3   : > { %v3259_v5 = vpop.f32.mrf.mxu0  ;;  %v4956_v15 = vpop.f32.mrf.mxu1 }
 0x1b4   : > { %5181 = vst [vmem:[#allocation6_spill] sm:$0xff] %v4954_v0  ;;  %v3260_v52 = vadd.f32 %v3259_v5, %v3258_v49 }
 0x1b5   : > { %v3261_v46 = vpop.f32.mrf.mxu0  ;;  %v4958_v36 = vpop.f32.mrf.mxu1 }
 0x1b6   : > { %v4961_v43 = vadd.f32 %v3260_v52, %v4844_v58 }
 0x1b7   : > { %v3262_v51 = vpop.f32.mrf.mxu0  ;;  %v4963_v62 = vpop.f32.mrf.mxu1 }
 0x1b8   : > { %5182 = vst [vmem:[#allocation7_spill] sm:$0xff] %v4961_v43  ;;  %v3263_v41 = vadd.f32 %v3262_v51, %v3261_v46 }
 0x1b9   : > { %v3264_v18 = vpop.f32.mrf.mxu0  ;;  %v4965_v35 = vpop.f32.mrf.mxu1 }
 0x1ba   : > { %v4968_v13 = vadd.f32 %v3263_v41, %v4851_v19 }
 0x1bb   : > { %v3265_v39 = vpop.f32.mrf.mxu0  ;;  %v4970_v0 = vpop.f32.mrf.mxu1 }
 0x1bc   : > { %5183 = vst [vmem:[#allocation8_spill] sm:$0xff] %v4968_v13  ;;  %v3266_v49 = vadd.f32 %v3265_v39, %v3264_v18 }
 0x1bd   : > { %v3267_v5 = vpop.f32.mrf.mxu0  ;;  %v4972_v14 = vpop.f32.mrf.mxu1 }
 0x1be   : > { %v4975_v58 = vadd.f32 %v3266_v49, %v4858_v10 }
 0x1bf   : > { %v3268_v52 = vpop.f32.mrf.mxu0  ;;  %v4977_v43 = vpop.f32.mrf.mxu1 }
 0x1c0   : > { %5184 = vst [vmem:[#allocation9_spill] sm:$0xff] %v4975_v58  ;;  %v3269_v46 = vadd.f32 %v3268_v52, %v3267_v5  ;;  %v3303_v5 = vadd.f32 %v4907_v34, %v4902_v25 }
 0x1c1   : > { %v3270_v51 = vpop.f32.mrf.mxu0  ;;  %v4979_v59 = vpop.f32.mrf.mxu1 }
 0x1c2   : > { %v4982_v19 = vadd.f32 %v3269_v46, %v4865_v30  ;;  %v1909_v25 = vadd.f32 %v3303_v5, %v4798_v57 }
 0x1c3   : > { %v3271_v41 = vpop.f32.mrf.mxu0  ;;  %v4984_v13 = vpop.f32.mrf.mxu1 }
 0x1c4   : > { %5185 = vst [vmem:[#allocation10_spill] sm:$0xff] %v4982_v19  ;;  %v3272_v18 = vadd.f32 %v3271_v41, %v3270_v51  ;;  %v3297_v51 = vadd.f32 %v4893_v42, %v4886_v47 }
 0x1c5   : > { %v3273_v39 = vpop.f32.mrf.mxu0  ;;  %v4986_v48 = vpop.f32.mrf.mxu1 }
 0x1c6   : > { %v4989_v10 = vadd.f32 %v3272_v18, %v4872_v9  ;;  %v3306_v18 = vadd.f32 %v4914_v32, %v4909_v61  ;;  %v1901_v42 = vadd.f32 %v3297_v51, %v4784_v44  ;;  %v3315_v32 = vadd.f32 %v4935_v22, %v4930_v56 }
 0x1c7   : > { %v3274_v49 = vpop.f32.mrf.mxu0  ;;  %v4991_v58 = vpop.f32.mrf.mxu1  ;;  %v3318_v51 = vadd.f32 %v4942_v63, %v4937_v26 }
 0x1c8   : > { %5186 = vst [vmem:[#allocation11_spill] sm:$0xff] %v4989_v10  ;;  %v3275_v52 = vadd.f32 %v3274_v49, %v3273_v39  ;;  %v3300_v49 = vadd.f32 %v4900_v31, %v4895_v33 }
 0x1c9   : > { %v3276_v30 = vpop.f32.mrf.mxu0  ;;  %v4995_v46 = vpop.f32.mrf.mxu1 }
 0x1ca   : > { %v5000_v41 = vadd.f32 %v3275_v52, %v4879_v24  ;;  %v1904_v52 = vadd.f32 %v3300_v49, %v4791_v21 }
 0x1cb   : > { %v3277_v19 = vpop.f32.mrf.mxu0  ;;  %v5002_v9 = vpop.f32.mrf.mxu1 }
 0x1cc   : > { %v3278_v10 = vadd.f32 %v3277_v19, %v3276_v30  ;;  %v3309_v30 = vadd.f32 %v4921_v37, %v4916_v4  ;;  %v3312_v4 = vadd.f32 %v4928_v1, %v4923_v16  ;;  %v3327_v37 = vadd.f32 %v4963_v62, %v4958_v36 }
 0x1cd   : > { %v5007_v34 = vpop.f32.mrf.mxu1  ;;  %v3433_v39 = vpop.f32.mrf.mxu0 }
 0x1ce   : > { %v5012_v47 = vadd.f32 %v3278_v10, %v4888_v17  ;;  %v2070_v24 = vadd.f32 %v3433_v39, %v1909_v25  ;;  %v1912_v17 = vadd.f32 %v3306_v18, %v4805_v23  ;;  %v1925_v25 = vadd.f32 %v3315_v32, %v4826_v40 }
 0x1cf   : > { %v5021_v61 = vpop.f32.mrf.mxu1  ;;  %v2061_v57 = vpop.f32.mrf.mxu0  ;;  %v1917_v63 = vadd.f32 %v3309_v30, %v4812_v60  ;;  %v1928_v40 = vadd.f32 %v3318_v51, %v4833_v45  ;;  %v3330_v45 = vadd.f32 %v4970_v0, %v4965_v35  ;;  %v1920_v51 = vadd.f32 %v3312_v4, %v4819_v53 }
 0x1d0   : > { %v2190_v33 = vmax.f32 %v2070_v24, 0.0  ;;  %v2062_v31 = vadd.f32 %v2061_v57, %v1901_v42 }
 0x1d1   : > { %v5026_v19 = vpop.f32.mrf.mxu1  ;;  %v3434_v44 = vpop.f32.mrf.mxu0 }
 0x1d2   : > { %2222 = vst [vmem:[%s5019_s29 + $0x10] sm:$0xff] %v2190_v33  ;;  %v2188_v10 = vmax.f32 %v2062_v31, 0.0  ;;  %v2073_v5 = vadd.f32 %v3434_v44, %v1912_v17  ;;  %v3321_v44 = vadd.f32 %v4949_v28, %v4944_v3  ;;  %v2291_v62 = vmul.f32 %v2190_v33, %v2190_v33 }
 0x1d3   : > { %v5034_v56 = vpop.f32.mrf.mxu1  ;;  %v2064_v22 = vpop.f32.mrf.mxu0  ;;  %v1941_v28 = vadd.f32 %v3327_v37, %v4854_v29 }
 0x1d4   : > { %2220 = vst [vmem:[%s5019_s29] sm:$0xff] %v2188_v10  ;;  %v2191_v23 = vmax.f32 %v2073_v5, 0.0  ;;  %v2065_v18 = vadd.f32 %v2064_v22, %v1904_v52  ;;  %v2289_v57 = vmul.f32 %v2188_v10, %v2188_v10  ;;  %v1933_v0 = vadd.f32 %v3321_v44, %v4840_v50 }
 0x1d5   : > { %v5038_v39 = vpop.f32.mrf.mxu1  ;;  %v3437_v24 = vpop.f32.mrf.mxu0 }
 0x1d6   : > { %2223 = vst [vmem:[%s5019_s29 + $0x18] sm:$0xff] %v2191_v23  ;;  %v2189_v21 = vmax.f32 %v2065_v18, 0.0  ;;  %v2086_v49 = vadd.f32 %v3437_v24, %v1925_v25  ;;  %v2292_v22 = vmul.f32 %v2191_v23, %v2191_v23 }
 0x1d7   : > { %v5045_v26 = vpop.f32.mrf.mxu1  ;;  %v2077_v42 = vpop.f32.mrf.mxu0 }
 0x1d8   : > { %2221 = vst [vmem:[%s5019_s29 + $0x8] sm:$0xff] %v2189_v21  ;;  %v2252_v32 = vadd.f32 %v2189_v21, %v2188_v10  ;;  %v2290_v31 = vmul.f32 %v2189_v21, %v2189_v21  ;;  %v2194_v17 = vmax.f32 %v2086_v49, 0.0  ;;  %v2078_v16 = vadd.f32 %v2077_v42, %v1917_v63 }
 0x1d9   : > { %v5052_v1 = vpop.f32.mrf.mxu1  ;;  %v3438_v36 = vpop.f32.mrf.mxu0 }
 0x1da   : > { %v2253_v5 = vadd.f32 %v2252_v32, %v2190_v33  ;;  %v2321_v52 = vadd.f32 %v2290_v31, %v2289_v57  ;;  %2226 = vst [vmem:[%s5019_s29 + $0x30] sm:$0xff] %v2194_v17  ;;  %v2089_v60 = vadd.f32 %v3438_v36, %v1928_v40  ;;  %v2192_v30 = vmax.f32 %v2078_v16, 0.0 }
 0x1db   : > { %v5057_v10 = vpop.f32.mrf.mxu1  ;;  %v2080_v3 = vpop.f32.mrf.mxu0  ;;  %v3324_v33 = vadd.f32 %v4956_v15, %v4951_v55  ;;  %v1944_v55 = vadd.f32 %v3330_v45, %v4861_v12  ;;  %v3339_v15 = vadd.f32 %v4991_v58, %v4986_v48  ;;  %v3333_v36 = vadd.f32 %v4977_v43, %v4972_v14 }
 0x1dc   : > { %v2322_v18 = vadd.f32 %v2321_v52, %v2291_v62  ;;  %v2254_v25 = vadd.f32 %v2253_v5, %v2191_v23  ;;  %v2195_v24 = vmax.f32 %v2089_v60, 0.0  ;;  %2224 = vst [vmem:[%s5019_s29 + $0x20] sm:$0xff] %v2192_v30  ;;  %v2081_v21 = vadd.f32 %v2080_v3, %v1920_v51 }
 0x1dd   : > { %v5064_v49 = vpop.f32.mrf.mxu1  ;;  %v3441_v35 = vpop.f32.mrf.mxu0  ;;  %v2293_v4 = vmul.f32 %v2192_v30, %v2192_v30  ;;  %v1936_v12 = vadd.f32 %v3324_v33, %v4847_v54  ;;  %v3342_v48 = vadd.f32 %v5002_v9, %v4995_v46  ;;  %v2295_v58 = vmul.f32 %v2194_v17, %v2194_v17 }
 0x1de   : > { %v2255_v53 = vadd.f32 %v2254_v25, %v2192_v30  ;;  %v2323_v63 = vadd.f32 %v2322_v18, %v2292_v22  ;;  %2227 = vst [vmem:[%s5019_s29 + $0x38] sm:$0xff] %v2195_v24  ;;  %v2102_v29 = vadd.f32 %v3441_v35, %v1941_v28  ;;  %v2193_v37 = vmax.f32 %v2081_v21, 0.0 }
 0x1df   : > { %v5068_v23 = vpop.f32.mrf.mxu1  ;;  %v2093_v42 = vpop.f32.mrf.mxu0  ;;  %v1957_v14 = vadd.f32 %v3339_v15, %v4882_v27  ;;  %v2296_v43 = vmul.f32 %v2195_v24, %v2195_v24  ;;  %v3336_v46 = vadd.f32 %v4984_v13, %v4979_v59  ;;  %v1949_v25 = vadd.f32 %v3333_v36, %v4868_v11 }
 0x1e0   : > { %v2324_v40 = vadd.f32 %v2323_v63, %v2293_v4  ;;  %v2198_v57 = vmax.f32 %v2102_v29, 0.0  ;;  %v2094_v32 = vadd.f32 %v2093_v42, %v1933_v0  ;;  %2225 = vst [vmem:[%s5019_s29 + $0x28] sm:$0xff] %v2193_v37  ;;  %v2256_v50 = vadd.f32 %v2255_v53, %v2193_v37 }
 0x1e1   : > { %v2294_v31 = vmul.f32 %v2193_v37, %v2193_v37  ;;  %v5074_v44 = vpop.f32.mrf.mxu1  ;;  %v3442_v16 = vpop.f32.mrf.mxu0  ;;  %v1960_v53 = vadd.f32 %v3342_v48, %v4891_v7  ;;  %v3345_v42 = vadd.f32 %v5021_v61, %v5007_v34  ;;  %v1952_v7 = vadd.f32 %v3336_v46, %v4875_v20 }
 0x1e2   : > { %2230 = vst [vmem:[%s5019_s29 + $0x50] sm:$0xff] %v2198_v57  ;;  %v2196_v62 = vmax.f32 %v2094_v32, 0.0  ;;  %v2105_v5 = vadd.f32 %v3442_v16, %v1944_v55  ;;  %v2257_v52 = vadd.f32 %v2256_v50, %v2194_v17 }
 0x1e3   : > { %v2325_v60 = vadd.f32 %v2324_v40, %v2294_v31  ;;  %v5082_v45 = vpop.f32.mrf.mxu1  ;;  %v2096_v30 = vpop.f32.mrf.mxu0  ;;  %v1965_v48 = vadd.f32 %v3345_v42, %v4898_v38  ;;  %v3357_v38 = vadd.f32 %v5068_v23, %v5064_v49 }
 0x1e4   : > { %2228 = vst [vmem:[%s5019_s29 + $0x40] sm:$0xff] %v2196_v62  ;;  %v2199_v51 = vmax.f32 %v2105_v5, 0.0  ;;  %v2097_v3 = vadd.f32 %v2096_v30, %v1936_v12  ;;  %v2258_v22 = vadd.f32 %v2257_v52, %v2195_v24  ;;  %v2297_v21 = vmul.f32 %v2196_v62, %v2196_v62 }
 0x1e5   : > { %v2326_v28 = vadd.f32 %v2325_v60, %v2295_v58  ;;  %v3361_v54 = vpop.f32.mrf.mxu1  ;;  %v3445_v18 = vpop.f32.mrf.mxu0  ;;  %v3351_v24 = vadd.f32 %v5045_v26, %v5038_v39  ;;  %v3354_v39 = vadd.f32 %v5057_v10, %v5052_v1  ;;  %v2299_v26 = vmul.f32 %v2198_v57, %v2198_v57 }
 0x1e6   : > { %2231 = vst [vmem:[%s5019_s29 + $0x58] sm:$0xff] %v2199_v51  ;;  %v2197_v9 = vmax.f32 %v2097_v3, 0.0  ;;  %v2118_v17 = vadd.f32 %v3445_v18, %v1957_v14  ;;  %v2259_v33 = vadd.f32 %v2258_v22, %v2196_v62  ;;  %v2300_v34 = vmul.f32 %v2199_v51, %v2199_v51 }
 0x1e7   : > { %v2327_v35 = vadd.f32 %v2326_v28, %v2296_v43  ;;  %v3362_v0 = vpop.f32.mrf.mxu1  ;;  %v2109_v27 = vpop.f32.mrf.mxu0  ;;  %v1973_v62 = vadd.f32 %v3351_v24, %v4912_v6  ;;  %v3348_v1 = vadd.f32 %v5034_v56, %v5026_v19  ;;  %v1976_v3 = vadd.f32 %v3354_v39, %v4919_v8 }
 0x1e8   : > { %2229 = vst [vmem:[%s5019_s29 + $0x48] sm:$0xff] %v2197_v9  ;;  %v2298_v4 = vmul.f32 %v2197_v9, %v2197_v9  ;;  %v2202_v63 = vmax.f32 %v2118_v17, 0.0  ;;  %v2110_v59 = vadd.f32 %v2109_v27, %v1949_v25  ;;  %v2260_v29 = vadd.f32 %v2259_v33, %v2197_v9 }
 0x1e9   : > { %v2328_v13 = vadd.f32 %v2327_v35, %v2297_v21  ;;  %v3364_v37 = vpop.f32.mrf.mxu1  ;;  %v3446_v11 = vpop.f32.mrf.mxu0  ;;  %v3363_v14 = vadd.f32 %v3362_v0, %v3361_v54  ;;  %v1968_v17 = vadd.f32 %v3348_v1, %v4905_v2  ;;  %v3360_v2 = vadd.f32 %v5082_v45, %v5074_v44 }
 0x1ea   : > { %2234 = vst [vmem:[%s5019_s29 + $0x70] sm:$0xff] %v2202_v63  ;;  %v2200_v55 = vmax.f32 %v2110_v59, 0.0  ;;  %v2121_v15 = vadd.f32 %v3446_v11, %v1960_v53  ;;  %v2261_v40 = vadd.f32 %v2260_v29, %v2198_v57  ;;  %v2303_v25 = vmul.f32 %v2202_v63, %v2202_v63  ;;  %v5187_v53 = vld [vmem:[#allocation4_spill] sm:$0xff] }
 0x1eb   : > { %v2329_v32 = vadd.f32 %v2328_v13, %v2298_v4  ;;  %v3365_v50 = vpop.f32.mrf.mxu1  ;;  %v2112_v31 = vpop.f32.mrf.mxu0  ;;  %v1989_v24 = vadd.f32 %v3363_v14, %v5187_v53  ;;  %v5191_v14 = vld [vmem:[#allocation8_spill] sm:$0xff] }
 0x1ec   : > { %2232 = vst [vmem:[%s5019_s29 + $0x60] sm:$0xff] %v2200_v55  ;;  %v2203_v16 = vmax.f32 %v2121_v15, 0.0  ;;  %v2113_v36 = vadd.f32 %v2112_v31, %v1952_v7  ;;  %v2262_v5 = vadd.f32 %v2261_v40, %v2199_v51  ;;  %v2301_v52 = vmul.f32 %v2200_v55, %v2200_v55 }
 0x1ed   : > { %v2330_v61 = vadd.f32 %v2329_v32, %v2299_v26  ;;  %v3367_v12 = vpop.f32.mrf.mxu1  ;;  %v3449_v20 = vpop.f32.mrf.mxu0  ;;  %v3366_v8 = vadd.f32 %v3365_v50, %v3364_v37  ;;  %v5188_v37 = vld [vmem:[#allocation2_spill] sm:$0xff]  ;;  %v5189_v26 = vld [vmem:[#allocation5_spill] sm:$0xff] }
 0x1ee   : > { %2235 = vst [vmem:[%s5019_s29 + $0x78] sm:$0xff] %v2203_v16  ;;  %v2201_v10 = vmax.f32 %v2113_v36, 0.0  ;;  %v2134_v57 = vadd.f32 %v3449_v20, %v1973_v62  ;;  %v2263_v58 = vadd.f32 %v2262_v5, %v2200_v55  ;;  %v2304_v4 = vmul.f32 %v2203_v16, %v2203_v16  ;;  %v5190_v20 = vld [vmem:[#allocation3_spill] sm:$0xff] }
 0x1ef   : > { %v2331_v60 = vadd.f32 %v2330_v61, %v2300_v34  ;;  %v3368_v30 = vpop.f32.mrf.mxu1  ;;  %v2125_v6 = vpop.f32.mrf.mxu0  ;;  %v1981_v11 = vadd.f32 %v3357_v38, %v5188_v37  ;;  %v1992_v40 = vadd.f32 %v3366_v8, %v5189_v26  ;;  %v1984_v1 = vadd.f32 %v3360_v2, %v5190_v20  ;;  %v5194_v2 = vld [vmem:[#allocation7_spill] sm:$0xff] }
 0x1f0   : > { %2233 = vst [vmem:[%s5019_s29 + $0x68] sm:$0xff] %v2201_v10  ;;  %v2302_v51 = vmul.f32 %v2201_v10, %v2201_v10  ;;  %v2206_v43 = vmax.f32 %v2134_v57, 0.0  ;;  %v2126_v28 = vadd.f32 %v2125_v6, %v1965_v48  ;;  %v2264_v56 = vadd.f32 %v2263_v58, %v2201_v10 }
 0x1f1   : > { %v2332_v19 = vadd.f32 %v2331_v60, %v2301_v52  ;;  %v3370_v22 = vpop.f32.mrf.mxu1  ;;  %v3450_v18 = vpop.f32.mrf.mxu0  ;;  %v3369_v34 = vadd.f32 %v3368_v30, %v3367_v12 }
 0x1f2   : > { %2238 = vst [vmem:[%s5019_s29 + $0x90] sm:$0xff] %v2206_v43  ;;  %v2204_v46 = vmax.f32 %v2126_v28, 0.0  ;;  %v2137_v9 = vadd.f32 %v3450_v18, %v1976_v3  ;;  %v2265_v54 = vadd.f32 %v2264_v56, %v2202_v63  ;;  %v2307_v10 = vmul.f32 %v2206_v43, %v2206_v43 }
 0x1f3   : > { %v2333_v33 = vadd.f32 %v2332_v19, %v2302_v51  ;;  %v3371_v21 = vpop.f32.mrf.mxu1  ;;  %v2128_v35 = vpop.f32.mrf.mxu0 }
 0x1f4   : > { %2236 = vst [vmem:[%s5019_s29 + $0x80] sm:$0xff] %v2204_v46  ;;  %v2207_v0 = vmax.f32 %v2137_v9, 0.0  ;;  %v2129_v27 = vadd.f32 %v2128_v35, %v1968_v17  ;;  %v2266_v23 = vadd.f32 %v2265_v54, %v2203_v16  ;;  %v2305_v55 = vmul.f32 %v2204_v46, %v2204_v46 }
 0x1f5   : > { %v2334_v49 = vadd.f32 %v2333_v33, %v2303_v25  ;;  %v3373_v59 = vpop.f32.mrf.mxu1  ;;  %v3453_v13 = vpop.f32.mrf.mxu0  ;;  %v3372_v18 = vadd.f32 %v3371_v21, %v3370_v22 }
 0x1f6   : > { %2239 = vst [vmem:[%s5019_s29 + $0x98] sm:$0xff] %v2207_v0  ;;  %v2205_v29 = vmax.f32 %v2129_v27, 0.0  ;;  %v2150_v63 = vadd.f32 %v3453_v13, %v1989_v24  ;;  %v2267_v42 = vadd.f32 %v2266_v23, %v2204_v46  ;;  %v2308_v28 = vmul.f32 %v2207_v0, %v2207_v0  ;;  %v5193_v24 = vld [vmem:[#allocation9_spill] sm:$0xff] }
 0x1f7   : > { %v2335_v15 = vadd.f32 %v2334_v49, %v2304_v4  ;;  %v3374_v7 = vpop.f32.mrf.mxu1  ;;  %v2141_v39 = vpop.f32.mrf.mxu0 }
 0x1f8   : > { %2237 = vst [vmem:[%s5019_s29 + $0x88] sm:$0xff] %v2205_v29  ;;  %v2306_v32 = vmul.f32 %v2205_v29, %v2205_v29  ;;  %v2210_v50 = vmax.f32 %v2150_v63, 0.0  ;;  %v3375_v31 = vadd.f32 %v3374_v7, %v3373_v59  ;;  %v2142_v16 = vadd.f32 %v2141_v39, %v1981_v11 }
 0x1f9   : > { %v2336_v44 = vadd.f32 %v2335_v15, %v2305_v55  ;;  %v2268_v45 = vadd.f32 %v2267_v42, %v2205_v29  ;;  %v3376_v36 = vpop.f32.mrf.mxu1  ;;  %v3454_v62 = vpop.f32.mrf.mxu0  ;;  %v2000_v29 = vadd.f32 %v3372_v18, %v5194_v2 }
 0x1fa   : > { %2242 = vst [vmem:[%s5019_s29 + $0xb0] sm:$0xff] %v2210_v50  ;;  %v2208_v61 = vmax.f32 %v2142_v16, 0.0  ;;  %v2153_v5 = vadd.f32 %v3454_v62, %v1992_v40  ;;  %v2005_v51 = vadd.f32 %v3375_v31, %v5191_v14  ;;  %v2311_v63 = vmul.f32 %v2210_v50, %v2210_v50 }
 0x1fb   : > { %v2269_v57 = vadd.f32 %v2268_v45, %v2206_v43  ;;  %v2337_v48 = vadd.f32 %v2336_v44, %v2306_v32  ;;  %v3377_v58 = vpop.f32.mrf.mxu1  ;;  %v2144_v52 = vpop.f32.mrf.mxu0  ;;  %v5192_v43 = vld [vmem:[#allocation6_spill] sm:$0xff] }
 0x1fc   : > { %2240 = vst [vmem:[%s5019_s29 + $0xa0] sm:$0xff] %v2208_v61  ;;  %v2211_v60 = vmax.f32 %v2153_v5, 0.0  ;;  %v3378_v6 = vadd.f32 %v3377_v58, %v3376_v36  ;;  %v2145_v3 = vadd.f32 %v2144_v52, %v1984_v1  ;;  %v1997_v9 = vadd.f32 %v3369_v34, %v5192_v43  ;;  %v5195_v45 = vld [vmem:[#allocation10_spill] sm:$0xff] }
 0x1fd   : > { %v2338_v12 = vadd.f32 %v2337_v48, %v2307_v10  ;;  %v2270_v30 = vadd.f32 %v2269_v57, %v2207_v0  ;;  %v3379_v19 = vpop.f32.mrf.mxu1  ;;  %v3457_v56 = vpop.f32.mrf.mxu0  ;;  %v2309_v25 = vmul.f32 %v2208_v61, %v2208_v61 }
 0x1fe   : > { %2243 = vst [vmem:[%s5019_s29 + $0xb8] sm:$0xff] %v2211_v60  ;;  %v2209_v38 = vmax.f32 %v2145_v3, 0.0  ;;  %v2166_v46 = vadd.f32 %v3457_v56, %v2005_v51  ;;  %v2008_v0 = vadd.f32 %v3378_v6, %v5193_v24  ;;  %v2312_v39 = vmul.f32 %v2211_v60, %v2211_v60  ;;  %v5196_v3 = vld [vmem:[#allocation11_spill] sm:$0xff] }
 0x1ff   : > { %v2271_v17 = vadd.f32 %v2270_v30, %v2208_v61  ;;  %v2339_v8 = vadd.f32 %v2338_v12, %v2308_v28  ;;  %v3380_v54 = vpop.f32.mrf.mxu1  ;;  %v2157_v33 = vpop.f32.mrf.mxu0 }
 0x200   : > { %2241 = vst [vmem:[%s5019_s29 + $0xa8] sm:$0xff] %v2209_v38  ;;  %v2310_v35 = vmul.f32 %v2209_v38, %v2209_v38  ;;  %v2214_v27 = vmax.f32 %v2166_v46, 0.0  ;;  %v2158_v53 = vadd.f32 %v2157_v33, %v1997_v9  ;;  %v3381_v23 = vadd.f32 %v3380_v54, %v3379_v19 }
 0x201   : > { %v2340_v4 = vadd.f32 %v2339_v8, %v2309_v25  ;;  %v2272_v22 = vadd.f32 %v2271_v17, %v2209_v38  ;;  %v3382_v21 = vpop.f32.mrf.mxu1  ;;  %v3458_v49 = vpop.f32.mrf.mxu0 }
 0x202   : > { %2246 = vst [vmem:[%s5019_s29 + $0xd0] sm:$0xff] %v2214_v27  ;;  %v2212_v59 = vmax.f32 %v2158_v53, 0.0  ;;  %v2169_v13 = vadd.f32 %v3458_v49, %v2008_v0  ;;  %v2013_v36 = vadd.f32 %v3381_v23, %v5195_v45  ;;  %v2315_v51 = vmul.f32 %v2214_v27, %v2214_v27 }
 0x203   : > { %v2273_v37 = vadd.f32 %v2272_v22, %v2210_v50  ;;  %v2341_v11 = vadd.f32 %v2340_v4, %v2310_v35  ;;  %v3383_v42 = vpop.f32.mrf.mxu1  ;;  %v2160_v55 = vpop.f32.mrf.mxu0 }
 0x204   : > { %2244 = vst [vmem:[%s5019_s29 + $0xc0] sm:$0xff] %v2212_v59  ;;  %v2215_v15 = vmax.f32 %v2169_v13, 0.0  ;;  %v2161_v7 = vadd.f32 %v2160_v55, %v2000_v29  ;;  %v3384_v16 = vadd.f32 %v3383_v42, %v3382_v21  ;;  %v2313_v34 = vmul.f32 %v2212_v59, %v2212_v59 }
 0x205   : > { %v2342_v26 = vadd.f32 %v2341_v11, %v2311_v63  ;;  %v2274_v40 = vadd.f32 %v2273_v37, %v2211_v60  ;;  %v3385_v32 = vpop.f32.mrf.mxu1  ;;  %v3461_v31 = vpop.f32.mrf.mxu0 }
 0x206   : > { %2247 = vst [vmem:[%s5019_s29 + $0xd8] sm:$0xff] %v2215_v15  ;;  %v2213_v44 = vmax.f32 %v2161_v7, 0.0  ;;  %v2016_v14 = vadd.f32 %v3384_v16, %v5196_v3  ;;  %v2316_v46 = vmul.f32 %v2215_v15, %v2215_v15 }
 0x207   : > { %v2275_v62 = vadd.f32 %v2274_v40, %v2212_v59  ;;  %v2343_v50 = vadd.f32 %v2342_v26, %v2312_v39  ;;  %v3386_v61 = vpop.f32.mrf.mxu1  ;;  %v2173_v5 = vpop.f32.mrf.mxu0 }
 0x208   : > { %2245 = vst [vmem:[%s5019_s29 + $0xc8] sm:$0xff] %v2213_v44  ;;  %v2314_v20 = vmul.f32 %v2213_v44, %v2213_v44  ;;  %v3387_v1 = vadd.f32 %v3386_v61, %v3385_v32  ;;  %v2174_v10 = vadd.f32 %v2173_v5, %v2013_v36 }
 0x209   : > { %v2344_v57 = vadd.f32 %v2343_v50, %v2313_v34  ;;  %v2276_v48 = vadd.f32 %v2275_v62, %v2213_v44  ;;  %v3388_v58 = vpop.f32.mrf.mxu1  ;;  %v3462_v52 = vpop.f32.mrf.mxu0 }
 0x20a   : > { %v2021_v60 = vadd.f32 %v3387_v1, %v5000_v41  ;;  %v2216_v6 = vmax.f32 %v2174_v10, 0.0 }
 0x20b   : > { %v2277_v28 = vadd.f32 %v2276_v48, %v2214_v27  ;;  %v2345_v12 = vadd.f32 %v2344_v57, %v2314_v20  ;;  %v3389_v30 = vpop.f32.mrf.mxu1  ;;  %v2176_v19 = vpop.f32.mrf.mxu0 }
 0x20c   : > { %v2182_v56 = vadd.f32 %v3461_v31, %v2021_v60  ;;  %2248 = vst [vmem:[%s5019_s29 + $0xe0] sm:$0xff] %v2216_v6  ;;  %v3390_v18 = vadd.f32 %v3389_v30, %v3388_v58  ;;  %v2177_v38 = vadd.f32 %v2176_v19, %v2016_v14  ;;  %v2317_v54 = vmul.f32 %v2216_v6, %v2216_v6 }
 0x20d   : > { %v2346_v43 = vadd.f32 %v2345_v12, %v2315_v51  ;;  %v2278_v9 = vadd.f32 %v2277_v28, %v2215_v15 }
 0x20e   : > { %v2218_v17 = vmax.f32 %v2182_v56, 0.0  ;;  %v2024_v41 = vadd.f32 %v3390_v18, %v5012_v47  ;;  %v2217_v25 = vmax.f32 %v2177_v38, 0.0 }
 0x20f   : > { %v2279_v8 = vadd.f32 %v2278_v9, %v2216_v6  ;;  %v2347_v33 = vadd.f32 %v2346_v43, %v2316_v46 }
 0x210   : > { %2250 = vst [vmem:[%s5019_s29 + $0xf0] sm:$0xff] %v2218_v17  ;;  %v2185_v35 = vadd.f32 %v3462_v52, %v2024_v41  ;;  %2249 = vst [vmem:[%s5019_s29 + $0xe8] sm:$0xff] %v2217_v25  ;;  %v2318_v27 = vmul.f32 %v2217_v25, %v2217_v25  ;;  %v2319_v4 = vmul.f32 %v2218_v17, %v2218_v17 }
 0x211   : > { %v2348_v53 = vadd.f32 %v2347_v33, %v2317_v54  ;;  %v2280_v24 = vadd.f32 %v2279_v8, %v2217_v25 }
 0x212   : > { %v2219_v0 = vmax.f32 %v2185_v35, 0.0 }
 0x213   : > { %v2281_v22 = vadd.f32 %v2280_v24, %v2218_v17  ;;  %v2349_v21 = vadd.f32 %v2348_v53, %v2318_v27 }
 0x214   : > { %2251 = vst [vmem:[%s5019_s29 + $0xf8] sm:$0xff] %v2219_v0  ;;  %v2320_v49 = vmul.f32 %v2219_v0, %v2219_v0 }
 0x215   : > { %v2282_v23 = vadd.f32 %v2281_v22, %v2219_v0  ;;  %v2350_v47 = vadd.f32 %v2349_v21, %v2319_v4 }
 0x217   : > { %v2283_v59 = vrot.slane %v2282_v23, 4  ;;  %v2351_v13 = vadd.f32 %v2350_v47, %v2320_v49 }
 0x219   : > { %v2284_v2 = vadd.f32 %v2283_v59, %v2282_v23  ;;  %v2352_v29 = vrot.slane %v2351_v13, 4 }
 0x21b   : > { %v2285_v63 = vrot.slane %v2284_v2, 2  ;;  %v2353_v37 = vadd.f32 %v2352_v29, %v2351_v13 }
 0x21d   : > { %v2286_v11 = vadd.f32 %v2285_v63, %v2284_v2  ;;  %v2354_v42 = vrot.slane %v2353_v37, 2 }
 0x21f   : > { %v2287_v55 = vrot.slane %v2286_v11, 1  ;;  %v2355_v15 = vadd.f32 %v2354_v42, %v2353_v37 }
 0x221   : > { %v2288_v7 = vadd.f32 %v2287_v55, %v2286_v11  ;;  %v2356_v39 = vrot.slane %v2355_v15, 1 }
 0x223   : > { %v2357_v26 = vadd.f32 %v2356_v39, %v2355_v15  ;;  %2362 = vst [vmem:[%s460_s8] sm:$0x1] %v2288_v7 }
 0x225   : > { %2363 = vst [vmem:[%s463_s12] sm:$0x1] %v2357_v26 }
 0x226 PF: > { %s18_s26 = sadd.s32 1, %s3598_s26   ;;  %s5197_s24 = smov %s3594_s25 }
 0x227   : > { %p15_p5 = scmp.ge.s32.totalorder %s18_s26, 4   ;;  %s5198_s25 = smov %s5200_s27 }
 0x229   :  { %17 = sbr.rel (!%p15_p5) target bundleno = 2 (0x2), region = 108 }

</bundles_post_ra>
